<compile_context>
chip_gen: v7x
topology: tpu7x:2x2x1
jax: 0.10.0
libtpu: 0.0.40
codegen_flags: <defaults>
</compile_context>

<pallas_src>
import functools
from types import SimpleNamespace

import jax
import jax.numpy as jnp
from jax.experimental import pallas as pl
from jax.experimental.pallas import tpu as pltpu


# ----------------------------- small helpers -----------------------------

def _round_up(v, m):
    return ((v + m - 1) // m) * m


def _pad2d(a, rows=None, cols=None):
    r = a.shape[0] if rows is None else rows
    c = a.shape[1] if cols is None else cols
    return jnp.pad(a, ((0, r - a.shape[0]), (0, c - a.shape[1])))


# ------------------- fused model2 kernel (enc + attention + dec) -------------------
# All arrays are padded wrapper-side so every in-kernel tensor / store is 128-lane dense:
#   x    : (tm, IN)    bf16      w_enc : (IN, DP)  bf16     b_enc : (1, DP)  f32
#   mem  : (MP, DP)    f32       w_dec top/bot: (DP, OUTP) bf16   b_dec : (1, OUTP) f32
# Padded memory items are masked to -inf before the softmax, padded feature columns are
# zero so they never contribute to any matmul.

def _model2_fused_kernel(m_real, x_ref, we_ref, be_ref, mem_ref, wdq_ref, wdr_ref, bd_ref,
                         out_ref, q_ref, sq_ref):
    q = jnp.tanh(jnp.dot(x_ref[...], we_ref[...],
                         preferred_element_type=jnp.float32) + be_ref[...])       # (tm, DP)
    mem = mem_ref[...]                                                             # (MP, DP)
    score = jax.lax.dot_general(q, mem, (((1,), (1,)), ((), ())),
                                preferred_element_type=jnp.float32)                # (tm, MP)
    col = jax.lax.broadcasted_iota(jnp.int32, score.shape, 1)
    score = jnp.where(col < m_real, score, -1e30)      # mask padded memory items
    eq = jnp.exp(score - jnp.max(score, axis=-1, keepdims=True))
    sq = eq * pl.reciprocal(jnp.sum(eq, axis=-1, keepdims=True), approx=True)      # softmax(M)
    read = jnp.dot(sq, mem, preferred_element_type=jnp.float32)                    # (tm, DP)
    # decoder: fea = [q | read] @ w_dec  ==  q @ w_dec_top + read @ w_dec_bot
    out = jnp.dot(q.astype(jnp.bfloat16), wdq_ref[...],
                  preferred_element_type=jnp.float32)
    out = out + jnp.dot(read.astype(jnp.bfloat16), wdr_ref[...],
                        preferred_element_type=jnp.float32)
    out_ref[...] = out + bd_ref[...]
    q_ref[...] = q
    sq_ref[...] = sq


def model2_fused(frame_a, frame_b, m_items, params):
    """One pallas_call for the whole model2 hot path. Returns (out, q, softmax_query)."""
    n = frame_a.shape[0]
    c, k = frame_a.shape[2], frame_a.shape[3]
    in_dim = 2 * c * k
    m_real, d = m_items.shape
    dp = _round_up(d, 128)
    mp = _round_up(m_real, 128)
    outp = _round_up(in_dim, 128)
    tm = min(256, _round_up(n, 8))           # v7x-friendly tile (well under 32 MiB VMEM)
    n_pad = _round_up(n, tm)

    x = jnp.concatenate([frame_a.reshape(n, -1), frame_b.reshape(n, -1)], axis=-1)
    x = _pad2d(x, rows=n_pad).astype(jnp.bfloat16)

    we = _pad2d(params["w_enc"], cols=dp).astype(jnp.bfloat16)            # (IN, DP)
    be = _pad2d(params["b_enc"], cols=dp)                                  # (1, DP)
    mem = _pad2d(m_items, rows=mp, cols=dp)                                # (MP, DP)
    wdq = _pad2d(params["w_dec"][:d], rows=dp, cols=outp).astype(jnp.bfloat16)
    wdr = _pad2d(params["w_dec"][d:], rows=dp, cols=outp).astype(jnp.bfloat16)
    bd = _pad2d(params["b_dec"], cols=outp)                                # (1, OUTP)

    out, q, sq = pl.pallas_call(
        functools.partial(_model2_fused_kernel, m_real),
        out_shape=(jax.ShapeDtypeStruct((n_pad, outp), jnp.float32),
                   jax.ShapeDtypeStruct((n_pad, dp), jnp.float32),
                   jax.ShapeDtypeStruct((n_pad, mp), jnp.float32)),
        grid=(n_pad // tm,),
        in_specs=[pl.BlockSpec((tm, in_dim), lambda i: (i, 0)),
                  pl.BlockSpec((in_dim, dp), lambda i: (0, 0)),
                  pl.BlockSpec((1, dp), lambda i: (0, 0)),
                  pl.BlockSpec((mp, dp), lambda i: (0, 0)),
                  pl.BlockSpec((dp, outp), lambda i: (0, 0)),
                  pl.BlockSpec((dp, outp), lambda i: (0, 0)),
                  pl.BlockSpec((1, outp), lambda i: (0, 0))],
        out_specs=(pl.BlockSpec((tm, outp), lambda i: (i, 0)),
                   pl.BlockSpec((tm, dp), lambda i: (i, 0)),
                   pl.BlockSpec((tm, mp), lambda i: (i, 0))),
        compiler_params=pltpu.CompilerParams(
            dimension_semantics=("parallel",)),
    )(x, we, be, mem, wdq, wdr, bd)

    out = out[:n, :in_dim].reshape(n, 2, c, k)
    return out, q[:n, :d], sq[:n, :m_real]


def memory_stats(q, sq, m_items):
    """Cold-path glue (plain JAX): query-axis softmax + MNAD-style memory losses."""
    score = q @ m_items.T
    em = jnp.exp(score - jnp.max(score, axis=0, keepdims=True))
    s_m = em / jnp.sum(em, axis=0, keepdims=True)
    _, idx = jax.lax.top_k(sq, 2)
    pos = m_items[idx[:, 0]]
    neg = m_items[idx[:, 1]]
    compactness = jnp.mean((q - pos) ** 2)
    separateness = jnp.mean(jnp.maximum(
        jnp.sum((q - pos) ** 2, axis=-1) - jnp.sum((q - neg) ** 2, axis=-1) + 1.0, 0.0))
    return s_m, separateness, compactness


# ----------------------------- model1: lane-dense 3x3 SR conv -----------------------------
# x_ref : (H+2, L+2) f32, L = N*W (batch folded into lanes), 1-lane global zero border.
# ml/mr : (1, L) 0/1 masks zeroing cross-sample taps.  k: (27,), b: (3,) in SMEM.
# o_ref : (3, H, L) — one stacked, lane-dense store.

def _conv3x3_kernel(x_ref, ml_ref, mr_ref, k_ref, b_ref, o_ref):
    _, h, L = o_ref.shape
    ml = ml_ref[...]
    mr = mr_ref[...]
    accs = [None, None, None]
    for dh in range(3):
        left = x_ref[dh:dh + h, 0:L] * ml          # tap (dh, dw=0)
        center = x_ref[dh:dh + h, 1:L + 1]         # tap (dh, dw=1)
        right = x_ref[dh:dh + h, 2:L + 2] * mr     # tap (dh, dw=2)
        taps = (left, center, right)
        for dw in range(3):
            t = taps[dw]
            for r in range(3):
                contrib = t * k_ref[r * 9 + dh * 3 + dw]
                accs[r] = contrib if accs[r] is None else accs[r] + contrib
    o_ref[...] = jnp.stack(
        [accs[0] + b_ref[0], accs[1] + b_ref[1], accs[2] + b_ref[2]], axis=0)


def model1_apply(x, params):
    # x: (N, 1, H, W) -> (N, 1, H, 3*W)  (x3 super-resolution along the last axis)
    # TODO(synk): original `model1` SR net not provided; synthetic 3x3 conv + width shuffle.
    n, _, h, w = x.shape
    L = n * w
    xp = jnp.pad(x[:, 0], ((0, 0), (1, 1), (0, 0)))                 # (N, H+2, W)
    x_flat = jnp.transpose(xp, (1, 0, 2)).reshape(h + 2, L)
    x_flat = jnp.pad(x_flat, ((0, 0), (1, 1)))                       # (H+2, L+2)
    pos = jnp.arange(L, dtype=jnp.int32) % w
    mask_left = (pos != 0).astype(jnp.float32)[None, :]
    mask_right = (pos != w - 1).astype(jnp.float32)[None, :]
    conv = pl.pallas_call(
        _conv3x3_kernel,
        out_shape=jax.ShapeDtypeStruct((3, h, L), jnp.float32),
        in_specs=[pl.BlockSpec(memory_space=pltpu.MemorySpace.VMEM),
                  pl.BlockSpec(memory_space=pltpu.MemorySpace.VMEM),
                  pl.BlockSpec(memory_space=pltpu.MemorySpace.VMEM),
                  pl.BlockSpec(memory_space=pltpu.MemorySpace.SMEM),
                  pl.BlockSpec(memory_space=pltpu.MemorySpace.SMEM)],
        out_specs=pl.BlockSpec(memory_space=pltpu.MemorySpace.VMEM),
    )(x_flat, mask_left, mask_right, params["w1"], params["b1"])
    # channel-interleave along width: out[n, h, 3w+r] = conv[r, h, n*W+w]
    up = jnp.transpose(conv.reshape(3, h, n, w), (2, 1, 3, 0)).reshape(n, h, 3 * w)
    return up[:, None]


# ----------------------------- parallel_model forward -----------------------------

def _keep_non_multiple_of_3(t):
    # reshape-based (no gather): keep indices i with i % 3 != 0, in order.
    L = t.shape[-1]
    m = L // 3
    head = t[..., :3 * m].reshape(t.shape[:-1] + (m, 3))[..., 1:]
    head = head.reshape(t.shape[:-1] + (2 * m,))
    if L - 3 * m == 2:                      # trailing index 3m+1 is also kept
        head = jnp.concatenate([head, t[..., -1:]], axis=-1)
    return head


def parallel_model_forward(x, m_items, train, params, args):
    yuan_volume = x.astype(jnp.float32)
    input_volume = yuan_volume[:, :, :, ::3]
    lr_volume = input_volume[:, :, :, ::3]
    b, c, k, g = lr_volume.shape

    slice1_10 = jnp.transpose(lr_volume[:, :, :, :-1], (0, 3, 1, 2)).reshape(-1, 1, c, k)
    slice10_19 = jnp.transpose(lr_volume[:, :, :, 1:], (0, 3, 1, 2)).reshape(-1, 1, c, k)
    slice1_4_7_10_13_16 = jnp.transpose(input_volume[:, :, :, :-1], (0, 3, 1, 2)).reshape(-1, 1, c, k)
    slice4_7_10_13_16_19 = jnp.transpose(input_volume[:, :, :, 1:], (0, 3, 1, 2)).reshape(-1, 1, c, k)

    # ----- phases 1 & 2 are independent (their s_q/s_m/losses are discarded by the
    #       reference, and m_items passes through), so they run as ONE fused, batched call.
    n1 = slice1_10.shape[0]
    fa12 = jnp.concatenate([slice1_10, slice1_4_7_10_13_16], axis=0)
    fb12 = jnp.concatenate([slice10_19, slice4_7_10_13_16_19], axis=0)
    out12, _, _ = model2_fused(fa12, fb12, m_items, params)
    slice4_7_13_16 = out12[:n1].reshape(-1, 1, c, k)
    slice2_3_5_6 = out12[n1:].reshape(-1, 1, c, k)

    # ----- phase 3 depends on phase-2 output; its s_q/s_m/losses are the returned ones.
    n6 = slice1_4_7_10_13_16.shape[0]
    a_fr = slice1_4_7_10_13_16[:, 0]
    b_fr = slice4_7_10_13_16_19[:, 0]
    s_fr = slice2_3_5_6[:, 0].reshape(n6, 2, c, k)
    # interleave exactly like the python append loops: [a_i, s_{2i}, s_{2i+1}] / [s_{2i}, s_{2i+1}, b_i]
    slice1_2_3_4_5_6_7 = jnp.concatenate([a_fr[:, None], s_fr], axis=1).reshape(-1, c, k)[:, None]
    slice2_3_4_5_6_7_8 = jnp.concatenate([s_fr, b_fr[:, None]], axis=1).reshape(-1, c, k)[:, None]
    out3, q3, s_q = model2_fused(slice1_2_3_4_5_6_7, slice2_3_4_5_6_7_8, m_items, params)
    slice03_06 = out3.reshape(-1, 1, c, k)
    s_m, sep_loss, comp_loss = memory_stats(q3, s_q, m_items)
    # TODO(synk): training-time memory-item update is not replicated; m_items passes through.

    interpolation_out = jnp.transpose(slice4_7_13_16.reshape(b, -1, c, k), (0, 2, 3, 1))
    interpolation_out_2_3_5_6_8_9 = jnp.transpose(slice2_3_5_6.reshape(b, -1, c, k), (0, 2, 3, 1))
    interpolation_out_03_06 = jnp.transpose(slice03_06.reshape(b, -1, c, k), (0, 2, 3, 1))

    # ---------------- super-resolution branch (model1) ----------------
    # Reference already requires c == k (it torch.cat's the left/right retrain frames), so
    # the first two model1 calls are batched into a single conv invocation as well.
    assert c == k, "SR left/right batching (as in the reference torch.cat) requires c == k"
    sr_lr_left = jnp.transpose(lr_volume[:, None], (0, 2, 1, 3, 4)).reshape(-1, 1, k, g)
    sr_lr_right = jnp.transpose(lr_volume[:, None], (0, 3, 1, 2, 4)).reshape(-1, 1, c, g)
    sr_out_lr = model1_apply(jnp.concatenate([sr_lr_left, sr_lr_right], axis=0),
                             params)[:, :, :, :-2]
    sr_out_l, sr_out_r = jnp.split(sr_out_lr, 2, axis=0)
    b1 = sr_out_l.shape[0]
    sr_left = jnp.transpose(
        sr_out_l.reshape(args.batch_size, b1 // args.batch_size, 1, k, -1), (0, 2, 1, 3, 4))[:, 0]
    sr_right = jnp.transpose(
        jnp.transpose(sr_out_r.reshape(args.batch_size, b1 // args.batch_size, 1, c, -1),
                      (0, 2, 1, 3, 4))[:, 0],
        (0, 2, 1, 3))

    sr_out_left = input_volume
    sr_out_retrain_left = jnp.transpose(sr_out_left[:, None], (0, 2, 1, 3, 4)).reshape(-1, 1, k, g)
    sr_out_retrain_right = jnp.transpose(sr_out_left[:, None], (0, 3, 1, 2, 4)).reshape(-1, 1, c, g)
    sr_out_retrain_left_right = jnp.concatenate([sr_out_retrain_left, sr_out_retrain_right], axis=0)
    sr_out_2_3_5_6_8_9_left_right = model1_apply(sr_out_retrain_left_right, params)[:, :, :, :-2]
    sr_out_03_06_left_right = model1_apply(sr_out_2_3_5_6_8_9_left_right, params)[:, :, :, :-2]
    s2_left, s2_right = jnp.split(sr_out_2_3_5_6_8_9_left_right, 2, axis=0)
    s3_left, s3_right = jnp.split(sr_out_03_06_left_right, 2, axis=0)

    def _view_left(t):
        return jnp.transpose(
            t.reshape(args.batch_size, b1 // args.batch_size, 1, c, -1), (0, 2, 1, 3, 4))[:, 0]

    def _view_right(t):
        v = jnp.transpose(
            t.reshape(args.batch_size, b1 // args.batch_size, 1, k, -1), (0, 2, 1, 3, 4))[:, 0]
        return jnp.transpose(v, (0, 2, 1, 3))

    sr_out_2_3_5_6_8_9_left = _keep_non_multiple_of_3(_view_left(s2_left))
    sr_out_2_3_5_6_8_9_right = _keep_non_multiple_of_3(_view_right(s2_right))
    sr_out_03_06_left = _keep_non_multiple_of_3(_view_left(s3_left))
    sr_out_03_06_right = _keep_non_multiple_of_3(_view_right(s3_right))

    return (interpolation_out, sr_left, sr_right, interpolation_out_2_3_5_6_8_9,
            sr_out_2_3_5_6_8_9_left, sr_out_2_3_5_6_8_9_right, m_items,
            interpolation_out_03_06, sr_out_03_06_left, sr_out_03_06_right,
            s_q, s_m, sep_loss, comp_loss)


# ----------------------------- params / main -----------------------------

def init_params(keys, c, k, d):
    # TODO(synk): original submodule weights not provided; deterministic synthetic params.
    k1, k2, k3 = keys[:3]
    in_dim = 2 * c * k
    return {
        "w1": (jax.random.normal(k1, (3, 3, 3), jnp.float32) * 0.1).reshape(27),
        "b1": jnp.linspace(-0.01, 0.01, 3).astype(jnp.float32),
        "w_enc": jax.random.normal(k2, (in_dim, d), jnp.float32) * 0.05,
        "b_enc": jnp.zeros((1, d), jnp.float32),
        "w_dec": jax.random.normal(k3, (2 * d, in_dim), jnp.float32) * 0.05,
        "b_dec": jnp.zeros((1, in_dim), jnp.float32),
    }


if __name__ == "__main__":
    args = SimpleNamespace(batch_size=2, depth=32)
    b, c, k, w = 2, 8, 8, 16          # x: (batch, slices, height, width); c == k as required
    key = jax.random.PRNGKey(0)
    kx, km, k1, k2, k3 = jax.random.split(key, 5)
    x = jax.random.normal(kx, (b, c, k, w), dtype=jnp.float32)
    n_mem, d = 10, args.depth
    m_items = jax.random.normal(km, (n_mem, d), dtype=jnp.float32)
    params = init_params((k1, k2, k3), c, k, d)

    fwd = jax.jit(functools.partial(parallel_model_forward, train=True,
                                    params=params, args=args))
    outs = fwd(x, m_items)
    outs = jax.tree_util.tree_map(lambda t: t.block_until_ready(), outs)
    print("KERNEL_OK")
</pallas_src>

<mosaic_0001>
module attributes {stable_mosaic.version = 11 : i64} {
  func.func @_model2_fused_kernel(%arg0: i32, %arg1: memref<16x128xbf16, #tpu.memory_space<vmem>>, %arg2: memref<128x128xbf16, #tpu.memory_space<vmem>>, %arg3: memref<1x128xf32, #tpu.memory_space<vmem>>, %arg4: memref<128x128xf32, #tpu.memory_space<vmem>>, %arg5: memref<128x128xbf16, #tpu.memory_space<vmem>>, %arg6: memref<128x128xbf16, #tpu.memory_space<vmem>>, %arg7: memref<1x128xf32, #tpu.memory_space<vmem>>, %arg8: memref<16x128xf32, #tpu.memory_space<vmem>>, %arg9: memref<16x128xf32, #tpu.memory_space<vmem>>, %arg10: memref<16x128xf32, #tpu.memory_space<vmem>>) attributes {dimension_semantics = [#tpu.dimension_semantics<parallel>], iteration_bounds = array<i64: 1>, scalar_prefetch = 0 : i64, scratch_operands = 0 : i64, tpu.core_type = #tpu.core_type<tc>, window_params = [{transform_indices = @transform_0, window_bounds = array<i64: 16, 128>}, {pipeline_mode = #tpu.pipeline_mode<synchronous>, transform_indices = @transform_1, window_bounds = array<i64: 128, 128>}, {pipeline_mode = #tpu.pipeline_mode<synchronous>, transform_indices = @transform_2, window_bounds = array<i64: 1, 128>}, {pipeline_mode = #tpu.pipeline_mode<synchronous>, transform_indices = @transform_3, window_bounds = array<i64: 128, 128>}, {pipeline_mode = #tpu.pipeline_mode<synchronous>, transform_indices = @transform_4, window_bounds = array<i64: 128, 128>}, {pipeline_mode = #tpu.pipeline_mode<synchronous>, transform_indices = @transform_5, window_bounds = array<i64: 128, 128>}, {pipeline_mode = #tpu.pipeline_mode<synchronous>, transform_indices = @transform_6, window_bounds = array<i64: 1, 128>}, {transform_indices = @transform_7, window_bounds = array<i64: 16, 128>}, {transform_indices = @transform_8, window_bounds = array<i64: 16, 128>}, {transform_indices = @transform_9, window_bounds = array<i64: 16, 128>}]} {
    %c0 = arith.constant 0 : index
    %c0_0 = arith.constant 0 : index
    %0 = vector.load %arg1[%c0, %c0_0] : memref<16x128xbf16, #tpu.memory_space<vmem>>, vector<16x128xbf16>
    %c0_1 = arith.constant 0 : index
    %c0_2 = arith.constant 0 : index
    %1 = vector.load %arg2[%c0_1, %c0_2] : memref<128x128xbf16, #tpu.memory_space<vmem>>, vector<128x128xbf16>
    %cst = arith.constant dense<0.000000e+00> : vector<16x128xf32>
    %2 = tpu.matmul %0, %1, %cst {dimension_numbers = #tpu.dot_dimension_numbers<[1], [0], [0], [1], [0, 0, 1, 1], [], []>} : vector<16x128xbf16>, vector<128x128xbf16>, vector<16x128xf32> -> vector<16x128xf32>
    %c0_3 = arith.constant 0 : index
    %c0_4 = arith.constant 0 : index
    %3 = vector.load %arg3[%c0_3, %c0_4] : memref<1x128xf32, #tpu.memory_space<vmem>>, vector<1x128xf32>
    %4 = vector.broadcast %3 : vector<1x128xf32> to vector<16x128xf32>
    %5 = arith.addf %2, %4 : vector<16x128xf32>
    %6 = math.tanh %5 : vector<16x128xf32>
    %c0_5 = arith.constant 0 : index
    %c0_6 = arith.constant 0 : index
    %7 = vector.load %arg4[%c0_5, %c0_6] : memref<128x128xf32, #tpu.memory_space<vmem>>, vector<128x128xf32>
    %cst_7 = arith.constant dense<0.000000e+00> : vector<16x128xf32>
    %8 = tpu.matmul %6, %7, %cst_7 {dimension_numbers = #tpu.dot_dimension_numbers<[1], [1], [0], [0], [0, 0, 1, 0], [], []>} : vector<16x128xf32>, vector<128x128xf32>, vector<16x128xf32> -> vector<16x128xf32>
    %9 = tpu.iota {dimensions = array<i32: 1>} : vector<16x128xi32>
    %c10_i32 = arith.constant 10 : i32
    %10 = vector.broadcast %c10_i32 : i32 to vector<16x128xi32>
    %11 = arith.cmpi slt, %9, %10 : vector<16x128xi32>
    %cst_8 = arith.constant -1.000000e+30 : f32
    %12 = vector.broadcast %cst_8 : f32 to vector<16x128xf32>
    %13 = arith.select %11, %8, %12 : vector<16x128xi1>, vector<16x128xf32>
    %cst_9 = arith.constant dense<0xFF800000> : vector<16xf32>
    %14 = vector.multi_reduction <maximumf>, %13, %cst_9 [1] : vector<16x128xf32> to vector<16xf32>
    %15 = vector.shape_cast %14 : vector<16xf32> to vector<16x1xf32>
    %16 = vector.broadcast %15 : vector<16x1xf32> to vector<16x128xf32>
    %17 = arith.subf %13, %16 : vector<16x128xf32>
    %18 = math.exp %17 : vector<16x128xf32>
    %cst_10 = arith.constant dense<0.000000e+00> : vector<16xf32>
    %19 = vector.multi_reduction <add>, %18, %cst_10 [1] : vector<16x128xf32> to vector<16xf32>
    %20 = vector.shape_cast %19 : vector<16xf32> to vector<16x1xf32>
    %21 = tpu.reciprocal %20 {approx = true} : vector<16x1xf32> -> vector<16x1xf32>
    %22 = vector.broadcast %21 : vector<16x1xf32> to vector<16x128xf32>
    %23 = arith.mulf %18, %22 : vector<16x128xf32>
    %cst_11 = arith.constant dense<0.000000e+00> : vector<16x128xf32>
    %24 = tpu.matmul %23, %7, %cst_11 {dimension_numbers = #tpu.dot_dimension_numbers<[1], [0], [0], [1], [0, 0, 1, 1], [], []>} : vector<16x128xf32>, vector<128x128xf32>, vector<16x128xf32> -> vector<16x128xf32>
    %25 = arith.truncf %6 : vector<16x128xf32> to vector<16x128xbf16>
    %c0_12 = arith.constant 0 : index
    %c0_13 = arith.constant 0 : index
    %26 = vector.load %arg5[%c0_12, %c0_13] : memref<128x128xbf16, #tpu.memory_space<vmem>>, vector<128x128xbf16>
    %cst_14 = arith.constant dense<0.000000e+00> : vector<16x128xf32>
    %27 = tpu.matmul %25, %26, %cst_14 {dimension_numbers = #tpu.dot_dimension_numbers<[1], [0], [0], [1], [0, 0, 1, 1], [], []>} : vector<16x128xbf16>, vector<128x128xbf16>, vector<16x128xf32> -> vector<16x128xf32>
    %28 = arith.truncf %24 : vector<16x128xf32> to vector<16x128xbf16>
    %c0_15 = arith.constant 0 : index
    %c0_16 = arith.constant 0 : index
    %29 = vector.load %arg6[%c0_15, %c0_16] : memref<128x128xbf16, #tpu.memory_space<vmem>>, vector<128x128xbf16>
    %cst_17 = arith.constant dense<0.000000e+00> : vector<16x128xf32>
    %30 = tpu.matmul %28, %29, %cst_17 {dimension_numbers = #tpu.dot_dimension_numbers<[1], [0], [0], [1], [0, 0, 1, 1], [], []>} : vector<16x128xbf16>, vector<128x128xbf16>, vector<16x128xf32> -> vector<16x128xf32>
    %31 = arith.addf %27, %30 : vector<16x128xf32>
    %c0_18 = arith.constant 0 : index
    %c0_19 = arith.constant 0 : index
    %32 = vector.load %arg7[%c0_18, %c0_19] : memref<1x128xf32, #tpu.memory_space<vmem>>, vector<1x128xf32>
    %33 = vector.broadcast %32 : vector<1x128xf32> to vector<16x128xf32>
    %34 = arith.addf %31, %33 : vector<16x128xf32>
    %c0_20 = arith.constant 0 : index
    %c0_21 = arith.constant 0 : index
    %35 = vector.load %arg8[%c0_20, %c0_21] : memref<16x128xf32, #tpu.memory_space<vmem>>, vector<16x128xf32>
    tpu.vector_store %arg8[%c0_20, %c0_21], %34 {strides = array<i32>} : memref<16x128xf32, #tpu.memory_space<vmem>>, vector<16x128xf32>,
    %c0_22 = arith.constant 0 : index
    %c0_23 = arith.constant 0 : index
    %36 = vector.load %arg9[%c0_22, %c0_23] : memref<16x128xf32, #tpu.memory_space<vmem>>, vector<16x128xf32>
    tpu.vector_store %arg9[%c0_22, %c0_23], %6 {strides = array<i32>} : memref<16x128xf32, #tpu.memory_space<vmem>>, vector<16x128xf32>,
    %c0_24 = arith.constant 0 : index
    %c0_25 = arith.constant 0 : index
    %37 = vector.load %arg10[%c0_24, %c0_25] : memref<16x128xf32, #tpu.memory_space<vmem>>, vector<16x128xf32>
    tpu.vector_store %arg10[%c0_24, %c0_25], %23 {strides = array<i32>} : memref<16x128xf32, #tpu.memory_space<vmem>>, vector<16x128xf32>,
    return
  }
  func.func @transform_0(%arg0: i32) -> (i32, i32) {
    %c0_i32 = arith.constant 0 : i32
    %c0_i32_0 = arith.constant 0 : i32
    return %arg0, %c0_i32 : i32, i32
  }
  func.func @transform_1(%arg0: i32) -> (i32, i32) {
    %c0_i32 = arith.constant 0 : i32
    %c0_i32_0 = arith.constant 0 : i32
    %c0_i32_1 = arith.constant 0 : i32
    return %c0_i32, %c0_i32_0 : i32, i32
  }
  func.func @transform_2(%arg0: i32) -> (i32, i32) {
    %c0_i32 = arith.constant 0 : i32
    %c0_i32_0 = arith.constant 0 : i32
    %c0_i32_1 = arith.constant 0 : i32
    return %c0_i32, %c0_i32_0 : i32, i32
  }
  func.func @transform_3(%arg0: i32) -> (i32, i32) {
    %c0_i32 = arith.constant 0 : i32
    %c0_i32_0 = arith.constant 0 : i32
    %c0_i32_1 = arith.constant 0 : i32
    return %c0_i32, %c0_i32_0 : i32, i32
  }
  func.func @transform_4(%arg0: i32) -> (i32, i32) {
    %c0_i32 = arith.constant 0 : i32
    %c0_i32_0 = arith.constant 0 : i32
    %c0_i32_1 = arith.constant 0 : i32
    return %c0_i32, %c0_i32_0 : i32, i32
  }
  func.func @transform_5(%arg0: i32) -> (i32, i32) {
    %c0_i32 = arith.constant 0 : i32
    %c0_i32_0 = arith.constant 0 : i32
    %c0_i32_1 = arith.constant 0 : i32
    return %c0_i32, %c0_i32_0 : i32, i32
  }
  func.func @transform_6(%arg0: i32) -> (i32, i32) {
    %c0_i32 = arith.constant 0 : i32
    %c0_i32_0 = arith.constant 0 : i32
    %c0_i32_1 = arith.constant 0 : i32
    return %c0_i32, %c0_i32_0 : i32, i32
  }
  func.func @transform_7(%arg0: i32) -> (i32, i32) {
    %c0_i32 = arith.constant 0 : i32
    %c0_i32_0 = arith.constant 0 : i32
    return %arg0, %c0_i32 : i32, i32
  }
  func.func @transform_8(%arg0: i32) -> (i32, i32) {
    %c0_i32 = arith.constant 0 : i32
    %c0_i32_0 = arith.constant 0 : i32
    return %arg0, %c0_i32 : i32, i32
  }
  func.func @transform_9(%arg0: i32) -> (i32, i32) {
    %c0_i32 = arith.constant 0 : i32
    %c0_i32_0 = arith.constant 0 : i32
    return %arg0, %c0_i32 : i32, i32
  }
}

module attributes {stable_mosaic.version = 11 : i64} {
  func.func @_model2_fused_kernel(%arg0: i32, %arg1: memref<32x128xbf16, #tpu.memory_space<vmem>>, %arg2: memref<128x128xbf16, #tpu.memory_space<vmem>>, %arg3: memref<1x128xf32, #tpu.memory_space<vmem>>, %arg4: memref<128x128xf32, #tpu.memory_space<vmem>>, %arg5: memref<128x128xbf16, #tpu.memory_space<vmem>>, %arg6: memref<128x128xbf16, #tpu.memory_space<vmem>>, %arg7: memref<1x128xf32, #tpu.memory_space<vmem>>, %arg8: memref<32x128xf32, #tpu.memory_space<vmem>>, %arg9: memref<32x128xf32, #tpu.memory_space<vmem>>, %arg10: memref<32x128xf32, #tpu.memory_space<vmem>>) attributes {dimension_semantics = [#tpu.dimension_semantics<parallel>], iteration_bounds = array<i64: 1>, scalar_prefetch = 0 : i64, scratch_operands = 0 : i64, tpu.core_type = #tpu.core_type<tc>, window_params = [{transform_indices = @transform_0, window_bounds = array<i64: 32, 128>}, {pipeline_mode = #tpu.pipeline_mode<synchronous>, transform_indices = @transform_1, window_bounds = array<i64: 128, 128>}, {pipeline_mode = #tpu.pipeline_mode<synchronous>, transform_indices = @transform_2, window_bounds = array<i64: 1, 128>}, {pipeline_mode = #tpu.pipeline_mode<synchronous>, transform_indices = @transform_3, window_bounds = array<i64: 128, 128>}, {pipeline_mode = #tpu.pipeline_mode<synchronous>, transform_indices = @transform_4, window_bounds = array<i64: 128, 128>}, {pipeline_mode = #tpu.pipeline_mode<synchronous>, transform_indices = @transform_5, window_bounds = array<i64: 128, 128>}, {pipeline_mode = #tpu.pipeline_mode<synchronous>, transform_indices = @transform_6, window_bounds = array<i64: 1, 128>}, {transform_indices = @transform_7, window_bounds = array<i64: 32, 128>}, {transform_indices = @transform_8, window_bounds = array<i64: 32, 128>}, {transform_indices = @transform_9, window_bounds = array<i64: 32, 128>}]} {
    %c0 = arith.constant 0 : index
    %c0_0 = arith.constant 0 : index
    %0 = vector.load %arg1[%c0, %c0_0] : memref<32x128xbf16, #tpu.memory_space<vmem>>, vector<32x128xbf16>
    %c0_1 = arith.constant 0 : index
    %c0_2 = arith.constant 0 : index
    %1 = vector.load %arg2[%c0_1, %c0_2] : memref<128x128xbf16, #tpu.memory_space<vmem>>, vector<128x128xbf16>
    %cst = arith.constant dense<0.000000e+00> : vector<32x128xf32>
    %2 = tpu.matmul %0, %1, %cst {dimension_numbers = #tpu.dot_dimension_numbers<[1], [0], [0], [1], [0, 0, 1, 1], [], []>} : vector<32x128xbf16>, vector<128x128xbf16>, vector<32x128xf32> -> vector<32x128xf32>
    %c0_3 = arith.constant 0 : index
    %c0_4 = arith.constant 0 : index
    %3 = vector.load %arg3[%c0_3, %c0_4] : memref<1x128xf32, #tpu.memory_space<vmem>>, vector<1x128xf32>
    %4 = vector.broadcast %3 : vector<1x128xf32> to vector<32x128xf32>
    %5 = arith.addf %2, %4 : vector<32x128xf32>
    %6 = math.tanh %5 : vector<32x128xf32>
    %c0_5 = arith.constant 0 : index
    %c0_6 = arith.constant 0 : index
    %7 = vector.load %arg4[%c0_5, %c0_6] : memref<128x128xf32, #tpu.memory_space<vmem>>, vector<128x128xf32>
    %cst_7 = arith.constant dense<0.000000e+00> : vector<32x128xf32>
    %8 = tpu.matmul %6, %7, %cst_7 {dimension_numbers = #tpu.dot_dimension_numbers<[1], [1], [0], [0], [0, 0, 1, 0], [], []>} : vector<32x128xf32>, vector<128x128xf32>, vector<32x128xf32> -> vector<32x128xf32>
    %9 = tpu.iota {dimensions = array<i32: 1>} : vector<32x128xi32>
    %c10_i32 = arith.constant 10 : i32
    %10 = vector.broadcast %c10_i32 : i32 to vector<32x128xi32>
    %11 = arith.cmpi slt, %9, %10 : vector<32x128xi32>
    %cst_8 = arith.constant -1.000000e+30 : f32
    %12 = vector.broadcast %cst_8 : f32 to vector<32x128xf32>
    %13 = arith.select %11, %8, %12 : vector<32x128xi1>, vector<32x128xf32>
    %cst_9 = arith.constant dense<0xFF800000> : vector<32xf32>
    %14 = vector.multi_reduction <maximumf>, %13, %cst_9 [1] : vector<32x128xf32> to vector<32xf32>
    %15 = vector.shape_cast %14 : vector<32xf32> to vector<32x1xf32>
    %16 = vector.broadcast %15 : vector<32x1xf32> to vector<32x128xf32>
    %17 = arith.subf %13, %16 : vector<32x128xf32>
    %18 = math.exp %17 : vector<32x128xf32>
    %cst_10 = arith.constant dense<0.000000e+00> : vector<32xf32>
    %19 = vector.multi_reduction <add>, %18, %cst_10 [1] : vector<32x128xf32> to vector<32xf32>
    %20 = vector.shape_cast %19 : vector<32xf32> to vector<32x1xf32>
    %21 = tpu.reciprocal %20 {approx = true} : vector<32x1xf32> -> vector<32x1xf32>
    %22 = vector.broadcast %21 : vector<32x1xf32> to vector<32x128xf32>
    %23 = arith.mulf %18, %22 : vector<32x128xf32>
    %cst_11 = arith.constant dense<0.000000e+00> : vector<32x128xf32>
    %24 = tpu.matmul %23, %7, %cst_11 {dimension_numbers = #tpu.dot_dimension_numbers<[1], [0], [0], [1], [0, 0, 1, 1], [], []>} : vector<32x128xf32>, vector<128x128xf32>, vector<32x128xf32> -> vector<32x128xf32>
    %25 = arith.truncf %6 : vector<32x128xf32> to vector<32x128xbf16>
    %c0_12 = arith.constant 0 : index
    %c0_13 = arith.constant 0 : index
    %26 = vector.load %arg5[%c0_12, %c0_13] : memref<128x128xbf16, #tpu.memory_space<vmem>>, vector<128x128xbf16>
    %cst_14 = arith.constant dense<0.000000e+00> : vector<32x128xf32>
    %27 = tpu.matmul %25, %26, %cst_14 {dimension_numbers = #tpu.dot_dimension_numbers<[1], [0], [0], [1], [0, 0, 1, 1], [], []>} : vector<32x128xbf16>, vector<128x128xbf16>, vector<32x128xf32> -> vector<32x128xf32>
    %28 = arith.truncf %24 : vector<32x128xf32> to vector<32x128xbf16>
    %c0_15 = arith.constant 0 : index
    %c0_16 = arith.constant 0 : index
    %29 = vector.load %arg6[%c0_15, %c0_16] : memref<128x128xbf16, #tpu.memory_space<vmem>>, vector<128x128xbf16>
    %cst_17 = arith.constant dense<0.000000e+00> : vector<32x128xf32>
    %30 = tpu.matmul %28, %29, %cst_17 {dimension_numbers = #tpu.dot_dimension_numbers<[1], [0], [0], [1], [0, 0, 1, 1], [], []>} : vector<32x128xbf16>, vector<128x128xbf16>, vector<32x128xf32> -> vector<32x128xf32>
    %31 = arith.addf %27, %30 : vector<32x128xf32>
    %c0_18 = arith.constant 0 : index
    %c0_19 = arith.constant 0 : index
    %32 = vector.load %arg7[%c0_18, %c0_19] : memref<1x128xf32, #tpu.memory_space<vmem>>, vector<1x128xf32>
    %33 = vector.broadcast %32 : vector<1x128xf32> to vector<32x128xf32>
    %34 = arith.addf %31, %33 : vector<32x128xf32>
    %c0_20 = arith.constant 0 : index
    %c0_21 = arith.constant 0 : index
    %35 = vector.load %arg8[%c0_20, %c0_21] : memref<32x128xf32, #tpu.memory_space<vmem>>, vector<32x128xf32>
    tpu.vector_store %arg8[%c0_20, %c0_21], %34 {strides = array<i32>} : memref<32x128xf32, #tpu.memory_space<vmem>>, vector<32x128xf32>,
    %c0_22 = arith.constant 0 : index
    %c0_23 = arith.constant 0 : index
    %36 = vector.load %arg9[%c0_22, %c0_23] : memref<32x128xf32, #tpu.memory_space<vmem>>, vector<32x128xf32>
    tpu.vector_store %arg9[%c0_22, %c0_23], %6 {strides = array<i32>} : memref<32x128xf32, #tpu.memory_space<vmem>>, vector<32x128xf32>,
    %c0_24 = arith.constant 0 : index
    %c0_25 = arith.constant 0 : index
    %37 = vector.load %arg10[%c0_24, %c0_25] : memref<32x128xf32, #tpu.memory_space<vmem>>, vector<32x128xf32>
    tpu.vector_store %arg10[%c0_24, %c0_25], %23 {strides = array<i32>} : memref<32x128xf32, #tpu.memory_space<vmem>>, vector<32x128xf32>,
    return
  }
  func.func @transform_0(%arg0: i32) -> (i32, i32) {
    %c0_i32 = arith.constant 0 : i32
    %c0_i32_0 = arith.constant 0 : i32
    return %arg0, %c0_i32 : i32, i32
  }
  func.func @transform_1(%arg0: i32) -> (i32, i32) {
    %c0_i32 = arith.constant 0 : i32
    %c0_i32_0 = arith.constant 0 : i32
    %c0_i32_1 = arith.constant 0 : i32
    return %c0_i32, %c0_i32_0 : i32, i32
  }
  func.func @transform_2(%arg0: i32) -> (i32, i32) {
    %c0_i32 = arith.constant 0 : i32
    %c0_i32_0 = arith.constant 0 : i32
    %c0_i32_1 = arith.constant 0 : i32
    return %c0_i32, %c0_i32_0 : i32, i32
  }
  func.func @transform_3(%arg0: i32) -> (i32, i32) {
    %c0_i32 = arith.constant 0 : i32
    %c0_i32_0 = arith.constant 0 : i32
    %c0_i32_1 = arith.constant 0 : i32
    return %c0_i32, %c0_i32_0 : i32, i32
  }
  func.func @transform_4(%arg0: i32) -> (i32, i32) {
    %c0_i32 = arith.constant 0 : i32
    %c0_i32_0 = arith.constant 0 : i32
    %c0_i32_1 = arith.constant 0 : i32
    return %c0_i32, %c0_i32_0 : i32, i32
  }
  func.func @transform_5(%arg0: i32) -> (i32, i32) {
    %c0_i32 = arith.constant 0 : i32
    %c0_i32_0 = arith.constant 0 : i32
    %c0_i32_1 = arith.constant 0 : i32
    return %c0_i32, %c0_i32_0 : i32, i32
  }
  func.func @transform_6(%arg0: i32) -> (i32, i32) {
    %c0_i32 = arith.constant 0 : i32
    %c0_i32_0 = arith.constant 0 : i32
    %c0_i32_1 = arith.constant 0 : i32
    return %c0_i32, %c0_i32_0 : i32, i32
  }
  func.func @transform_7(%arg0: i32) -> (i32, i32) {
    %c0_i32 = arith.constant 0 : i32
    %c0_i32_0 = arith.constant 0 : i32
    return %arg0, %c0_i32 : i32, i32
  }
  func.func @transform_8(%arg0: i32) -> (i32, i32) {
    %c0_i32 = arith.constant 0 : i32
    %c0_i32_0 = arith.constant 0 : i32
    return %arg0, %c0_i32 : i32, i32
  }
  func.func @transform_9(%arg0: i32) -> (i32, i32) {
    %c0_i32 = arith.constant 0 : i32
    %c0_i32_0 = arith.constant 0 : i32
    return %arg0, %c0_i32 : i32, i32
  }
}

module attributes {stable_mosaic.version = 11 : i64} {
  func.func @_conv3x3_kernel(%arg0: memref<10x66xf32, #tpu.memory_space<vmem>>, %arg1: memref<1x64xf32, #tpu.memory_space<vmem>>, %arg2: memref<1x64xf32, #tpu.memory_space<vmem>>, %arg3: memref<27xf32, #tpu.memory_space<smem>>, %arg4: memref<3xf32, #tpu.memory_space<smem>>, %arg5: memref<3x8x64xf32, #tpu.memory_space<vmem>>) attributes {dimension_semantics = [], scalar_prefetch = 0 : i64, scratch_operands = 0 : i64, tpu.core_type = #tpu.core_type<tc>} {
    %c0 = arith.constant 0 : index
    %c0_0 = arith.constant 0 : index
    %0 = vector.load %arg1[%c0, %c0_0] : memref<1x64xf32, #tpu.memory_space<vmem>>, vector<1x64xf32>
    %c0_1 = arith.constant 0 : index
    %c0_2 = arith.constant 0 : index
    %1 = vector.load %arg2[%c0_1, %c0_2] : memref<1x64xf32, #tpu.memory_space<vmem>>, vector<1x64xf32>
    %c0_3 = arith.constant 0 : index
    %c0_4 = arith.constant 0 : index
    %2 = vector.load %arg0[%c0_3, %c0_4] : memref<10x66xf32, #tpu.memory_space<vmem>>, vector<8x64xf32>
    %3 = vector.broadcast %0 : vector<1x64xf32> to vector<8x64xf32>
    %4 = arith.mulf %2, %3 : vector<8x64xf32>
    %c0_5 = arith.constant 0 : index
    %c1 = arith.constant 1 : index
    %5 = vector.load %arg0[%c0_5, %c1] : memref<10x66xf32, #tpu.memory_space<vmem>>, vector<8x64xf32>
    %c0_6 = arith.constant 0 : index
    %c2 = arith.constant 2 : index
    %6 = vector.load %arg0[%c0_6, %c2] : memref<10x66xf32, #tpu.memory_space<vmem>>, vector<8x64xf32>
    %7 = vector.broadcast %1 : vector<1x64xf32> to vector<8x64xf32>
    %8 = arith.mulf %6, %7 : vector<8x64xf32>
    %c0_7 = arith.constant 0 : index
    %9 = memref.load %arg3[%c0_7] : memref<27xf32, #tpu.memory_space<smem>>
    %10 = vector.broadcast %9 : f32 to vector<8x64xf32>
    %11 = arith.mulf %4, %10 : vector<8x64xf32>
    %c9 = arith.constant 9 : index
    %12 = memref.load %arg3[%c9] : memref<27xf32, #tpu.memory_space<smem>>
    %13 = vector.broadcast %12 : f32 to vector<8x64xf32>
    %14 = arith.mulf %4, %13 : vector<8x64xf32>
    %c18 = arith.constant 18 : index
    %15 = memref.load %arg3[%c18] : memref<27xf32, #tpu.memory_space<smem>>
    %16 = vector.broadcast %15 : f32 to vector<8x64xf32>
    %17 = arith.mulf %4, %16 : vector<8x64xf32>
    %c1_8 = arith.constant 1 : index
    %18 = memref.load %arg3[%c1_8] : memref<27xf32, #tpu.memory_space<smem>>
    %19 = vector.broadcast %18 : f32 to vector<8x64xf32>
    %20 = arith.mulf %5, %19 : vector<8x64xf32>
    %21 = arith.addf %11, %20 : vector<8x64xf32>
    %c10 = arith.constant 10 : index
    %22 = memref.load %arg3[%c10] : memref<27xf32, #tpu.memory_space<smem>>
    %23 = vector.broadcast %22 : f32 to vector<8x64xf32>
    %24 = arith.mulf %5, %23 : vector<8x64xf32>
    %25 = arith.addf %14, %24 : vector<8x64xf32>
    %c19 = arith.constant 19 : index
    %26 = memref.load %arg3[%c19] : memref<27xf32, #tpu.memory_space<smem>>
    %27 = vector.broadcast %26 : f32 to vector<8x64xf32>
    %28 = arith.mulf %5, %27 : vector<8x64xf32>
    %29 = arith.addf %17, %28 : vector<8x64xf32>
    %c2_9 = arith.constant 2 : index
    %30 = memref.load %arg3[%c2_9] : memref<27xf32, #tpu.memory_space<smem>>
    %31 = vector.broadcast %30 : f32 to vector<8x64xf32>
    %32 = arith.mulf %8, %31 : vector<8x64xf32>
    %33 = arith.addf %21, %32 : vector<8x64xf32>
    %c11 = arith.constant 11 : index
    %34 = memref.load %arg3[%c11] : memref<27xf32, #tpu.memory_space<smem>>
    %35 = vector.broadcast %34 : f32 to vector<8x64xf32>
    %36 = arith.mulf %8, %35 : vector<8x64xf32>
    %37 = arith.addf %25, %36 : vector<8x64xf32>
    %c20 = arith.constant 20 : index
    %38 = memref.load %arg3[%c20] : memref<27xf32, #tpu.memory_space<smem>>
    %39 = vector.broadcast %38 : f32 to vector<8x64xf32>
    %40 = arith.mulf %8, %39 : vector<8x64xf32>
    %41 = arith.addf %29, %40 : vector<8x64xf32>
    %c1_10 = arith.constant 1 : index
    %c0_11 = arith.constant 0 : index
    %42 = vector.load %arg0[%c1_10, %c0_11] : memref<10x66xf32, #tpu.memory_space<vmem>>, vector<8x64xf32>
    %43 = vector.broadcast %0 : vector<1x64xf32> to vector<8x64xf32>
    %44 = arith.mulf %42, %43 : vector<8x64xf32>
    %c1_12 = arith.constant 1 : index
    %c1_13 = arith.constant 1 : index
    %45 = vector.load %arg0[%c1_12, %c1_13] : memref<10x66xf32, #tpu.memory_space<vmem>>, vector<8x64xf32>
    %c1_14 = arith.constant 1 : index
    %c2_15 = arith.constant 2 : index
    %46 = vector.load %arg0[%c1_14, %c2_15] : memref<10x66xf32, #tpu.memory_space<vmem>>, vector<8x64xf32>
    %47 = vector.broadcast %1 : vector<1x64xf32> to vector<8x64xf32>
    %48 = arith.mulf %46, %47 : vector<8x64xf32>
    %c3 = arith.constant 3 : index
    %49 = memref.load %arg3[%c3] : memref<27xf32, #tpu.memory_space<smem>>
    %50 = vector.broadcast %49 : f32 to vector<8x64xf32>
    %51 = arith.mulf %44, %50 : vector<8x64xf32>
    %52 = arith.addf %33, %51 : vector<8x64xf32>
    %c12 = arith.constant 12 : index
    %53 = memref.load %arg3[%c12] : memref<27xf32, #tpu.memory_space<smem>>
    %54 = vector.broadcast %53 : f32 to vector<8x64xf32>
    %55 = arith.mulf %44, %54 : vector<8x64xf32>
    %56 = arith.addf %37, %55 : vector<8x64xf32>
    %c21 = arith.constant 21 : index
    %57 = memref.load %arg3[%c21] : memref<27xf32, #tpu.memory_space<smem>>
    %58 = vector.broadcast %57 : f32 to vector<8x64xf32>
    %59 = arith.mulf %44, %58 : vector<8x64xf32>
    %60 = arith.addf %41, %59 : vector<8x64xf32>
    %c4 = arith.constant 4 : index
    %61 = memref.load %arg3[%c4] : memref<27xf32, #tpu.memory_space<smem>>
    %62 = vector.broadcast %61 : f32 to vector<8x64xf32>
    %63 = arith.mulf %45, %62 : vector<8x64xf32>
    %64 = arith.addf %52, %63 : vector<8x64xf32>
    %c13 = arith.constant 13 : index
    %65 = memref.load %arg3[%c13] : memref<27xf32, #tpu.memory_space<smem>>
    %66 = vector.broadcast %65 : f32 to vector<8x64xf32>
    %67 = arith.mulf %45, %66 : vector<8x64xf32>
    %68 = arith.addf %56, %67 : vector<8x64xf32>
    %c22 = arith.constant 22 : index
    %69 = memref.load %arg3[%c22] : memref<27xf32, #tpu.memory_space<smem>>
    %70 = vector.broadcast %69 : f32 to vector<8x64xf32>
    %71 = arith.mulf %45, %70 : vector<8x64xf32>
    %72 = arith.addf %60, %71 : vector<8x64xf32>
    %c5 = arith.constant 5 : index
    %73 = memref.load %arg3[%c5] : memref<27xf32, #tpu.memory_space<smem>>
    %74 = vector.broadcast %73 : f32 to vector<8x64xf32>
    %75 = arith.mulf %48, %74 : vector<8x64xf32>
    %76 = arith.addf %64, %75 : vector<8x64xf32>
    %c14 = arith.constant 14 : index
    %77 = memref.load %arg3[%c14] : memref<27xf32, #tpu.memory_space<smem>>
    %78 = vector.broadcast %77 : f32 to vector<8x64xf32>
    %79 = arith.mulf %48, %78 : vector<8x64xf32>
    %80 = arith.addf %68, %79 : vector<8x64xf32>
    %c23 = arith.constant 23 : index
    %81 = memref.load %arg3[%c23] : memref<27xf32, #tpu.memory_space<smem>>
    %82 = vector.broadcast %81 : f32 to vector<8x64xf32>
    %83 = arith.mulf %48, %82 : vector<8x64xf32>
    %84 = arith.addf %72, %83 : vector<8x64xf32>
    %c2_16 = arith.constant 2 : index
    %c0_17 = arith.constant 0 : index
    %85 = vector.load %arg0[%c2_16, %c0_17] : memref<10x66xf32, #tpu.memory_space<vmem>>, vector<8x64xf32>
    %86 = vector.broadcast %0 : vector<1x64xf32> to vector<8x64xf32>
    %87 = arith.mulf %85, %86 : vector<8x64xf32>
    %c2_18 = arith.constant 2 : index
    %c1_19 = arith.constant 1 : index
    %88 = vector.load %arg0[%c2_18, %c1_19] : memref<10x66xf32, #tpu.memory_space<vmem>>, vector<8x64xf32>
    %c2_20 = arith.constant 2 : index
    %c2_21 = arith.constant 2 : index
    %89 = vector.load %arg0[%c2_20, %c2_21] : memref<10x66xf32, #tpu.memory_space<vmem>>, vector<8x64xf32>
    %90 = vector.broadcast %1 : vector<1x64xf32> to vector<8x64xf32>
    %91 = arith.mulf %89, %90 : vector<8x64xf32>
    %c6 = arith.constant 6 : index
    %92 = memref.load %arg3[%c6] : memref<27xf32, #tpu.memory_space<smem>>
    %93 = vector.broadcast %92 : f32 to vector<8x64xf32>
    %94 = arith.mulf %87, %93 : vector<8x64xf32>
    %95 = arith.addf %76, %94 : vector<8x64xf32>
    %c15 = arith.constant 15 : index
    %96 = memref.load %arg3[%c15] : memref<27xf32, #tpu.memory_space<smem>>
    %97 = vector.broadcast %96 : f32 to vector<8x64xf32>
    %98 = arith.mulf %87, %97 : vector<8x64xf32>
    %99 = arith.addf %80, %98 : vector<8x64xf32>
    %c24 = arith.constant 24 : index
    %100 = memref.load %arg3[%c24] : memref<27xf32, #tpu.memory_space<smem>>
    %101 = vector.broadcast %100 : f32 to vector<8x64xf32>
    %102 = arith.mulf %87, %101 : vector<8x64xf32>
    %103 = arith.addf %84, %102 : vector<8x64xf32>
    %c7 = arith.constant 7 : index
    %104 = memref.load %arg3[%c7] : memref<27xf32, #tpu.memory_space<smem>>
    %105 = vector.broadcast %104 : f32 to vector<8x64xf32>
    %106 = arith.mulf %88, %105 : vector<8x64xf32>
    %107 = arith.addf %95, %106 : vector<8x64xf32>
    %c16 = arith.constant 16 : index
    %108 = memref.load %arg3[%c16] : memref<27xf32, #tpu.memory_space<smem>>
    %109 = vector.broadcast %108 : f32 to vector<8x64xf32>
    %110 = arith.mulf %88, %109 : vector<8x64xf32>
    %111 = arith.addf %99, %110 : vector<8x64xf32>
    %c25 = arith.constant 25 : index
    %112 = memref.load %arg3[%c25] : memref<27xf32, #tpu.memory_space<smem>>
    %113 = vector.broadcast %112 : f32 to vector<8x64xf32>
    %114 = arith.mulf %88, %113 : vector<8x64xf32>
    %115 = arith.addf %103, %114 : vector<8x64xf32>
    %c8 = arith.constant 8 : index
    %116 = memref.load %arg3[%c8] : memref<27xf32, #tpu.memory_space<smem>>
    %117 = vector.broadcast %116 : f32 to vector<8x64xf32>
    %118 = arith.mulf %91, %117 : vector<8x64xf32>
    %119 = arith.addf %107, %118 : vector<8x64xf32>
    %c17 = arith.constant 17 : index
    %120 = memref.load %arg3[%c17] : memref<27xf32, #tpu.memory_space<smem>>
    %121 = vector.broadcast %120 : f32 to vector<8x64xf32>
    %122 = arith.mulf %91, %121 : vector<8x64xf32>
    %123 = arith.addf %111, %122 : vector<8x64xf32>
    %c26 = arith.constant 26 : index
    %124 = memref.load %arg3[%c26] : memref<27xf32, #tpu.memory_space<smem>>
    %125 = vector.broadcast %124 : f32 to vector<8x64xf32>
    %126 = arith.mulf %91, %125 : vector<8x64xf32>
    %127 = arith.addf %115, %126 : vector<8x64xf32>
    %c0_22 = arith.constant 0 : index
    %128 = memref.load %arg4[%c0_22] : memref<3xf32, #tpu.memory_space<smem>>
    %129 = vector.broadcast %128 : f32 to vector<8x64xf32>
    %130 = arith.addf %119, %129 : vector<8x64xf32>
    %c1_23 = arith.constant 1 : index
    %131 = memref.load %arg4[%c1_23] : memref<3xf32, #tpu.memory_space<smem>>
    %132 = vector.broadcast %131 : f32 to vector<8x64xf32>
    %133 = arith.addf %123, %132 : vector<8x64xf32>
    %c2_24 = arith.constant 2 : index
    %134 = memref.load %arg4[%c2_24] : memref<3xf32, #tpu.memory_space<smem>>
    %135 = vector.broadcast %134 : f32 to vector<8x64xf32>
    %136 = arith.addf %127, %135 : vector<8x64xf32>
    %137 = vector.shape_cast %130 : vector<8x64xf32> to vector<1x8x64xf32>
    %138 = vector.shape_cast %133 : vector<8x64xf32> to vector<1x8x64xf32>
    %139 = vector.shape_cast %136 : vector<8x64xf32> to vector<1x8x64xf32>
    %140 = tpu.concatenate %137, %138, %139 in 0 : vector<1x8x64xf32>, vector<1x8x64xf32>, vector<1x8x64xf32> -> vector<3x8x64xf32>
    %c0_25 = arith.constant 0 : index
    %c0_26 = arith.constant 0 : index
    %c0_27 = arith.constant 0 : index
    %141 = vector.load %arg5[%c0_25, %c0_26, %c0_27] : memref<3x8x64xf32, #tpu.memory_space<vmem>>, vector<3x8x64xf32>
    tpu.vector_store %arg5[%c0_25, %c0_26, %c0_27], %140 {strides = array<i32>} : memref<3x8x64xf32, #tpu.memory_space<vmem>>, vector<3x8x64xf32>,
    return
  }
}

module attributes {stable_mosaic.version = 11 : i64} {
  func.func @_conv3x3_kernel(%arg0: memref<10x194xf32, #tpu.memory_space<vmem>>, %arg1: memref<1x192xf32, #tpu.memory_space<vmem>>, %arg2: memref<1x192xf32, #tpu.memory_space<vmem>>, %arg3: memref<27xf32, #tpu.memory_space<smem>>, %arg4: memref<3xf32, #tpu.memory_space<smem>>, %arg5: memref<3x8x192xf32, #tpu.memory_space<vmem>>) attributes {dimension_semantics = [], scalar_prefetch = 0 : i64, scratch_operands = 0 : i64, tpu.core_type = #tpu.core_type<tc>} {
    %c0 = arith.constant 0 : index
    %c0_0 = arith.constant 0 : index
    %0 = vector.load %arg1[%c0, %c0_0] : memref<1x192xf32, #tpu.memory_space<vmem>>, vector<1x192xf32>
    %c0_1 = arith.constant 0 : index
    %c0_2 = arith.constant 0 : index
    %1 = vector.load %arg2[%c0_1, %c0_2] : memref<1x192xf32, #tpu.memory_space<vmem>>, vector<1x192xf32>
    %c0_3 = arith.constant 0 : index
    %c0_4 = arith.constant 0 : index
    %2 = vector.load %arg0[%c0_3, %c0_4] : memref<10x194xf32, #tpu.memory_space<vmem>>, vector<8x192xf32>
    %3 = vector.broadcast %0 : vector<1x192xf32> to vector<8x192xf32>
    %4 = arith.mulf %2, %3 : vector<8x192xf32>
    %c0_5 = arith.constant 0 : index
    %c1 = arith.constant 1 : index
    %5 = vector.load %arg0[%c0_5, %c1] : memref<10x194xf32, #tpu.memory_space<vmem>>, vector<8x192xf32>
    %c0_6 = arith.constant 0 : index
    %c2 = arith.constant 2 : index
    %6 = vector.load %arg0[%c0_6, %c2] : memref<10x194xf32, #tpu.memory_space<vmem>>, vector<8x192xf32>
    %7 = vector.broadcast %1 : vector<1x192xf32> to vector<8x192xf32>
    %8 = arith.mulf %6, %7 : vector<8x192xf32>
    %c0_7 = arith.constant 0 : index
    %9 = memref.load %arg3[%c0_7] : memref<27xf32, #tpu.memory_space<smem>>
    %10 = vector.broadcast %9 : f32 to vector<8x192xf32>
    %11 = arith.mulf %4, %10 : vector<8x192xf32>
    %c9 = arith.constant 9 : index
    %12 = memref.load %arg3[%c9] : memref<27xf32, #tpu.memory_space<smem>>
    %13 = vector.broadcast %12 : f32 to vector<8x192xf32>
    %14 = arith.mulf %4, %13 : vector<8x192xf32>
    %c18 = arith.constant 18 : index
    %15 = memref.load %arg3[%c18] : memref<27xf32, #tpu.memory_space<smem>>
    %16 = vector.broadcast %15 : f32 to vector<8x192xf32>
    %17 = arith.mulf %4, %16 : vector<8x192xf32>
    %c1_8 = arith.constant 1 : index
    %18 = memref.load %arg3[%c1_8] : memref<27xf32, #tpu.memory_space<smem>>
    %19 = vector.broadcast %18 : f32 to vector<8x192xf32>
    %20 = arith.mulf %5, %19 : vector<8x192xf32>
    %21 = arith.addf %11, %20 : vector<8x192xf32>
    %c10 = arith.constant 10 : index
    %22 = memref.load %arg3[%c10] : memref<27xf32, #tpu.memory_space<smem>>
    %23 = vector.broadcast %22 : f32 to vector<8x192xf32>
    %24 = arith.mulf %5, %23 : vector<8x192xf32>
    %25 = arith.addf %14, %24 : vector<8x192xf32>
    %c19 = arith.constant 19 : index
    %26 = memref.load %arg3[%c19] : memref<27xf32, #tpu.memory_space<smem>>
    %27 = vector.broadcast %26 : f32 to vector<8x192xf32>
    %28 = arith.mulf %5, %27 : vector<8x192xf32>
    %29 = arith.addf %17, %28 : vector<8x192xf32>
    %c2_9 = arith.constant 2 : index
    %30 = memref.load %arg3[%c2_9] : memref<27xf32, #tpu.memory_space<smem>>
    %31 = vector.broadcast %30 : f32 to vector<8x192xf32>
    %32 = arith.mulf %8, %31 : vector<8x192xf32>
    %33 = arith.addf %21, %32 : vector<8x192xf32>
    %c11 = arith.constant 11 : index
    %34 = memref.load %arg3[%c11] : memref<27xf32, #tpu.memory_space<smem>>
    %35 = vector.broadcast %34 : f32 to vector<8x192xf32>
    %36 = arith.mulf %8, %35 : vector<8x192xf32>
    %37 = arith.addf %25, %36 : vector<8x192xf32>
    %c20 = arith.constant 20 : index
    %38 = memref.load %arg3[%c20] : memref<27xf32, #tpu.memory_space<smem>>
    %39 = vector.broadcast %38 : f32 to vector<8x192xf32>
    %40 = arith.mulf %8, %39 : vector<8x192xf32>
    %41 = arith.addf %29, %40 : vector<8x192xf32>
    %c1_10 = arith.constant 1 : index
    %c0_11 = arith.constant 0 : index
    %42 = vector.load %arg0[%c1_10, %c0_11] : memref<10x194xf32, #tpu.memory_space<vmem>>, vector<8x192xf32>
    %43 = vector.broadcast %0 : vector<1x192xf32> to vector<8x192xf32>
    %44 = arith.mulf %42, %43 : vector<8x192xf32>
    %c1_12 = arith.constant 1 : index
    %c1_13 = arith.constant 1 : index
    %45 = vector.load %arg0[%c1_12, %c1_13] : memref<10x194xf32, #tpu.memory_space<vmem>>, vector<8x192xf32>
    %c1_14 = arith.constant 1 : index
    %c2_15 = arith.constant 2 : index
    %46 = vector.load %arg0[%c1_14, %c2_15] : memref<10x194xf32, #tpu.memory_space<vmem>>, vector<8x192xf32>
    %47 = vector.broadcast %1 : vector<1x192xf32> to vector<8x192xf32>
    %48 = arith.mulf %46, %47 : vector<8x192xf32>
    %c3 = arith.constant 3 : index
    %49 = memref.load %arg3[%c3] : memref<27xf32, #tpu.memory_space<smem>>
    %50 = vector.broadcast %49 : f32 to vector<8x192xf32>
    %51 = arith.mulf %44, %50 : vector<8x192xf32>
    %52 = arith.addf %33, %51 : vector<8x192xf32>
    %c12 = arith.constant 12 : index
    %53 = memref.load %arg3[%c12] : memref<27xf32, #tpu.memory_space<smem>>
    %54 = vector.broadcast %53 : f32 to vector<8x192xf32>
    %55 = arith.mulf %44, %54 : vector<8x192xf32>
    %56 = arith.addf %37, %55 : vector<8x192xf32>
    %c21 = arith.constant 21 : index
    %57 = memref.load %arg3[%c21] : memref<27xf32, #tpu.memory_space<smem>>
    %58 = vector.broadcast %57 : f32 to vector<8x192xf32>
    %59 = arith.mulf %44, %58 : vector<8x192xf32>
    %60 = arith.addf %41, %59 : vector<8x192xf32>
    %c4 = arith.constant 4 : index
    %61 = memref.load %arg3[%c4] : memref<27xf32, #tpu.memory_space<smem>>
    %62 = vector.broadcast %61 : f32 to vector<8x192xf32>
    %63 = arith.mulf %45, %62 : vector<8x192xf32>
    %64 = arith.addf %52, %63 : vector<8x192xf32>
    %c13 = arith.constant 13 : index
    %65 = memref.load %arg3[%c13] : memref<27xf32, #tpu.memory_space<smem>>
    %66 = vector.broadcast %65 : f32 to vector<8x192xf32>
    %67 = arith.mulf %45, %66 : vector<8x192xf32>
    %68 = arith.addf %56, %67 : vector<8x192xf32>
    %c22 = arith.constant 22 : index
    %69 = memref.load %arg3[%c22] : memref<27xf32, #tpu.memory_space<smem>>
    %70 = vector.broadcast %69 : f32 to vector<8x192xf32>
    %71 = arith.mulf %45, %70 : vector<8x192xf32>
    %72 = arith.addf %60, %71 : vector<8x192xf32>
    %c5 = arith.constant 5 : index
    %73 = memref.load %arg3[%c5] : memref<27xf32, #tpu.memory_space<smem>>
    %74 = vector.broadcast %73 : f32 to vector<8x192xf32>
    %75 = arith.mulf %48, %74 : vector<8x192xf32>
    %76 = arith.addf %64, %75 : vector<8x192xf32>
    %c14 = arith.constant 14 : index
    %77 = memref.load %arg3[%c14] : memref<27xf32, #tpu.memory_space<smem>>
    %78 = vector.broadcast %77 : f32 to vector<8x192xf32>
    %79 = arith.mulf %48, %78 : vector<8x192xf32>
    %80 = arith.addf %68, %79 : vector<8x192xf32>
    %c23 = arith.constant 23 : index
    %81 = memref.load %arg3[%c23] : memref<27xf32, #tpu.memory_space<smem>>
    %82 = vector.broadcast %81 : f32 to vector<8x192xf32>
    %83 = arith.mulf %48, %82 : vector<8x192xf32>
    %84 = arith.addf %72, %83 : vector<8x192xf32>
    %c2_16 = arith.constant 2 : index
    %c0_17 = arith.constant 0 : index
    %85 = vector.load %arg0[%c2_16, %c0_17] : memref<10x194xf32, #tpu.memory_space<vmem>>, vector<8x192xf32>
    %86 = vector.broadcast %0 : vector<1x192xf32> to vector<8x192xf32>
    %87 = arith.mulf %85, %86 : vector<8x192xf32>
    %c2_18 = arith.constant 2 : index
    %c1_19 = arith.constant 1 : index
    %88 = vector.load %arg0[%c2_18, %c1_19] : memref<10x194xf32, #tpu.memory_space<vmem>>, vector<8x192xf32>
    %c2_20 = arith.constant 2 : index
    %c2_21 = arith.constant 2 : index
    %89 = vector.load %arg0[%c2_20, %c2_21] : memref<10x194xf32, #tpu.memory_space<vmem>>, vector<8x192xf32>
    %90 = vector.broadcast %1 : vector<1x192xf32> to vector<8x192xf32>
    %91 = arith.mulf %89, %90 : vector<8x192xf32>
    %c6 = arith.constant 6 : index
    %92 = memref.load %arg3[%c6] : memref<27xf32, #tpu.memory_space<smem>>
    %93 = vector.broadcast %92 : f32 to vector<8x192xf32>
    %94 = arith.mulf %87, %93 : vector<8x192xf32>
    %95 = arith.addf %76, %94 : vector<8x192xf32>
    %c15 = arith.constant 15 : index
    %96 = memref.load %arg3[%c15] : memref<27xf32, #tpu.memory_space<smem>>
    %97 = vector.broadcast %96 : f32 to vector<8x192xf32>
    %98 = arith.mulf %87, %97 : vector<8x192xf32>
    %99 = arith.addf %80, %98 : vector<8x192xf32>
    %c24 = arith.constant 24 : index
    %100 = memref.load %arg3[%c24] : memref<27xf32, #tpu.memory_space<smem>>
    %101 = vector.broadcast %100 : f32 to vector<8x192xf32>
    %102 = arith.mulf %87, %101 : vector<8x192xf32>
    %103 = arith.addf %84, %102 : vector<8x192xf32>
    %c7 = arith.constant 7 : index
    %104 = memref.load %arg3[%c7] : memref<27xf32, #tpu.memory_space<smem>>
    %105 = vector.broadcast %104 : f32 to vector<8x192xf32>
    %106 = arith.mulf %88, %105 : vector<8x192xf32>
    %107 = arith.addf %95, %106 : vector<8x192xf32>
    %c16 = arith.constant 16 : index
    %108 = memref.load %arg3[%c16] : memref<27xf32, #tpu.memory_space<smem>>
    %109 = vector.broadcast %108 : f32 to vector<8x192xf32>
    %110 = arith.mulf %88, %109 : vector<8x192xf32>
    %111 = arith.addf %99, %110 : vector<8x192xf32>
    %c25 = arith.constant 25 : index
    %112 = memref.load %arg3[%c25] : memref<27xf32, #tpu.memory_space<smem>>
    %113 = vector.broadcast %112 : f32 to vector<8x192xf32>
    %114 = arith.mulf %88, %113 : vector<8x192xf32>
    %115 = arith.addf %103, %114 : vector<8x192xf32>
    %c8 = arith.constant 8 : index
    %116 = memref.load %arg3[%c8] : memref<27xf32, #tpu.memory_space<smem>>
    %117 = vector.broadcast %116 : f32 to vector<8x192xf32>
    %118 = arith.mulf %91, %117 : vector<8x192xf32>
    %119 = arith.addf %107, %118 : vector<8x192xf32>
    %c17 = arith.constant 17 : index
    %120 = memref.load %arg3[%c17] : memref<27xf32, #tpu.memory_space<smem>>
    %121 = vector.broadcast %120 : f32 to vector<8x192xf32>
    %122 = arith.mulf %91, %121 : vector<8x192xf32>
    %123 = arith.addf %111, %122 : vector<8x192xf32>
    %c26 = arith.constant 26 : index
    %124 = memref.load %arg3[%c26] : memref<27xf32, #tpu.memory_space<smem>>
    %125 = vector.broadcast %124 : f32 to vector<8x192xf32>
    %126 = arith.mulf %91, %125 : vector<8x192xf32>
    %127 = arith.addf %115, %126 : vector<8x192xf32>
    %c0_22 = arith.constant 0 : index
    %128 = memref.load %arg4[%c0_22] : memref<3xf32, #tpu.memory_space<smem>>
    %129 = vector.broadcast %128 : f32 to vector<8x192xf32>
    %130 = arith.addf %119, %129 : vector<8x192xf32>
    %c1_23 = arith.constant 1 : index
    %131 = memref.load %arg4[%c1_23] : memref<3xf32, #tpu.memory_space<smem>>
    %132 = vector.broadcast %131 : f32 to vector<8x192xf32>
    %133 = arith.addf %123, %132 : vector<8x192xf32>
    %c2_24 = arith.constant 2 : index
    %134 = memref.load %arg4[%c2_24] : memref<3xf32, #tpu.memory_space<smem>>
    %135 = vector.broadcast %134 : f32 to vector<8x192xf32>
    %136 = arith.addf %127, %135 : vector<8x192xf32>
    %137 = vector.shape_cast %130 : vector<8x192xf32> to vector<1x8x192xf32>
    %138 = vector.shape_cast %133 : vector<8x192xf32> to vector<1x8x192xf32>
    %139 = vector.shape_cast %136 : vector<8x192xf32> to vector<1x8x192xf32>
    %140 = tpu.concatenate %137, %138, %139 in 0 : vector<1x8x192xf32>, vector<1x8x192xf32>, vector<1x8x192xf32> -> vector<3x8x192xf32>
    %c0_25 = arith.constant 0 : index
    %c0_26 = arith.constant 0 : index
    %c0_27 = arith.constant 0 : index
    %141 = vector.load %arg5[%c0_25, %c0_26, %c0_27] : memref<3x8x192xf32, #tpu.memory_space<vmem>>, vector<3x8x192xf32>
    tpu.vector_store %arg5[%c0_25, %c0_26, %c0_27], %140 {strides = array<i32>} : memref<3x8x192xf32, #tpu.memory_space<vmem>>, vector<3x8x192xf32>,
    return
  }
}

module attributes {stable_mosaic.version = 11 : i64} {
  func.func @_conv3x3_kernel(%arg0: memref<10x386xf32, #tpu.memory_space<vmem>>, %arg1: memref<1x384xf32, #tpu.memory_space<vmem>>, %arg2: memref<1x384xf32, #tpu.memory_space<vmem>>, %arg3: memref<27xf32, #tpu.memory_space<smem>>, %arg4: memref<3xf32, #tpu.memory_space<smem>>, %arg5: memref<3x8x384xf32, #tpu.memory_space<vmem>>) attributes {dimension_semantics = [], scalar_prefetch = 0 : i64, scratch_operands = 0 : i64, tpu.core_type = #tpu.core_type<tc>} {
    %c0 = arith.constant 0 : index
    %c0_0 = arith.constant 0 : index
    %0 = vector.load %arg1[%c0, %c0_0] : memref<1x384xf32, #tpu.memory_space<vmem>>, vector<1x384xf32>
    %c0_1 = arith.constant 0 : index
    %c0_2 = arith.constant 0 : index
    %1 = vector.load %arg2[%c0_1, %c0_2] : memref<1x384xf32, #tpu.memory_space<vmem>>, vector<1x384xf32>
    %c0_3 = arith.constant 0 : index
    %c0_4 = arith.constant 0 : index
    %2 = vector.load %arg0[%c0_3, %c0_4] : memref<10x386xf32, #tpu.memory_space<vmem>>, vector<8x384xf32>
    %3 = vector.broadcast %0 : vector<1x384xf32> to vector<8x384xf32>
    %4 = arith.mulf %2, %3 : vector<8x384xf32>
    %c0_5 = arith.constant 0 : index
    %c1 = arith.constant 1 : index
    %5 = vector.load %arg0[%c0_5, %c1] : memref<10x386xf32, #tpu.memory_space<vmem>>, vector<8x384xf32>
    %c0_6 = arith.constant 0 : index
    %c2 = arith.constant 2 : index
    %6 = vector.load %arg0[%c0_6, %c2] : memref<10x386xf32, #tpu.memory_space<vmem>>, vector<8x384xf32>
    %7 = vector.broadcast %1 : vector<1x384xf32> to vector<8x384xf32>
    %8 = arith.mulf %6, %7 : vector<8x384xf32>
    %c0_7 = arith.constant 0 : index
    %9 = memref.load %arg3[%c0_7] : memref<27xf32, #tpu.memory_space<smem>>
    %10 = vector.broadcast %9 : f32 to vector<8x384xf32>
    %11 = arith.mulf %4, %10 : vector<8x384xf32>
    %c9 = arith.constant 9 : index
    %12 = memref.load %arg3[%c9] : memref<27xf32, #tpu.memory_space<smem>>
    %13 = vector.broadcast %12 : f32 to vector<8x384xf32>
    %14 = arith.mulf %4, %13 : vector<8x384xf32>
    %c18 = arith.constant 18 : index
    %15 = memref.load %arg3[%c18] : memref<27xf32, #tpu.memory_space<smem>>
    %16 = vector.broadcast %15 : f32 to vector<8x384xf32>
    %17 = arith.mulf %4, %16 : vector<8x384xf32>
    %c1_8 = arith.constant 1 : index
    %18 = memref.load %arg3[%c1_8] : memref<27xf32, #tpu.memory_space<smem>>
    %19 = vector.broadcast %18 : f32 to vector<8x384xf32>
    %20 = arith.mulf %5, %19 : vector<8x384xf32>
    %21 = arith.addf %11, %20 : vector<8x384xf32>
    %c10 = arith.constant 10 : index
    %22 = memref.load %arg3[%c10] : memref<27xf32, #tpu.memory_space<smem>>
    %23 = vector.broadcast %22 : f32 to vector<8x384xf32>
    %24 = arith.mulf %5, %23 : vector<8x384xf32>
    %25 = arith.addf %14, %24 : vector<8x384xf32>
    %c19 = arith.constant 19 : index
    %26 = memref.load %arg3[%c19] : memref<27xf32, #tpu.memory_space<smem>>
    %27 = vector.broadcast %26 : f32 to vector<8x384xf32>
    %28 = arith.mulf %5, %27 : vector<8x384xf32>
    %29 = arith.addf %17, %28 : vector<8x384xf32>
    %c2_9 = arith.constant 2 : index
    %30 = memref.load %arg3[%c2_9] : memref<27xf32, #tpu.memory_space<smem>>
    %31 = vector.broadcast %30 : f32 to vector<8x384xf32>
    %32 = arith.mulf %8, %31 : vector<8x384xf32>
    %33 = arith.addf %21, %32 : vector<8x384xf32>
    %c11 = arith.constant 11 : index
    %34 = memref.load %arg3[%c11] : memref<27xf32, #tpu.memory_space<smem>>
    %35 = vector.broadcast %34 : f32 to vector<8x384xf32>
    %36 = arith.mulf %8, %35 : vector<8x384xf32>
    %37 = arith.addf %25, %36 : vector<8x384xf32>
    %c20 = arith.constant 20 : index
    %38 = memref.load %arg3[%c20] : memref<27xf32, #tpu.memory_space<smem>>
    %39 = vector.broadcast %38 : f32 to vector<8x384xf32>
    %40 = arith.mulf %8, %39 : vector<8x384xf32>
    %41 = arith.addf %29, %40 : vector<8x384xf32>
    %c1_10 = arith.constant 1 : index
    %c0_11 = arith.constant 0 : index
    %42 = vector.load %arg0[%c1_10, %c0_11] : memref<10x386xf32, #tpu.memory_space<vmem>>, vector<8x384xf32>
    %43 = vector.broadcast %0 : vector<1x384xf32> to vector<8x384xf32>
    %44 = arith.mulf %42, %43 : vector<8x384xf32>
    %c1_12 = arith.constant 1 : index
    %c1_13 = arith.constant 1 : index
    %45 = vector.load %arg0[%c1_12, %c1_13] : memref<10x386xf32, #tpu.memory_space<vmem>>, vector<8x384xf32>
    %c1_14 = arith.constant 1 : index
    %c2_15 = arith.constant 2 : index
    %46 = vector.load %arg0[%c1_14, %c2_15] : memref<10x386xf32, #tpu.memory_space<vmem>>, vector<8x384xf32>
    %47 = vector.broadcast %1 : vector<1x384xf32> to vector<8x384xf32>
    %48 = arith.mulf %46, %47 : vector<8x384xf32>
    %c3 = arith.constant 3 : index
    %49 = memref.load %arg3[%c3] : memref<27xf32, #tpu.memory_space<smem>>
    %50 = vector.broadcast %49 : f32 to vector<8x384xf32>
    %51 = arith.mulf %44, %50 : vector<8x384xf32>
    %52 = arith.addf %33, %51 : vector<8x384xf32>
    %c12 = arith.constant 12 : index
    %53 = memref.load %arg3[%c12] : memref<27xf32, #tpu.memory_space<smem>>
    %54 = vector.broadcast %53 : f32 to vector<8x384xf32>
    %55 = arith.mulf %44, %54 : vector<8x384xf32>
    %56 = arith.addf %37, %55 : vector<8x384xf32>
    %c21 = arith.constant 21 : index
    %57 = memref.load %arg3[%c21] : memref<27xf32, #tpu.memory_space<smem>>
    %58 = vector.broadcast %57 : f32 to vector<8x384xf32>
    %59 = arith.mulf %44, %58 : vector<8x384xf32>
    %60 = arith.addf %41, %59 : vector<8x384xf32>
    %c4 = arith.constant 4 : index
    %61 = memref.load %arg3[%c4] : memref<27xf32, #tpu.memory_space<smem>>
    %62 = vector.broadcast %61 : f32 to vector<8x384xf32>
    %63 = arith.mulf %45, %62 : vector<8x384xf32>
    %64 = arith.addf %52, %63 : vector<8x384xf32>
    %c13 = arith.constant 13 : index
    %65 = memref.load %arg3[%c13] : memref<27xf32, #tpu.memory_space<smem>>
    %66 = vector.broadcast %65 : f32 to vector<8x384xf32>
    %67 = arith.mulf %45, %66 : vector<8x384xf32>
    %68 = arith.addf %56, %67 : vector<8x384xf32>
    %c22 = arith.constant 22 : index
    %69 = memref.load %arg3[%c22] : memref<27xf32, #tpu.memory_space<smem>>
    %70 = vector.broadcast %69 : f32 to vector<8x384xf32>
    %71 = arith.mulf %45, %70 : vector<8x384xf32>
    %72 = arith.addf %60, %71 : vector<8x384xf32>
    %c5 = arith.constant 5 : index
    %73 = memref.load %arg3[%c5] : memref<27xf32, #tpu.memory_space<smem>>
    %74 = vector.broadcast %73 : f32 to vector<8x384xf32>
    %75 = arith.mulf %48, %74 : vector<8x384xf32>
    %76 = arith.addf %64, %75 : vector<8x384xf32>
    %c14 = arith.constant 14 : index
    %77 = memref.load %arg3[%c14] : memref<27xf32, #tpu.memory_space<smem>>
    %78 = vector.broadcast %77 : f32 to vector<8x384xf32>
    %79 = arith.mulf %48, %78 : vector<8x384xf32>
    %80 = arith.addf %68, %79 : vector<8x384xf32>
    %c23 = arith.constant 23 : index
    %81 = memref.load %arg3[%c23] : memref<27xf32, #tpu.memory_space<smem>>
    %82 = vector.broadcast %81 : f32 to vector<8x384xf32>
    %83 = arith.mulf %48, %82 : vector<8x384xf32>
    %84 = arith.addf %72, %83 : vector<8x384xf32>
    %c2_16 = arith.constant 2 : index
    %c0_17 = arith.constant 0 : index
    %85 = vector.load %arg0[%c2_16, %c0_17] : memref<10x386xf32, #tpu.memory_space<vmem>>, vector<8x384xf32>
    %86 = vector.broadcast %0 : vector<1x384xf32> to vector<8x384xf32>
    %87 = arith.mulf %85, %86 : vector<8x384xf32>
    %c2_18 = arith.constant 2 : index
    %c1_19 = arith.constant 1 : index
    %88 = vector.load %arg0[%c2_18, %c1_19] : memref<10x386xf32, #tpu.memory_space<vmem>>, vector<8x384xf32>
    %c2_20 = arith.constant 2 : index
    %c2_21 = arith.constant 2 : index
    %89 = vector.load %arg0[%c2_20, %c2_21] : memref<10x386xf32, #tpu.memory_space<vmem>>, vector<8x384xf32>
    %90 = vector.broadcast %1 : vector<1x384xf32> to vector<8x384xf32>
    %91 = arith.mulf %89, %90 : vector<8x384xf32>
    %c6 = arith.constant 6 : index
    %92 = memref.load %arg3[%c6] : memref<27xf32, #tpu.memory_space<smem>>
    %93 = vector.broadcast %92 : f32 to vector<8x384xf32>
    %94 = arith.mulf %87, %93 : vector<8x384xf32>
    %95 = arith.addf %76, %94 : vector<8x384xf32>
    %c15 = arith.constant 15 : index
    %96 = memref.load %arg3[%c15] : memref<27xf32, #tpu.memory_space<smem>>
    %97 = vector.broadcast %96 : f32 to vector<8x384xf32>
    %98 = arith.mulf %87, %97 : vector<8x384xf32>
    %99 = arith.addf %80, %98 : vector<8x384xf32>
    %c24 = arith.constant 24 : index
    %100 = memref.load %arg3[%c24] : memref<27xf32, #tpu.memory_space<smem>>
    %101 = vector.broadcast %100 : f32 to vector<8x384xf32>
    %102 = arith.mulf %87, %101 : vector<8x384xf32>
    %103 = arith.addf %84, %102 : vector<8x384xf32>
    %c7 = arith.constant 7 : index
    %104 = memref.load %arg3[%c7] : memref<27xf32, #tpu.memory_space<smem>>
    %105 = vector.broadcast %104 : f32 to vector<8x384xf32>
    %106 = arith.mulf %88, %105 : vector<8x384xf32>
    %107 = arith.addf %95, %106 : vector<8x384xf32>
    %c16 = arith.constant 16 : index
    %108 = memref.load %arg3[%c16] : memref<27xf32, #tpu.memory_space<smem>>
    %109 = vector.broadcast %108 : f32 to vector<8x384xf32>
    %110 = arith.mulf %88, %109 : vector<8x384xf32>
    %111 = arith.addf %99, %110 : vector<8x384xf32>
    %c25 = arith.constant 25 : index
    %112 = memref.load %arg3[%c25] : memref<27xf32, #tpu.memory_space<smem>>
    %113 = vector.broadcast %112 : f32 to vector<8x384xf32>
    %114 = arith.mulf %88, %113 : vector<8x384xf32>
    %115 = arith.addf %103, %114 : vector<8x384xf32>
    %c8 = arith.constant 8 : index
    %116 = memref.load %arg3[%c8] : memref<27xf32, #tpu.memory_space<smem>>
    %117 = vector.broadcast %116 : f32 to vector<8x384xf32>
    %118 = arith.mulf %91, %117 : vector<8x384xf32>
    %119 = arith.addf %107, %118 : vector<8x384xf32>
    %c17 = arith.constant 17 : index
    %120 = memref.load %arg3[%c17] : memref<27xf32, #tpu.memory_space<smem>>
    %121 = vector.broadcast %120 : f32 to vector<8x384xf32>
    %122 = arith.mulf %91, %121 : vector<8x384xf32>
    %123 = arith.addf %111, %122 : vector<8x384xf32>
    %c26 = arith.constant 26 : index
    %124 = memref.load %arg3[%c26] : memref<27xf32, #tpu.memory_space<smem>>
    %125 = vector.broadcast %124 : f32 to vector<8x384xf32>
    %126 = arith.mulf %91, %125 : vector<8x384xf32>
    %127 = arith.addf %115, %126 : vector<8x384xf32>
    %c0_22 = arith.constant 0 : index
    %128 = memref.load %arg4[%c0_22] : memref<3xf32, #tpu.memory_space<smem>>
    %129 = vector.broadcast %128 : f32 to vector<8x384xf32>
    %130 = arith.addf %119, %129 : vector<8x384xf32>
    %c1_23 = arith.constant 1 : index
    %131 = memref.load %arg4[%c1_23] : memref<3xf32, #tpu.memory_space<smem>>
    %132 = vector.broadcast %131 : f32 to vector<8x384xf32>
    %133 = arith.addf %123, %132 : vector<8x384xf32>
    %c2_24 = arith.constant 2 : index
    %134 = memref.load %arg4[%c2_24] : memref<3xf32, #tpu.memory_space<smem>>
    %135 = vector.broadcast %134 : f32 to vector<8x384xf32>
    %136 = arith.addf %127, %135 : vector<8x384xf32>
    %137 = vector.shape_cast %130 : vector<8x384xf32> to vector<1x8x384xf32>
    %138 = vector.shape_cast %133 : vector<8x384xf32> to vector<1x8x384xf32>
    %139 = vector.shape_cast %136 : vector<8x384xf32> to vector<1x8x384xf32>
    %140 = tpu.concatenate %137, %138, %139 in 0 : vector<1x8x384xf32>, vector<1x8x384xf32>, vector<1x8x384xf32> -> vector<3x8x384xf32>
    %c0_25 = arith.constant 0 : index
    %c0_26 = arith.constant 0 : index
    %c0_27 = arith.constant 0 : index
    %141 = vector.load %arg5[%c0_25, %c0_26, %c0_27] : memref<3x8x384xf32, #tpu.memory_space<vmem>>, vector<3x8x384xf32>
    tpu.vector_store %arg5[%c0_25, %c0_26, %c0_27], %140 {strides = array<i32>} : memref<3x8x384xf32, #tpu.memory_space<vmem>>, vector<3x8x384xf32>,
    return
  }
}

</mosaic_0001>

<bundles_post_ra>
// kernel: parallel_model_forward.5
= control target key start
LH: loop header
LB: loop body
LE: loop exit
PB: predicated region body
PF: predicated region fallthrough
CT: control target
= control target key end

     0   :  { %15 = vsyncpa [#allocation3], 0  ;;  %v981_v1 = vmov 0.0   ;;  %vm982_vm0 = vmmov 0   ;;  %s1239_s0 = inlined_call_operand.vmem [shape: bf16[16,128], index: 0, kind: input, shape index: {}]   ;;  %s1240_s1 = inlined_call_operand.vmem [shape: bf16[128,128], index: 1, kind: input, shape index: {}]   ;;  %s1241_s2 = inlined_call_operand.vmem [shape: f32[1,128], index: 2, kind: input, shape index: {}]   ;;  %s1242_s3 = inlined_call_operand.vmem [shape: f32[128,128], index: 3, kind: input, shape index: {}]   ;;  %s1243_s4 = inlined_call_operand.vmem [shape: bf16[128,128], index: 4, kind: input, shape index: {}]   ;;  %s1244_s5 = inlined_call_operand.vmem [shape: bf16[128,128], index: 5, kind: input, shape index: {}]   ;;  %s1245_s6 = inlined_call_operand.vmem [shape: f32[1,128], index: 6, kind: input, shape index: {}]   ;;  %s1246_s7 = inlined_call_operand.vmem [shape: f32[16,128], index: 7, kind: output, shape index: {0}]   ;;  %s1247_s8 = inlined_call_operand.hbm [shape: f32[16,128], index: 8, kind: output, shape index: {1}]   ;;  %s1248_s9 = inlined_call_operand.hbm [shape: f32[16,128], index: 9, kind: output, shape index: {2}]  }
   0x1   :  { %v896_v0 = vld [vmem:[%s1240_s1] sm:$0xff]   ;;  %696 = vmatprep.subr.bf16.mxu0 %v981_v1  ;;  %v897_v2 = vld [vmem:[%s1240_s1 + $0x8] sm:$0xff]   ;;  %712 = vmatprep.mubr.msk.bf16.mxu0 %vm982_vm0, %v981_v1  ;;  %v898_v3 = vld [vmem:[%s1240_s1 + $0x10] sm:$0xff]  }
   0x2   :  { %697 = vmatpush3.bf16.msra.mxu0 %v896_v0  ;;  %v154_v4 = vld [vmem:[%s1242_s3] sm:$0xff]  ;;  %v155_v5 = vld [vmem:[%s1242_s3 + $0x8] sm:$0xff]  ;;  %v156_v6 = vld [vmem:[%s1242_s3 + $0x10] sm:$0xff] }
   0x3   :  { %698 = vmatprep.subr.bf16.mxu0 %v981_v1  ;;  %v899_v7 = vld [vmem:[%s1240_s1 + $0x18] sm:$0xff]   ;;  %v826_v8 = vpack.c.bf16 %v155_v5, %v154_v4  ;;  %v900_v11 = vld [vmem:[%s1240_s1 + $0x20] sm:$0xff]   ;;  %v159_v13 = vld [vmem:[%s1242_s3 + $0x28] sm:$0xff] }
   0x4   :  { %v157_v9 = vld [vmem:[%s1242_s3 + $0x18] sm:$0xff]  ;;  %v158_v12 = vld [vmem:[%s1242_s3 + $0x20] sm:$0xff]  ;;  %v901_v14 = vld [vmem:[%s1240_s1 + $0x28] sm:$0xff]  }
   0x5   :  { %v830_v10 = vpack.c.bf16 %v157_v9, %v156_v6  ;;  %827 = vmatprep.subr.bf16.mxu1 %v826_v8  ;;  %v834_v15 = vpack.c.bf16 %v159_v13, %v158_v12  ;;  %v902_v16 = vld [vmem:[%s1240_s1 + $0x30] sm:$0xff]   ;;  %v161_v18 = vld [vmem:[%s1242_s3 + $0x38] sm:$0xff] }
   0x6   :  { %699 = vmatpush3.bf16.msra.mxu0 %v897_v2  ;;  %829 = vmatpush3.bf16.xpose.msra.mxu1 %v826_v8  ;;  %v160_v17 = vld [vmem:[%s1242_s3 + $0x30] sm:$0xff] }
   0x7   :  { %700 = vmatprep.subr.bf16.mxu0 %v981_v1  ;;  %831 = vmatprep.subr.bf16.mxu1 %v830_v10 }
   0xa   :  { %701 = vmatpush3.bf16.msra.mxu0 %v898_v3 }
   0xb   :  { %702 = vmatprep.subr.bf16.mxu0 %v981_v1 }
   0xe   :  { %703 = vmatpush3.bf16.msra.mxu0 %v899_v7  ;;  %833 = vmatpush3.bf16.xpose.msra.mxu1 %v830_v10 }
   0xf   :  { %704 = vmatprep.subr.bf16.mxu0 %v981_v1  ;;  %835 = vmatprep.subr.bf16.mxu1 %v834_v15 }
  0x12   :  { %705 = vmatpush3.bf16.msra.mxu0 %v900_v11 }
  0x13   :  { %706 = vmatprep.subr.bf16.mxu0 %v981_v1 }
  0x16   :  { %707 = vmatpush3.bf16.msra.mxu0 %v901_v14 }
  0x17   :  { %708 = vmatprep.subr.bf16.mxu0 %v981_v1 }
  0x18   :  { %16 = vsyncpa [#allocation5], 0  ;;  %v903_v19 = vld [vmem:[%s1240_s1 + $0x38] sm:$0xff]   ;;  %v838_v20 = vpack.c.bf16 %v161_v18, %v160_v17  ;;  %v904_v21 = vld [vmem:[%s1239_s0] sm:$0xff]   ;;  %837 = vmatpush3.bf16.xpose.msra.mxu1 %v834_v15  ;;  %v245_v52 = vlaneseq  ;;  %s983_s21 = smov [#allocation2]   ;;  %s984_s23 = smov [#allocation4]  }
  0x19   :  { %v162_v22 = vld [vmem:[%s1242_s3 + $0x40] sm:$0xff]  ;;  %v163_v23 = vld [vmem:[%s1242_s3 + $0x48] sm:$0xff]  ;;  %v164_v25 = vld [vmem:[%s1242_s3 + $0x50] sm:$0xff]  ;;  %s577_s22 = sshll.u32 %s983_s21, 4  ;;  %s589_s24 = sshll.u32 %s984_s23, 4  ;;  %s578_s22 = int_to_ptr.vmem [resolvable:$true] %s577_s22  ;;  %s1197_s24 = int_to_ptr.vmem [resolvable:$true] %s589_s24 }
  0x1a   :  { %709 = vmatpush3.bf16.msra.mxu0 %v902_v16  ;;  %839 = vmatprep.subr.bf16.mxu1 %v838_v20  ;;  %v842_v24 = vpack.c.bf16 %v163_v23, %v162_v22  ;;  %v165_v26 = vld [vmem:[%s1242_s3 + $0x58] sm:$0xff]  ;;  %v166_v28 = vld [vmem:[%s1242_s3 + $0x60] sm:$0xff]  ;;  %v167_v29 = vld [vmem:[%s1242_s3 + $0x68] sm:$0xff]  ;;  %v246_v53 = vand.u32 127, %v245_v52  ;;  %s933_s25 = scalar_lea.vmem %s578_s22, 256  ;;  %p938_p1 = scmp.lt.s32.totalorder %s578_s22, %s578_s22 }
  0x1b   :  { %710 = vmatprep.subr.bf16.mxu0 %v981_v1  ;;  %v846_v27 = vpack.c.bf16 %v165_v26, %v164_v25  ;;  %v850_v30 = vpack.c.bf16 %v167_v29, %v166_v28  ;;  %v168_v31 = vld [vmem:[%s1242_s3 + $0x70] sm:$0xff]  ;;  %v169_v32 = vld [vmem:[%s1242_s3 + $0x78] sm:$0xff]  ;;  %v606_v34 = vld [vmem:[%s1241_s2] ss:$0 sm:$0xff]  ;;  %p934_p0 = scmp.ne.s32.totalorder %s578_s22, %s933_s25  ;;  %p939_p2 = scmp.lt.s32.totalorder %s933_s25, %s933_s25 }
  0x1c   :  { %v854_v33 = vpack.c.bf16 %v169_v32, %v168_v31  ;;  %v905_v42 = vld [vmem:[%s1243_s4] sm:$0xff]   ;;  %v906_v45 = vld [vmem:[%s1243_s4 + $0x8] sm:$0xff]   ;;  %v907_v46 = vld [vmem:[%s1243_s4 + $0x10] sm:$0xff]   ;;  %vm247_vm1 = vcmp.lt.s32.totalorder %v246_v53, 10 }
  0x1d   :  { %v908_v47 = vld [vmem:[%s1243_s4 + $0x18] sm:$0xff]   ;;  %v909_v48 = vld [vmem:[%s1243_s4 + $0x20] sm:$0xff]   ;;  %v910_v49 = vld [vmem:[%s1243_s4 + $0x28] sm:$0xff]   ;;  %p940_p3 = por %p939_p2, %p938_p1 }
  0x1e   :  { %711 = vmatpush3.bf16.msra.mxu0 %v903_v19  ;;  %v911_v50 = vld [vmem:[%s1243_s4 + $0x30] sm:$0xff]   ;;  %v912_v51 = vld [vmem:[%s1243_s4 + $0x38] sm:$0xff]   ;;  %v913_v12 = vld [vmem:[%s1244_s5] sm:$0xff]  }
  0x1f   :  { %859 = vmatprep.subr.bf16.mxu0 %v826_v8  ;;  %v914_v14 = vld [vmem:[%s1244_s5 + $0x8] sm:$0xff]   ;;  %v916_v16 = vld [vmem:[%s1244_s5 + $0x18] sm:$0xff]   ;;  %v917_v17 = vld [vmem:[%s1244_s5 + $0x20] sm:$0xff]   ;;  %p941_p4 = pnand %p940_p3, %p934_p0 }
  0x20   :  { %841 = vmatpush3.bf16.xpose.msra.mxu1 %v838_v20  ;;  %v918_v18 = vld [vmem:[%s1244_s5 + $0x28] sm:$0xff]   ;;  %v919_v19 = vld [vmem:[%s1244_s5 + $0x30] sm:$0xff]  }
  0x21   :  { %713 = vmatmul.mubr.bf16.vlgmr.msra.gmra.mrb[0].mxu0 %v904_v21  ;;  %843 = vmatprep.subr.bf16.mxu1 %v842_v24 }
  0x22   :  { %861 = vmatpush3.bf16.msra.mxu0 %v826_v8 }
  0x23   :  { %863 = vmatprep.subr.bf16.mxu0 %v830_v10 }
  0x26   :  { %865 = vmatpush3.bf16.msra.mxu0 %v830_v10 }
  0x27   :  { %867 = vmatprep.subr.bf16.mxu0 %v834_v15 }
  0x28   :  { %845 = vmatpush3.bf16.xpose.msra.mxu1 %v842_v24 }
  0x29   :  { %847 = vmatprep.subr.bf16.mxu1 %v846_v27 }
  0x2a   :  { %869 = vmatpush3.bf16.msra.mxu0 %v834_v15  ;;  %v915_v15 = vld [vmem:[%s1244_s5 + $0x10] sm:$0xff]  }
  0x2b   :  { %871 = vmatprep.subr.bf16.mxu0 %v838_v20 }
  0x2e   :  { %873 = vmatpush3.bf16.msra.mxu0 %v838_v20  ;;  %v920_v20 = vld [vmem:[%s1244_s5 + $0x38] sm:$0xff]  }
  0x2f   :  { %875 = vmatprep.subr.bf16.mxu0 %v842_v24 }
  0x30   :  { %849 = vmatpush3.bf16.xpose.msra.mxu1 %v846_v27 }
  0x31   :  { %851 = vmatprep.subr.bf16.mxu1 %v850_v30 }
  0x32   :  { %877 = vmatpush3.bf16.msra.mxu0 %v842_v24 }
  0x33   :  { %879 = vmatprep.subr.bf16.mxu0 %v846_v27 }
  0x36   :  { %881 = vmatpush3.bf16.msra.mxu0 %v846_v27 }
  0x37   :  { %883 = vmatprep.subr.bf16.mxu0 %v850_v30 }
  0x38   :  { %853 = vmatpush3.bf16.xpose.msra.mxu1 %v850_v30 }
  0x39   :  { %855 = vmatprep.subr.bf16.mxu1 %v854_v33 }
  0x3a   :  { %885 = vmatpush3.bf16.msra.mxu0 %v850_v30 }
  0x3b   :  { %887 = vmatprep.subr.bf16.mxu0 %v854_v33 }
  0x3e   :  { %889 = vmatpush3.bf16.msra.mxu0 %v854_v33 }
  0x3f   :  { %786 = vmatprep.subr.bf16.mxu0 %v981_v1 }
  0x40   :  { %857 = vmatpush3.bf16.xpose.msra.mxu1 %v854_v33 }
  0x41   :  { %806 = vmatprep.subr.bf16.mxu1 %v981_v1 }
  0xf4   :  { %v145_v35 = vpop.f32.mrb[0].mxu0 }
  0xf5   :  { %v146_v36 = vadd.f32 %v606_v34, %v145_v35  ;;  %v714_v37 = vpop.f32.mrb[1].mxu0 }
  0xf6   :  { %v148_v38 = vpop.f32.mrb[2].mxu0 }
  0xf7   :  { %921 = vtanh.f32 %v146_v36  ;;  %v149_v39 = vadd.f32 %v606_v34, %v148_v38  ;;  %v715_v40 = vpop.f32.mrb[3].mxu0 }
  0xf9   :  { %923 = vtanh.f32 %v149_v39 }
 0x101   :  { %v922_v41 = vpop.eup %921 }
 0x102   :  { %566 = vst [vmem:[#allocation2] sm:$0xff] %v922_v41  ;;  %748 = vmatprep.mubr.f32.mxu1 %v922_v41 }
 0x103   :  { %v924_v43 = vpop.eup %923 }
 0x104   :  { %567 = vst [vmem:[#allocation2 + $0x8] sm:$0xff] %v924_v43  ;;  %749 = vmatmul.mubr.f32.vlgmr.msra.gmra.mrb[0].mxu1 %v924_v43  ;;  %v343_v44 = vpack.c.bf16 %v924_v43, %v922_v41 }
 0x105   :  { %807 = vmatpush3.bf16.msra.mxu1 %v905_v42  ;;  %822 = vmatprep.mubr.msk.bf16.mxu1 %vm982_vm0, %v981_v1 }
 0x106   :  { %808 = vmatprep.subr.bf16.mxu1 %v981_v1 }
 0x109   :  { %809 = vmatpush3.bf16.msra.mxu1 %v906_v45 }
 0x10a   :  { %810 = vmatprep.subr.bf16.mxu1 %v981_v1 }
 0x10d   :  { %811 = vmatpush3.bf16.msra.mxu1 %v907_v46 }
 0x10e   :  { %812 = vmatprep.subr.bf16.mxu1 %v981_v1 }
 0x111   :  { %813 = vmatpush3.bf16.msra.mxu1 %v908_v47 }
 0x112   :  { %814 = vmatprep.subr.bf16.mxu1 %v981_v1 }
 0x115   :  { %815 = vmatpush3.bf16.msra.mxu1 %v909_v48 }
 0x116   :  { %816 = vmatprep.subr.bf16.mxu1 %v981_v1 }
 0x119   :  { %817 = vmatpush3.bf16.msra.mxu1 %v910_v49 }
 0x11a   :  { %818 = vmatprep.subr.bf16.mxu1 %v981_v1 }
 0x11d   :  { %819 = vmatpush3.bf16.msra.mxu1 %v911_v50 }
 0x11e   :  { %820 = vmatprep.subr.bf16.mxu1 %v981_v1 }
 0x121   :  { %821 = vmatpush3.bf16.msra.mxu1 %v912_v51 }
 0x124   :  { %823 = vmatmul.mubr.bf16.vlgmr.msra.gmra.mrb[4].mxu1 %v343_v44 }
 0x1d7   :  { %v750_v54 = vpop.f32.mrb[0].mxu1 }
 0x1d8   :  { %v236_v55 = vpop.f32.mrb[1].mxu1  ;;  %v249_v57 = vsel %vm247_vm1, %v750_v54, -1e+30 }
 0x1d9   :  { %v248_v56 = vsel %vm247_vm1, %v236_v55, -1e+30 }
 0x1da   :  { %250 = vmax.xlane.f32.xlu0 %v248_v56 }
 0x1de   :  { %252 = vmax.xlane.f32.xlu0 %v249_v57 }
 0x1f7   :  { %v1160_v58 = vpop.f32.mrb[4].mxu1 }
 0x1f8   :  { %v824_v59 = vpop.f32.mrb[5].mxu1 }
 0x1f9   :  { %v1162_v60 = vpop.f32.mrb[6].mxu1 }
 0x1fa   :  { %v825_v61 = vpop.f32.mrb[7].mxu1 }
 0x267   :  { %v251_v62 = vpop.xlane.xlu0 %250 }
 0x268   :  { %v254_v63 = vsub.f32 %v248_v56, %v251_v62 }
 0x26a   :  { %v256_v0 = vmul.f32 1.442695, %v254_v63 }
 0x26b   :  { %v253_v2 = vpop.xlane.xlu0 %252 }
 0x26c   :  { %925 = vpow2.f32 %v256_v0  ;;  %v255_v3 = vsub.f32 %v249_v57, %v253_v2 }
 0x26e   :  { %v258_v4 = vmul.f32 1.442695, %v255_v3 }
 0x270   :  { %927 = vpow2.f32 %v258_v4 }
 0x276   :  { %v926_v5 = vpop.eup %925 }
 0x277   :  { %260 = vadd.xlane.f32.xlu1 %v926_v5 }
 0x27a   :  { %v928_v6 = vpop.eup %927 }
 0x27b   :  { %262 = vadd.xlane.f32.xlu1 %v928_v6 }
 0x304   :  { %v261_v7 = vpop.xlane.xlu1 %260 }
 0x305   :  { %929 = vrcp.f32 %v261_v7 }
 0x308   :  { %v263_v8 = vpop.xlane.xlu1 %262 }
 0x309   :  { %931 = vrcp.f32 %v263_v8 }
 0x30f   :  { %v930_v9 = vpop.eup %929 }
 0x310   :  { %v266_v10 = vmul.f32 %v930_v9, %v926_v5 }
 0x312   :  { %783 = vmatprep.mubr.f32.mxu0 %v266_v10  ;;  %568 = vst [vmem:[#allocation4] sm:$0xff] %v266_v10 }
 0x313   :  { %v932_v11 = vpop.eup %931 }
 0x314   :  { %v267_v13 = vmul.f32 %v932_v11, %v928_v6 }
 0x316   :  { %784 = vmatmul.mubr.f32.vlgmr.msra.gmra.mrb[4].mxu0 %v267_v13  ;;  %569 = vst [vmem:[#allocation4 + $0x8] sm:$0xff] %v267_v13 }
 0x317   :  { %787 = vmatpush3.bf16.msra.mxu0 %v913_v12  ;;  %802 = vmatprep.mubr.msk.bf16.mxu0 %vm982_vm0, %v981_v1 }
 0x318   :  { %788 = vmatprep.subr.bf16.mxu0 %v981_v1 }
 0x31b   :  { %789 = vmatpush3.bf16.msra.mxu0 %v914_v14 }
 0x31c   :  { %790 = vmatprep.subr.bf16.mxu0 %v981_v1 }
 0x31f   :  { %791 = vmatpush3.bf16.msra.mxu0 %v915_v15 }
 0x320   :  { %792 = vmatprep.subr.bf16.mxu0 %v981_v1 }
 0x323   :  { %793 = vmatpush3.bf16.msra.mxu0 %v916_v16 }
 0x324   :  { %794 = vmatprep.subr.bf16.mxu0 %v981_v1 }
 0x327   :  { %795 = vmatpush3.bf16.msra.mxu0 %v917_v17 }
 0x328   :  { %796 = vmatprep.subr.bf16.mxu0 %v981_v1 }
 0x32b   :  { %797 = vmatpush3.bf16.msra.mxu0 %v918_v18 }
 0x32c   :  { %798 = vmatprep.subr.bf16.mxu0 %v981_v1 }
 0x32f   :  { %799 = vmatpush3.bf16.msra.mxu0 %v919_v19 }
 0x330   :  { %800 = vmatprep.subr.bf16.mxu0 %v981_v1 }
 0x333   :  { %801 = vmatpush3.bf16.msra.mxu0 %v920_v20 }
 0x3e9   :  { %v785_v21 = vpop.f32.mrb[4].mxu0 }
 0x3ea   :  { %v334_v22 = vpop.f32.mrb[5].mxu0 }
 0x3eb   :  { %v360_v23 = vpack.c.bf16 %v785_v21, %v334_v22 }
 0x3ed   :  { %803 = vmatmul.mubr.bf16.vlgmr.msra.gmra.mrb[8].mxu0 %v360_v23 }
 0x3ee   :  { %944 = shalt.err (!%p941_p4)
}
 0x3ef   :  { %s945_s1 = scalar_lea.hbm %s1247_s8, 256 }
 0x3f0   :  { %p946_p5 = scmp.ne.s32.totalorder %s1247_s8, %s945_s1  ;;  %p949_p6 = scmp.lt.u32.totalorder %s945_s1, %s1247_s8 }
 0x3f2   :  { %p951_p7 = pnand %p949_p6, %p946_p5 }
 0x3f4   :  { %954 = shalt.err (!%p951_p7)
}
 0x3f5   :  { %s985_s29 = smov 128   ;;  %s986_s30 = smov 8  }
 0x3f6   :  { %583 = dma.vmem_to_hbm [thread:$0]  %s578_s22, 256, %s1247_s8, [#allocation3], %s985_s29, %s985_s29, %s986_s30  }
 0x3f7   :  { %s955_s12 = scalar_lea.vmem %s1197_s24, 256  ;;  %p960_p9 = scmp.lt.s32.totalorder %s1197_s24, %s1197_s24 }
 0x3f8   :  { %p956_p8 = scmp.ne.s32.totalorder %s1197_s24, %s955_s12  ;;  %p961_p10 = scmp.lt.s32.totalorder %s955_s12, %s955_s12 }
 0x3fa   :  { %p962_p11 = por %p961_p10, %p960_p9 }
 0x3fc   :  { %p963_p12 = pnand %p962_p11, %p956_p8 }
 0x3fe   :  { %966 = shalt.err (!%p963_p12)
}
 0x3ff   :  { %s967_s15 = scalar_lea.hbm %s1248_s9, 256 }
 0x400   :  { %p968_p13 = scmp.ne.s32.totalorder %s1248_s9, %s967_s15  ;;  %p971_p0 = scmp.lt.u32.totalorder %s967_s15, %s1248_s9 }
 0x402   :  { %p973_p1 = pnand %p971_p0, %p968_p13 }
 0x404   :  { %976 = shalt.err (!%p973_p1)
}
 0x405   :  { %595 = dma.vmem_to_hbm [thread:$0]  %s1197_s24, 256, %s1248_s9, [#allocation5], %s985_s29, %s985_s29, %s986_s30  }
 0x406   :  { %v632_v24 = vld [vmem:[%s1245_s6] ss:$0 sm:$0xff] }
 0x4c0   :  { %v459_v1 = vpop.f32.mrb[8].mxu0 }
 0x4c1   :  { %v549_v25 = vadd.f32 %v1160_v58, %v459_v1  ;;  %v804_v26 = vpop.f32.mrb[9].mxu0 }
 0x4c2   :  { %v462_v27 = vpop.f32.mrb[10].mxu0 }
 0x4c3   :  { %v562_v28 = vadd.f32 %v632_v24, %v549_v25  ;;  %v552_v29 = vadd.f32 %v1162_v60, %v462_v27  ;;  %v805_v30 = vpop.f32.mrb[11].mxu0 }
 0x4c5   :  { %564 = vst [vmem:[%s1246_s7] sm:$0xff] %v562_v28  ;;  %v563_v31 = vadd.f32 %v632_v24, %v552_v29 }
 0x4c7   :  { %565 = vst [vmem:[%s1246_s7 + $0x8] sm:$0xff] %v563_v31 }
 0x4c8   :  { %977 = dma.done.wait [#allocation3], 256  }
 0x4c9   :  { %978 = vsyncadd [#allocation3], 4294967040 }
 0x4ca   :  { %979 = dma.done.wait [#allocation5], 256  }
 0x4cb   :  { %980 = vsyncadd [#allocation5], 4294967040 }
 0x4cc   :  { %604 = vsyncpa [#allocation3], 1 }
 0x4cd   :  { %605 = vsyncpa [#allocation5], 1 }

// kernel: parallel_model_forward.6
= control target key start
LH: loop header
LB: loop body
LE: loop exit
PB: predicated region body
PF: predicated region fallthrough
CT: control target
= control target key end

     0   :  { %v271_v49 = vlaneseq  ;;  %s1260_s1 = inlined_call_operand.vmem [shape: bf16[128,128], index: 1, kind: input, shape index: {}]   ;;  %s1261_s0 = inlined_call_operand.vmem [shape: bf16[32,128], index: 0, kind: input, shape index: {}]   ;;  %s1262_s3 = inlined_call_operand.vmem [shape: f32[128,128], index: 3, kind: input, shape index: {}]   ;;  %s1263_s2 = inlined_call_operand.vmem [shape: f32[1,128], index: 2, kind: input, shape index: {}]   ;;  %s1264_s8 = inlined_call_operand.vmem [shape: f32[32,128], index: 8, kind: output, shape index: {1}]   ;;  %s1265_s5 = inlined_call_operand.vmem [shape: bf16[128,128], index: 5, kind: input, shape index: {}]   ;;  %s1266_s9 = inlined_call_operand.vmem [shape: f32[32,128], index: 9, kind: output, shape index: {2}]   ;;  %s1267_s4 = inlined_call_operand.vmem [shape: bf16[128,128], index: 4, kind: input, shape index: {}]   ;;  %s1268_s6 = inlined_call_operand.vmem [shape: f32[1,128], index: 6, kind: input, shape index: {}]   ;;  %s1269_s7 = inlined_call_operand.vmem [shape: f32[32,128], index: 7, kind: output, shape index: {0}]  }
   0x1   :  { %v966_v0 = vld [vmem:[%s1260_s1] sm:$0xff]   ;;  %v967_v1 = vld [vmem:[%s1260_s1 + $0x8] sm:$0xff]   ;;  %v968_v2 = vld [vmem:[%s1260_s1 + $0x10] sm:$0xff]  }
   0x2   :  { %762 = vmatprep.subr.bf16.mxu1 %v966_v0  ;;  %v969_v3 = vld [vmem:[%s1260_s1 + $0x18] sm:$0xff]   ;;  %v974_v4 = vld [vmem:[%s1261_s0] sm:$0xff]   ;;  %v171_v6 = vld [vmem:[%s1262_s3 + $0x8] sm:$0xff]  ;;  %v272_v50 = vand.u32 127, %v271_v49 }
   0x3   :  { %763 = vmatpush3.bf16.msra.mxu1 %v966_v0  ;;  %778 = vmatprep.mubr.bf16.mxu1 %v974_v4  ;;  %v170_v5 = vld [vmem:[%s1262_s3] sm:$0xff]  ;;  %v172_v7 = vld [vmem:[%s1262_s3 + $0x10] sm:$0xff]  ;;  %v173_v9 = vld [vmem:[%s1262_s3 + $0x18] sm:$0xff] }
   0x4   :  { %764 = vmatprep.subr.bf16.mxu1 %v967_v1  ;;  %v898_v8 = vpack.c.bf16 %v171_v6, %v170_v5  ;;  %v970_v10 = vld [vmem:[%s1260_s1 + $0x20] sm:$0xff]   ;;  %v902_v11 = vpack.c.bf16 %v173_v9, %v172_v7  ;;  %v175_v13 = vld [vmem:[%s1262_s3 + $0x28] sm:$0xff]  ;;  %v176_v16 = vld [vmem:[%s1262_s3 + $0x30] sm:$0xff]  ;;  %vm273_vm0 = vcmp.lt.s32.totalorder %v272_v50, 10 }
   0x5   :  { %v174_v12 = vld [vmem:[%s1262_s3 + $0x20] sm:$0xff]  ;;  %v971_v14 = vld [vmem:[%s1260_s1 + $0x28] sm:$0xff]   ;;  %v177_v17 = vld [vmem:[%s1262_s3 + $0x38] sm:$0xff] }
   0x6   :  { %931 = vmatprep.subr.bf16.mxu0 %v898_v8  ;;  %v906_v15 = vpack.c.bf16 %v175_v13, %v174_v12  ;;  %v972_v18 = vld [vmem:[%s1260_s1 + $0x30] sm:$0xff]   ;;  %v910_v19 = vpack.c.bf16 %v177_v17, %v176_v16  ;;  %v178_v20 = vld [vmem:[%s1262_s3 + $0x40] sm:$0xff]  ;;  %v179_v21 = vld [vmem:[%s1262_s3 + $0x48] sm:$0xff] }
   0x7   :  { %765 = vmatpush3.bf16.msra.mxu1 %v967_v1  ;;  %933 = vmatpush3.bf16.msra.mxu0 %v898_v8  ;;  %v973_v22 = vld [vmem:[%s1260_s1 + $0x38] sm:$0xff]   ;;  %v914_v23 = vpack.c.bf16 %v179_v21, %v178_v20  ;;  %v180_v24 = vld [vmem:[%s1262_s3 + $0x50] sm:$0xff]  ;;  %v975_v27 = vld [vmem:[%s1261_s0 + $0x8] sm:$0xff]  }
   0x8   :  { %766 = vmatprep.subr.bf16.mxu1 %v968_v2  ;;  %935 = vmatprep.subr.bf16.mxu0 %v902_v11  ;;  %v181_v25 = vld [vmem:[%s1262_s3 + $0x58] sm:$0xff]  ;;  %v182_v28 = vld [vmem:[%s1262_s3 + $0x60] sm:$0xff]  ;;  %v183_v29 = vld [vmem:[%s1262_s3 + $0x68] sm:$0xff] }
   0x9   :  { %v918_v26 = vpack.c.bf16 %v181_v25, %v180_v24  ;;  %v922_v30 = vpack.c.bf16 %v183_v29, %v182_v28  ;;  %v184_v31 = vld [vmem:[%s1262_s3 + $0x70] sm:$0xff]  ;;  %v185_v32 = vld [vmem:[%s1262_s3 + $0x78] sm:$0xff]  ;;  %v664_v34 = vld [vmem:[%s1263_s2] ss:$0 sm:$0xff] }
   0xa   :  { %v926_v33 = vpack.c.bf16 %v185_v32, %v184_v31  ;;  %v977_v21 = vld [vmem:[%s1265_s5 + $0x8] sm:$0xff]   ;;  %v978_v25 = vld [vmem:[%s1265_s5 + $0x10] sm:$0xff]   ;;  %v984_v31 = vld [vmem:[%s1267_s4] sm:$0xff]  }
   0xb   :  { %767 = vmatpush3.bf16.msra.mxu1 %v968_v2  ;;  %937 = vmatpush3.bf16.msra.mxu0 %v902_v11  ;;  %v981_v28 = vld [vmem:[%s1265_s5 + $0x28] sm:$0xff]   ;;  %v982_v29 = vld [vmem:[%s1265_s5 + $0x30] sm:$0xff]  }
   0xc   :  { %768 = vmatprep.subr.bf16.mxu1 %v969_v3  ;;  %939 = vmatprep.subr.bf16.mxu0 %v906_v15 }
   0xf   :  { %769 = vmatpush3.bf16.msra.mxu1 %v969_v3  ;;  %941 = vmatpush3.bf16.msra.mxu0 %v906_v15 }
  0x10   :  { %770 = vmatprep.subr.bf16.mxu1 %v970_v10  ;;  %943 = vmatprep.subr.bf16.mxu0 %v910_v19 }
  0x13   :  { %771 = vmatpush3.bf16.msra.mxu1 %v970_v10  ;;  %945 = vmatpush3.bf16.msra.mxu0 %v910_v19 }
  0x14   :  { %772 = vmatprep.subr.bf16.mxu1 %v971_v14  ;;  %947 = vmatprep.subr.bf16.mxu0 %v914_v23 }
  0x17   :  { %773 = vmatpush3.bf16.msra.mxu1 %v971_v14  ;;  %949 = vmatpush3.bf16.msra.mxu0 %v914_v23 }
  0x18   :  { %774 = vmatprep.subr.bf16.mxu1 %v972_v18  ;;  %951 = vmatprep.subr.bf16.mxu0 %v918_v26 }
  0x1b   :  { %775 = vmatpush3.bf16.msra.mxu1 %v972_v18  ;;  %953 = vmatpush3.bf16.msra.mxu0 %v918_v26 }
  0x1c   :  { %776 = vmatprep.subr.bf16.mxu1 %v973_v22  ;;  %955 = vmatprep.subr.bf16.mxu0 %v922_v30 }
  0x1f   :  { %777 = vmatpush3.bf16.msra.mxu1 %v973_v22  ;;  %957 = vmatpush3.bf16.msra.mxu0 %v922_v30 }
  0x20   :  { %899 = vmatprep.subr.bf16.mxu1 %v898_v8  ;;  %959 = vmatprep.subr.bf16.mxu0 %v926_v33 }
  0x22   :  { %779 = vmatmul.mubr.bf16.vlgmr.msra.gmra.mrb[0].mxu1 %v975_v27  ;;  %v980_v27 = vld [vmem:[%s1265_s5 + $0x20] sm:$0xff]  }
  0x23   :  { %961 = vmatpush3.bf16.msra.mxu0 %v926_v33 }
  0x28   :  { %901 = vmatpush3.bf16.xpose.msra.mxu1 %v898_v8 }
  0x29   :  { %903 = vmatprep.subr.bf16.mxu1 %v902_v11 }
  0x30   :  { %905 = vmatpush3.bf16.xpose.msra.mxu1 %v902_v11  ;;  %v976_v11 = vld [vmem:[%s1265_s5] sm:$0xff]  }
  0x31   :  { %907 = vmatprep.subr.bf16.mxu1 %v906_v15  ;;  %858 = vmatprep.subr.bf16.mxu0 %v976_v11 }
  0x38   :  { %909 = vmatpush3.bf16.xpose.msra.mxu1 %v906_v15 }
  0x39   :  { %911 = vmatprep.subr.bf16.mxu1 %v910_v19 }
  0x40   :  { %913 = vmatpush3.bf16.xpose.msra.mxu1 %v910_v19 }
  0x41   :  { %915 = vmatprep.subr.bf16.mxu1 %v914_v23 }
  0x48   :  { %917 = vmatpush3.bf16.xpose.msra.mxu1 %v914_v23 }
  0x49   :  { %919 = vmatprep.subr.bf16.mxu1 %v918_v26 }
  0x50   :  { %921 = vmatpush3.bf16.xpose.msra.mxu1 %v918_v26  ;;  %v979_v26 = vld [vmem:[%s1265_s5 + $0x18] sm:$0xff]  }
  0x51   :  { %923 = vmatprep.subr.bf16.mxu1 %v922_v30 }
  0x58   :  { %925 = vmatpush3.bf16.xpose.msra.mxu1 %v922_v30  ;;  %v983_v30 = vld [vmem:[%s1265_s5 + $0x38] sm:$0xff]  }
  0x59   :  { %927 = vmatprep.subr.bf16.mxu1 %v926_v33 }
  0x60   :  { %929 = vmatpush3.bf16.xpose.msra.mxu1 %v926_v33 }
  0xf5   :  { %v780_v35 = vpop.f32.mrb[0].mxu1 }
  0xf6   :  { %v160_v36 = vadd.f32 %v780_v35, %v664_v34  ;;  %v151_v37 = vpop.f32.mrb[1].mxu1 }
  0xf7   :  { %v152_v38 = vadd.f32 %v664_v34, %v151_v37  ;;  %v781_v39 = vpop.f32.mrb[2].mxu1 }
  0xf8   :  { %992 = vtanh.f32 %v160_v36  ;;  %v163_v40 = vadd.f32 %v781_v39, %v664_v34  ;;  %v154_v41 = vpop.f32.mrb[3].mxu1  ;;  %v986_v39 = vld [vmem:[%s1267_s4 + $0x10] sm:$0xff]  }
  0xf9   :  { %994 = vtanh.f32 %v152_v38  ;;  %v155_v42 = vadd.f32 %v664_v34, %v154_v41  ;;  %v985_v38 = vld [vmem:[%s1267_s4 + $0x8] sm:$0xff]   ;;  %v988_v41 = vld [vmem:[%s1267_s4 + $0x20] sm:$0xff]  }
  0xfa   :  { %996 = vtanh.f32 %v163_v40  ;;  %v987_v40 = vld [vmem:[%s1267_s4 + $0x18] sm:$0xff]  }
  0xfb   :  { %998 = vtanh.f32 %v155_v42  ;;  %v989_v42 = vld [vmem:[%s1267_s4 + $0x28] sm:$0xff]  }
 0x102   :  { %v1147_v43 = vpop.eup %992 }
 0x103   :  { %v1149_v44 = vpop.eup %994  ;;  %646 = vst [vmem:[%s1264_s8 + $0x10] sm:$0xff] %v1147_v43 }
 0x104   :  { %v1155_v45 = vpop.eup %996  ;;  %644 = vst [vmem:[%s1264_s8] sm:$0xff] %v1149_v44  ;;  %814 = vmatprep.mubr.f32.mxu1 %v1149_v44 }
 0x105   :  { %v1162_v46 = vpop.eup %998  ;;  %647 = vst [vmem:[%s1264_s8 + $0x18] sm:$0xff] %v1155_v45  ;;  %v400_v47 = vpack.c.bf16 %v1155_v45, %v1147_v43 }
 0x106   :  { %645 = vst [vmem:[%s1264_s8 + $0x8] sm:$0xff] %v1162_v46  ;;  %815 = vmatmul.mubr.f32.vlgmr.msra.gmra.mrb[4].mxu1 %v1162_v46  ;;  %v399_v48 = vpack.c.bf16 %v1162_v46, %v1149_v44  ;;  %v990_v44 = vld [vmem:[%s1267_s4 + $0x30] sm:$0xff]   ;;  %v991_v46 = vld [vmem:[%s1267_s4 + $0x38] sm:$0xff]  }
 0x107   :  { %817 = vmatprep.mubr.f32.mxu1 %v1147_v43 }
 0x10a   :  { %818 = vmatmul.mubr.f32.gmra.mrb[6].mxu1 %v1155_v45 }
 0x1d9   :  { %v816_v51 = vpop.f32.mrb[4].mxu1 }
 0x1da   :  { %v252_v52 = vpop.f32.mrb[5].mxu1  ;;  %v275_v56 = vsel %vm273_vm0, %v816_v51, -1e+30 }
 0x1db   :  { %v274_v53 = vsel %vm273_vm0, %v252_v52, -1e+30 }
 0x1dc   :  { %278 = vmax.xlane.f32.xlu0 %v274_v53 }
 0x1dd   :  { %v819_v54 = vpop.f32.mrb[6].mxu1 }
 0x1de   :  { %v262_v55 = vpop.f32.mrb[7].mxu1  ;;  %v277_v58 = vsel %vm273_vm0, %v819_v54, -1e+30 }
 0x1df   :  { %v276_v57 = vsel %vm273_vm0, %v262_v55, -1e+30 }
 0x1e0   :  { %280 = vmax.xlane.f32.xlu0 %v275_v56  ;;  %282 = vmax.xlane.f32.xlu1 %v276_v57 }
 0x1e4   :  { %284 = vmax.xlane.f32.xlu1 %v277_v58 }
 0x269   :  { %v279_v59 = vpop.xlane.xlu0 %278 }
 0x26a   :  { %v286_v60 = vsub.f32 %v274_v53, %v279_v59 }
 0x26c   :  { %v290_v61 = vmul.f32 1.442695, %v286_v60 }
 0x26d   :  { %v281_v62 = vpop.xlane.xlu0 %280  ;;  %v283_v63 = vpop.xlane.xlu1 %282 }
 0x26e   :  { %1000 = vpow2.f32 %v290_v61  ;;  %v287_v0 = vsub.f32 %v275_v56, %v281_v62  ;;  %v288_v1 = vsub.f32 %v276_v57, %v283_v63 }
 0x270   :  { %v292_v2 = vmul.f32 1.442695, %v287_v0  ;;  %v294_v3 = vmul.f32 1.442695, %v288_v1 }
 0x271   :  { %v285_v4 = vpop.xlane.xlu1 %284 }
 0x272   :  { %1002 = vpow2.f32 %v292_v2  ;;  %v289_v5 = vsub.f32 %v277_v58, %v285_v4 }
 0x273   :  { %1004 = vpow2.f32 %v294_v3 }
 0x274   :  { %v296_v6 = vmul.f32 1.442695, %v289_v5 }
 0x276   :  { %1006 = vpow2.f32 %v296_v6 }
 0x278   :  { %v1001_v7 = vpop.eup %1000 }
 0x279   :  { %298 = vadd.xlane.f32.xlu0 %v1001_v7 }
 0x27c   :  { %v1003_v8 = vpop.eup %1002 }
 0x27d   :  { %v1005_v9 = vpop.eup %1004  ;;  %300 = vadd.xlane.f32.xlu1 %v1003_v8 }
 0x27e   :  { %302 = vadd.xlane.f32.xlu0 %v1005_v9 }
 0x280   :  { %v1007_v10 = vpop.eup %1006 }
 0x281   :  { %304 = vadd.xlane.f32.xlu1 %v1007_v10 }
 0x306   :  { %v299_v12 = vpop.xlane.xlu0 %298 }
 0x307   :  { %1008 = vrcp.f32 %v299_v12 }
 0x30a   :  { %v301_v13 = vpop.xlane.xlu1 %300 }
 0x30b   :  { %v303_v14 = vpop.xlane.xlu0 %302  ;;  %1010 = vrcp.f32 %v301_v13 }
 0x30c   :  { %1012 = vrcp.f32 %v303_v14 }
 0x30e   :  { %v305_v15 = vpop.xlane.xlu1 %304 }
 0x30f   :  { %1014 = vrcp.f32 %v305_v15 }
 0x311   :  { %v1009_v16 = vpop.eup %1008 }
 0x312   :  { %v310_v17 = vmul.f32 %v1009_v16, %v1001_v7 }
 0x314   :  { %852 = vmatprep.mubr.f32.mxu0 %v310_v17  ;;  %648 = vst [vmem:[%s1266_s9] sm:$0xff] %v310_v17 }
 0x315   :  { %v1011_v18 = vpop.eup %1010 }
 0x316   :  { %v1013_v19 = vpop.eup %1012  ;;  %v311_v20 = vmul.f32 %v1011_v18, %v1003_v8 }
 0x317   :  { %v312_v22 = vmul.f32 %v1013_v19, %v1005_v9 }
 0x318   :  { %853 = vmatmul.mubr.f32.vlgmr.msra.gmra.mrb[0].mxu0 %v311_v20  ;;  %649 = vst [vmem:[%s1266_s9 + $0x8] sm:$0xff] %v311_v20 }
 0x319   :  { %v1015_v23 = vpop.eup %1014  ;;  %855 = vmatprep.mubr.f32.mxu0 %v312_v22  ;;  %650 = vst [vmem:[%s1266_s9 + $0x10] sm:$0xff] %v312_v22  ;;  %859 = vmatpush3.bf16.msra.mxu0 %v976_v11 }
 0x31a   :  { %v313_v24 = vmul.f32 %v1015_v23, %v1007_v10  ;;  %860 = vmatprep.subr.bf16.mxu0 %v977_v21 }
 0x31c   :  { %856 = vmatmul.mubr.f32.gmra.mrb[2].mxu0 %v313_v24  ;;  %651 = vst [vmem:[%s1266_s9 + $0x18] sm:$0xff] %v313_v24 }
 0x31d   :  { %861 = vmatpush3.bf16.msra.mxu0 %v977_v21 }
 0x31e   :  { %862 = vmatprep.subr.bf16.mxu0 %v978_v25 }
 0x321   :  { %863 = vmatpush3.bf16.msra.mxu0 %v978_v25 }
 0x322   :  { %864 = vmatprep.subr.bf16.mxu0 %v979_v26 }
 0x325   :  { %865 = vmatpush3.bf16.msra.mxu0 %v979_v26 }
 0x326   :  { %866 = vmatprep.subr.bf16.mxu0 %v980_v27 }
 0x329   :  { %867 = vmatpush3.bf16.msra.mxu0 %v980_v27 }
 0x32a   :  { %868 = vmatprep.subr.bf16.mxu0 %v981_v28 }
 0x32d   :  { %869 = vmatpush3.bf16.msra.mxu0 %v981_v28 }
 0x32e   :  { %870 = vmatprep.subr.bf16.mxu0 %v982_v29 }
 0x331   :  { %871 = vmatpush3.bf16.msra.mxu0 %v982_v29 }
 0x332   :  { %872 = vmatprep.subr.bf16.mxu0 %v983_v30 }
 0x335   :  { %873 = vmatpush3.bf16.msra.mxu0 %v983_v30 }
 0x336   :  { %878 = vmatprep.subr.bf16.mxu0 %v984_v31 }
 0x3eb   :  { %v854_v32 = vpop.f32.mrb[0].mxu0 }
 0x3ec   :  { %v380_v33 = vpop.f32.mrb[1].mxu0 }
 0x3ed   :  { %v417_v34 = vpack.c.bf16 %v854_v32, %v380_v33 }
 0x3ef   :  { %v857_v35 = vpop.f32.mrb[2].mxu0  ;;  %874 = vmatprep.mubr.bf16.mxu0 %v417_v34 }
 0x3f0   :  { %v390_v36 = vpop.f32.mrb[3].mxu0 }
 0x3f1   :  { %v418_v37 = vpack.c.bf16 %v857_v35, %v390_v36 }
 0x3f3   :  { %875 = vmatmul.mubr.bf16.vlgmr.msra.gmra.mrb[4].mxu0 %v418_v37 }
 0x3f4   :  { %879 = vmatpush3.bf16.msra.mxu0 %v984_v31  ;;  %894 = vmatprep.mubr.bf16.mxu0 %v399_v48  ;;  %v691_v48 = vld [vmem:[%s1268_s6] ss:$0 sm:$0xff] }
 0x3f5   :  { %880 = vmatprep.subr.bf16.mxu0 %v985_v38 }
 0x3f8   :  { %881 = vmatpush3.bf16.msra.mxu0 %v985_v38 }
 0x3f9   :  { %882 = vmatprep.subr.bf16.mxu0 %v986_v39 }
 0x3fc   :  { %883 = vmatpush3.bf16.msra.mxu0 %v986_v39 }
 0x3fd   :  { %884 = vmatprep.subr.bf16.mxu0 %v987_v40 }
 0x400   :  { %885 = vmatpush3.bf16.msra.mxu0 %v987_v40 }
 0x401   :  { %886 = vmatprep.subr.bf16.mxu0 %v988_v41 }
 0x404   :  { %887 = vmatpush3.bf16.msra.mxu0 %v988_v41 }
 0x405   :  { %888 = vmatprep.subr.bf16.mxu0 %v989_v42 }
 0x408   :  { %889 = vmatpush3.bf16.msra.mxu0 %v989_v42 }
 0x409   :  { %890 = vmatprep.subr.bf16.mxu0 %v990_v44 }
 0x40c   :  { %891 = vmatpush3.bf16.msra.mxu0 %v990_v44 }
 0x40d   :  { %892 = vmatprep.subr.bf16.mxu0 %v991_v46 }
 0x410   :  { %893 = vmatpush3.bf16.msra.mxu0 %v991_v46 }
 0x413   :  { %895 = vmatmul.mubr.bf16.vlgmr.msra.gmra.mrb[4].mxu0 %v400_v47 }
 0x4e6   :  { %v896_v49 = vpop.f32.mrb[4].mxu0 }
 0x4e7   :  { %v638_v50 = vadd.f32 %v896_v49, %v691_v48  ;;  %v614_v51 = vpop.f32.mrb[5].mxu0 }
 0x4e8   :  { %v636_v52 = vadd.f32 %v691_v48, %v614_v51  ;;  %v897_v53 = vpop.f32.mrb[6].mxu0 }
 0x4e9   :  { %642 = vst [vmem:[%s1269_s7 + $0x10] sm:$0xff] %v638_v50  ;;  %v639_v54 = vadd.f32 %v897_v53, %v691_v48  ;;  %v617_v55 = vpop.f32.mrb[7].mxu0 }
 0x4ea   :  { %640 = vst [vmem:[%s1269_s7] sm:$0xff] %v636_v52  ;;  %v637_v43 = vadd.f32 %v691_v48, %v617_v55 }
 0x4eb   :  { %643 = vst [vmem:[%s1269_s7 + $0x18] sm:$0xff] %v639_v54 }
 0x4ec   :  { %641 = vst [vmem:[%s1269_s7 + $0x8] sm:$0xff] %v637_v43 }

// kernel: parallel_model_forward.7
= control target key start
LH: loop header
LB: loop body
LE: loop exit
PB: predicated region body
PF: predicated region fallthrough
CT: control target
= control target key end

     0   :  { %10 = vsyncpa [#allocation3], 0  ;;  %s424_s0 = inlined_call_operand.vmem [shape: f32[10,66], index: 0, kind: input, shape index: {}]   ;;  %s425_s1 = inlined_call_operand.vmem [shape: f32[1,64], index: 1, kind: input, shape index: {}]   ;;  %s426_s2 = inlined_call_operand.vmem [shape: f32[1,64], index: 2, kind: input, shape index: {}]   ;;  %s427_s3 = inlined_call_operand.vmem [shape: f32[27], index: 3, kind: input, shape index: {}]   ;;  %s428_s4 = inlined_call_operand.vmem [shape: f32[3], index: 4, kind: input, shape index: {}]   ;;  %s429_s5 = inlined_call_operand.vmem [shape: f32[3,8,64], index: 5, kind: output, shape index: {}]  }
   0x1   :  { %s24_s20 = sshll.u32 %s427_s3, 4  ;;  %s25_s20 = int_to_ptr.vmem [resolvable:$true] %s24_s20 }
   0x2   :  { %11 = vsyncpa [#allocation5], 0  ;;  %s34_s23 = sshll.u32 %s428_s4, 4  ;;  %s301_s24 = scalar_lea.vmem %s25_s20, 16  ;;  %s35_s23 = int_to_ptr.vmem [resolvable:$true] %s34_s23 }
   0x3   :  { %p302_p0 = scmp.ne.s32.totalorder %s25_s20, %s301_s24  ;;  %p306_p1 = scmp.lt.s32.totalorder %s25_s20, %s25_s20 }
   0x4   :  { %p307_p2 = scmp.lt.s32.totalorder %s301_s24, %s301_s24 }
   0x6   :  { %p308_p3 = por %p307_p2, %p306_p1 }
   0x8   :  { %p309_p4 = pnand %p308_p3, %p302_p0 }
   0xa   :  { %312 = shalt.err (!%p309_p4)
}
   0xb   :  { %s329_s25 = smov [#allocation2]   ;;  %s313_s26 = scalar_lea.vmem %s35_s23, 16 }
   0xc   :  { %27 = dma.vmem_to_smem %s25_s20, 16, %s329_s25, [#allocation3]  }
   0xd   :  { %p314_p5 = scmp.ne.s32.totalorder %s35_s23, %s313_s26  ;;  %p318_p6 = scmp.lt.s32.totalorder %s35_s23, %s35_s23 }
   0xe   :  { %p319_p7 = scmp.lt.s32.totalorder %s313_s26, %s313_s26 }
  0x10   :  { %p320_p8 = por %p319_p7, %p318_p6 }
  0x12   :  { %p321_p9 = pnand %p320_p8, %p314_p5 }
  0x14   :  { %324 = shalt.err (!%p321_p9)
}
  0x15   :  { %s330_s3 = smov [#allocation4]  }
  0x16   :  { %37 = dma.vmem_to_smem %s35_s23, 16, %s330_s3, [#allocation5]  }
  0x17   :  { %325 = dma.done.wait [#allocation3], 16  }
  0x18   :  { %326 = vsyncadd [#allocation3], 4294967280 }
  0x19   :  { %327 = dma.done.wait [#allocation5], 16  }
  0x1a   :  { %328 = vsyncadd [#allocation5], 4294967280 }
  0x1b   :  { %44 = sfence }
  0x1c   :  { %v267_v0 = vld [vmem:[%s426_s2] ss:$0 sm:$0xff]  ;;  %s331_s28 = smov 2   ;;  %s271_s29 = sld [smem:[#allocation2 + $0xa]]  ;;  %v385_v9 = vld [vmem:[%s424_s0 + $0x1] sm:$0xff]  ;;  %vm256_vm0 = vcmask 523264  }
  0x1d   :  { %60 = vrot.lane.b32.xlu0 %v267_v0, %s331_s28  ;;  %s272_s30 = sld [smem:[#allocation2 + $0x13]]  ;;  %s270_s6 = sld [smem:[#allocation2 + $0x1]]  ;;  %v376_v1 = vld [vmem:[%s424_s0] sm:$0xff] }
  0x1e   :  { %s279_s7 = sld [smem:[#allocation2 + $0x4]]  ;;  %s280_s8 = sld [smem:[#allocation2 + $0xd]]  ;;  %v392_v12 = vld [vmem:[%s424_s0 + $0x2] sm:$0xff]  ;;  %v266_v48 = vld [vmem:[%s425_s1] ss:$0 sm:$0xff] }
  0x1f   :  { %s289_s9 = sld [smem:[#allocation2 + $0x10]]  ;;  %s281_s12 = sld [smem:[#allocation2 + $0x16]]  ;;  %v54_v51 = vmul.f32 %v266_v48, %v376_v1  ;;  %v122_v59 = vmul.f32 %v266_v48, %v385_v9 }
  0x20   :  { %s332_s2 = smov 127   ;;  %s288_s15 = sld [smem:[#allocation2 + $0x7]] }
  0x21   :  { %s274_s0 = sld [smem:[#allocation2 + $0xb]]  ;;  %s273_s18 = sld [smem:[#allocation2 + $0x2]] }
  0x22   :  { %v82_v2 = vstv %s271_s29  ;;  %s275_s19 = sld [smem:[#allocation2 + $0x14]]  ;;  %s283_s20 = sld [smem:[#allocation2 + $0xe]] }
  0x23   :  { %v90_v3 = vstv %s272_s30  ;;  %v83_v4 = vmul.f32 %v82_v2, %v376_v1  ;;  %v74_v5 = vstv %s270_s6  ;;  %s290_s21 = sld [smem:[#allocation2 + $0x19]]  ;;  %s282_s22 = sld [smem:[#allocation2 + $0x5]] }
  0x24   :  { %v75_v6 = vmul.f32 %v74_v5, %v376_v1  ;;  %v145_v7 = vstv %s280_s8  ;;  %v91_v8 = vmul.f32 %v90_v3, %v376_v1  ;;  %v137_v10 = vstv %s279_s7  ;;  %s292_s23 = sld [smem:[#allocation2 + $0x11]]  ;;  %s284_s24 = sld [smem:[#allocation2 + $0x17]] }
  0x25   :  { %85 = vrot.lane.b32.xlu1 %v83_v4, %s332_s2  ;;  %v146_v11 = vmul.f32 %v145_v7, %v385_v9  ;;  %v208_v13 = vstv %s289_s9  ;;  %v138_v14 = vmul.f32 %v137_v10, %v385_v9  ;;  %v153_v15 = vstv %s281_s12  ;;  %s333_s25 = smov 126   ;;  %s291_s26 = sld [smem:[#allocation2 + $0x8]] }
  0x26   :  { %77 = vrot.lane.b32.xlu0 %v75_v6, %s332_s2  ;;  %v209_v16 = vmul.f32 %v208_v13, %v392_v12  ;;  %v154_v17 = vmul.f32 %v153_v15, %v385_v9  ;;  %v200_v18 = vstv %s288_s15  ;;  %s293_s3 = sld [smem:[#allocation2 + $0x1a]]  ;;  %s268_s4 = sld [smem:[#allocation2 + $0x9]] }
  0x27   :  { %v201_v19 = vmul.f32 %v200_v18, %v392_v12  ;;  %v106_v21 = vstv %s274_s0  ;;  %v98_v22 = vstv %s273_s18  ;;  %s64_s27 = sld [smem:[#allocation2]]  ;;  %s269_s28 = sld [smem:[#allocation2 + $0x12]] }
  0x28   :  { %v114_v27 = vstv %s275_s19  ;;  %v169_v28 = vstv %s283_s20  ;;  %s277_s6 = sld [smem:[#allocation2 + $0xc]]  ;;  %s276_s7 = sld [smem:[#allocation2 + $0x3]] }
  0x29   :  { %93 = vrot.lane.b32.xlu1 %v91_v8, %s332_s2  ;;  %v216_v29 = vstv %s290_s21  ;;  %v161_v32 = vstv %s282_s22  ;;  %s278_s8 = sld [smem:[#allocation2 + $0x15]]  ;;  %s286_s9 = sld [smem:[#allocation2 + $0xf]]  ;;  %v185_v8 = vmul.f32 %v266_v48, %v392_v12 }
  0x2a   :  { %148 = vrot.lane.b32.xlu0 %v146_v11, %s332_s2  ;;  %v217_v33 = vmul.f32 %v216_v29, %v392_v12  ;;  %v232_v36 = vstv %s292_s23  ;;  %v177_v37 = vstv %s284_s24  ;;  %s285_s1 = sld [smem:[#allocation2 + $0x6]]  ;;  %s287_s10 = sld [smem:[#allocation2 + $0x18]] }
  0x2b   :  { %v224_v40 = vstv %s291_s26  ;;  %s294_s11 = sld [smem:[#allocation4 + $0x1]]  ;;  %s247_s12 = sld [smem:[#allocation4]] }
  0x2c   :  { %v240_v42 = vstv %s293_s3  ;;  %v68_v52 = vstv %s268_s4 }
  0x2d   :  { %140 = vrot.lane.b32.xlu1 %v138_v14, %s332_s2  ;;  %v65_v53 = vstv %s64_s27  ;;  %v69_v56 = vmul.f32 %v68_v52, %v54_v51  ;;  %v71_v57 = vstv %s269_s28 }
  0x2e   :  { %211 = vrot.lane.b32.xlu0 %v209_v16, %s332_s2  ;;  %v66_v58 = vmul.f32 %v65_v53, %v54_v51  ;;  %v129_v60 = vstv %s277_s6  ;;  %v125_v61 = vstv %s276_s7  ;;  %v72_v62 = vmul.f32 %v71_v57, %v54_v51 }
  0x2f   :  { %v130_v2 = vmul.f32 %v129_v60, %v122_v59  ;;  %v126_v3 = vmul.f32 %v125_v61, %v122_v59  ;;  %v133_v5 = vstv %s278_s8  ;;  %v192_v10 = vstv %s286_s9 }
  0x30   :  { %v134_v14 = vmul.f32 %v133_v5, %v122_v59 }
  0x31   :  { %156 = vrot.lane.b32.xlu1 %v154_v17, %s332_s2  ;;  %v188_v17 = vstv %s285_s1 }
  0x35   :  { %203 = vrot.lane.b32.xlu1 %v201_v19, %s332_s2  ;;  %v193_v19 = vmul.f32 %v192_v10, %v185_v8 }
  0x8f   :  { %v61_v20 = vpop.permute.xlu0 %60 }
  0x90   :  { %v63_v23 = vmul.f32 %v61_v20, %v376_v1  ;;  %v123_v24 = vmul.f32 %v385_v9, %v61_v20  ;;  %v186_v34 = vmul.f32 %v392_v12, %v61_v20 }
  0x92   :  { %v107_v25 = vmul.f32 %v106_v21, %v63_v23  ;;  %v99_v26 = vmul.f32 %v98_v22, %v63_v23  ;;  %v115_v30 = vmul.f32 %v114_v27, %v63_v23  ;;  %v170_v31 = vmul.f32 %v169_v28, %v123_v24 }
  0x93   :  { %v162_v35 = vmul.f32 %v161_v32, %v123_v24  ;;  %v233_v38 = vmul.f32 %v232_v36, %v186_v34  ;;  %v178_v39 = vmul.f32 %v177_v37, %v123_v24  ;;  %v225_v41 = vmul.f32 %v224_v40, %v186_v34 }
  0x94   :  { %109 = vrot.lane.b32.xlu1 %v107_v25, %s333_s25  ;;  %101 = vrot.lane.b32.xlu0 %v99_v26, %s333_s25  ;;  %v241_v43 = vmul.f32 %v240_v42, %v186_v34  ;;  %v189_v24 = vmul.f32 %v188_v17, %v185_v8  ;;  %v196_v27 = vstv %s287_s10 }
  0x95   :  { %v197_v32 = vmul.f32 %v196_v27, %v185_v8 }
  0x97   :  { %v86_v44 = vpop.permute.xlu1 %85 }
  0x98   :  { %117 = vrot.lane.b32.xlu0 %v115_v30, %s333_s25  ;;  %172 = vrot.lane.b32.xlu1 %v170_v31, %s333_s25  ;;  %v78_v47 = vpop.permute.xlu0 %77  ;;  %v88_v63 = vadd.f32 %v86_v44, %v69_v56 }
  0x99   :  { %v80_v0 = vadd.f32 %v78_v47, %v66_v58 }
  0x9b   :  { %v94_v45 = vpop.permute.xlu1 %93 }
  0x9c   :  { %219 = vrot.lane.b32.xlu1 %v217_v33, %s332_s2  ;;  %164 = vrot.lane.b32.xlu0 %v162_v35, %s333_s25  ;;  %v149_v50 = vpop.permute.xlu0 %148  ;;  %v96_v11 = vadd.f32 %v94_v45, %v72_v62  ;;  %v251_v33 = vstv %s294_s11  ;;  %s295_s2 = sld [smem:[#allocation4 + $0x2]] }
  0x9f   :  { %v141_v46 = vpop.permute.xlu1 %140 }
  0xa0   :  { %235 = vrot.lane.b32.xlu1 %v233_v38, %s333_s25  ;;  %180 = vrot.lane.b32.xlu0 %v178_v39, %s333_s25  ;;  %v212_v55 = vpop.permute.xlu0 %211 }
  0xa3   :  { %v157_v49 = vpop.permute.xlu1 %156 }
  0xa4   :  { %227 = vrot.lane.b32.xlu0 %v225_v41, %s333_s25  ;;  %v248_v41 = vstv %s247_s12 }
  0xa7   :  { %v204_v54 = vpop.permute.xlu1 %203 }
  0xa8   :  { %243 = vrot.lane.b32.xlu0 %v241_v43, %s333_s25 }
 0x106   :  { %v110_v1 = vpop.permute.xlu1 %109  ;;  %v102_v4 = vpop.permute.xlu0 %101 }
 0x107   :  { %v112_v6 = vadd.f32 %v110_v1, %v88_v63  ;;  %v104_v7 = vadd.f32 %v102_v4, %v80_v0 }
 0x109   :  { %v131_v13 = vadd.f32 %v130_v2, %v112_v6  ;;  %v127_v9 = vadd.f32 %v126_v3, %v104_v7 }
 0x10a   :  { %v173_v15 = vpop.permute.xlu1 %172  ;;  %v118_v16 = vpop.permute.xlu0 %117 }
 0x10b   :  { %v151_v18 = vadd.f32 %v149_v50, %v131_v13  ;;  %v120_v20 = vadd.f32 %v118_v16, %v96_v11  ;;  %v143_v23 = vadd.f32 %v141_v46, %v127_v9  ;;  %v254_v46 = vstv %s295_s2 }
 0x10d   :  { %v175_v21 = vadd.f32 %v173_v15, %v151_v18  ;;  %v135_v22 = vadd.f32 %v134_v14, %v120_v20 }
 0x10e   :  { %v220_v25 = vpop.permute.xlu1 %219  ;;  %v165_v26 = vpop.permute.xlu0 %164 }
 0x10f   :  { %v194_v12 = vadd.f32 %v193_v19, %v175_v21  ;;  %v167_v28 = vadd.f32 %v165_v26, %v143_v23  ;;  %v159_v31 = vadd.f32 %v157_v49, %v135_v22 }
 0x111   :  { %v190_v29 = vadd.f32 %v189_v24, %v167_v28  ;;  %v214_v30 = vadd.f32 %v212_v55, %v194_v12 }
 0x112   :  { %v236_v34 = vpop.permute.xlu1 %235  ;;  %v181_v35 = vpop.permute.xlu0 %180 }
 0x113   :  { %v238_v36 = vadd.f32 %v236_v34, %v214_v30  ;;  %v183_v37 = vadd.f32 %v181_v35, %v159_v31  ;;  %v206_v40 = vadd.f32 %v204_v54, %v190_v29 }
 0x115   :  { %v252_v38 = vadd.f32 %v251_v33, %v238_v36  ;;  %v198_v39 = vadd.f32 %v197_v32, %v183_v37 }
 0x116   :  { %v228_v42 = vpop.permute.xlu0 %227 }
 0x117   :  { %258 = vst.msk [vmem:[%s429_s5 + $0x8] sm:$0xff] %vm256_vm0, %v252_v38  ;;  %v230_v43 = vadd.f32 %v228_v42, %v206_v40  ;;  %v222_v45 = vadd.f32 %v220_v25, %v198_v39 }
 0x119   :  { %v249_v44 = vadd.f32 %v248_v41, %v230_v43 }
 0x11a   :  { %v244_v47 = vpop.permute.xlu0 %243 }
 0x11b   :  { %257 = vst.msk [vmem:[%s429_s5] sm:$0xff] %vm256_vm0, %v249_v44  ;;  %v246_v48 = vadd.f32 %v244_v47, %v222_v45 }
 0x11d   :  { %v255_v49 = vadd.f32 %v254_v46, %v246_v48 }
 0x11f   :  { %259 = vst.msk [vmem:[%s429_s5 + $0x10] sm:$0xff] %vm256_vm0, %v255_v49 }
 0x120   :  { %264 = vsyncpa [#allocation3], 1 }
 0x121   :  { %265 = vsyncpa [#allocation5], 1 }

// kernel: parallel_model_forward.8
= control target key start
LH: loop header
LB: loop body
LE: loop exit
PB: predicated region body
PF: predicated region fallthrough
CT: control target
= control target key end

     0   :  { %10 = vsyncpa [#allocation3], 0  ;;  %s1090_s0 = inlined_call_operand.vmem [shape: f32[10,194], index: 0, kind: input, shape index: {}]   ;;  %s1091_s1 = inlined_call_operand.vmem [shape: f32[1,192], index: 1, kind: input, shape index: {}]   ;;  %s1092_s2 = inlined_call_operand.vmem [shape: f32[1,192], index: 2, kind: input, shape index: {}]   ;;  %s1093_s3 = inlined_call_operand.vmem [shape: f32[27], index: 3, kind: input, shape index: {}]   ;;  %s1094_s4 = inlined_call_operand.vmem [shape: f32[3], index: 4, kind: input, shape index: {}]   ;;  %s1095_s5 = inlined_call_operand.vmem [shape: f32[3,8,192], index: 5, kind: output, shape index: {}]  }
   0x1   :  { %s24_s20 = sshll.u32 %s1093_s3, 4  ;;  %s25_s20 = int_to_ptr.vmem [resolvable:$true] %s24_s20 }
   0x2   :  { %11 = vsyncpa [#allocation5], 0  ;;  %s34_s23 = sshll.u32 %s1094_s4, 4  ;;  %s689_s24 = scalar_lea.vmem %s25_s20, 16  ;;  %s35_s23 = int_to_ptr.vmem [resolvable:$true] %s34_s23 }
   0x3   :  { %p690_p0 = scmp.ne.s32.totalorder %s25_s20, %s689_s24  ;;  %p694_p1 = scmp.lt.s32.totalorder %s25_s20, %s25_s20 }
   0x4   :  { %p695_p2 = scmp.lt.s32.totalorder %s689_s24, %s689_s24 }
   0x6   :  { %p696_p3 = por %p695_p2, %p694_p1 }
   0x8   :  { %p697_p4 = pnand %p696_p3, %p690_p0 }
   0xa   :  { %700 = shalt.err (!%p697_p4)
}
   0xb   :  { %s717_s25 = smov [#allocation2]   ;;  %s701_s26 = scalar_lea.vmem %s35_s23, 16 }
   0xc   :  { %27 = dma.vmem_to_smem %s25_s20, 16, %s717_s25, [#allocation3]  }
   0xd   :  { %p702_p5 = scmp.ne.s32.totalorder %s35_s23, %s701_s26  ;;  %p706_p6 = scmp.lt.s32.totalorder %s35_s23, %s35_s23 }
   0xe   :  { %p707_p7 = scmp.lt.s32.totalorder %s701_s26, %s701_s26 }
  0x10   :  { %p708_p8 = por %p707_p7, %p706_p6 }
  0x12   :  { %p709_p9 = pnand %p708_p8, %p702_p5 }
  0x14   :  { %712 = shalt.err (!%p709_p9)
}
  0x15   :  { %s718_s3 = smov [#allocation4]  }
  0x16   :  { %37 = dma.vmem_to_smem %s35_s23, 16, %s718_s3, [#allocation5]  }
  0x17   :  { %713 = dma.done.wait [#allocation3], 16  }
  0x18   :  { %714 = vsyncadd [#allocation3], 4294967280 }
  0x19   :  { %715 = dma.done.wait [#allocation5], 16  }
  0x1a   :  { %716 = vsyncadd [#allocation5], 4294967280 }
  0x1b   :  { %44 = sfence }
  0x1c   :  { %v50_v0 = vlaneseq  ;;  %s658_s4 = sld [smem:[#allocation2 + $0x1]]  ;;  %s760_s27 = sld [smem:[#allocation2 + $0xa]]  ;;  %v46_v2 = vld [vmem:[%s1092_s2] sm:$0x3]  ;;  %v779_v7 = vld [vmem:[%s1090_s0 + $0x8] sm:$0xff]  ;;  %vm207_vm0 = vcmask 1046528  }
  0x1d   :  { %s667_s30 = sld [smem:[#allocation2 + $0x4]]  ;;  %v770_v5 = vld [vmem:[%s1090_s0] sm:$0xff]  ;;  %s772_s8 = sld [smem:[#allocation2 + $0x13]]  ;;  %v795_v14 = vld [vmem:[%s1090_s0 + $0x10] sm:$0x1]  ;;  %vm430_vm1 = vcmask 1045504  }
  0x1e   :  { %v758_v1 = vshrl.u32 %v50_v0, 7  ;;  %s668_s9 = sld [smem:[#allocation2 + $0xd]]  ;;  %s719_s2 = smov 2   ;;  %v790_v13 = vld [vmem:[%s1090_s0] sm:$0xfe]  ;;  %vm75_vm2 = vcmask 15360  }
  0x1f   :  { %s669_s12 = sld [smem:[#allocation2 + $0x16]]  ;;  %s720_s13 = smov 127   ;;  %v800_v16 = vld [vmem:[%s1090_s0 + $0x8] sm:$0xfe]  ;;  %v805_v17 = vld [vmem:[%s1090_s0 + $0x18] sm:$0x1] }
  0x20   :  { %v52_v3 = vsub.s32 0, %v758_v1  ;;  %v56_v4 = vsub.s32 1, %v758_v1  ;;  %s676_s22 = sld [smem:[#allocation2 + $0x7]]  ;;  %s819_s23 = sld [smem:[#allocation2 + $0x10]]  ;;  %v834_v43 = vld [vmem:[%s1090_s0] sm:$0xfc] }
  0x21   :  { %v839_v44 = vld [vmem:[%s1090_s0 + $0x10] sm:$0x3]  ;;  %v846_v50 = vld [vmem:[%s1090_s0 + $0x8] sm:$0xfc]  ;;  %v851_v51 = vld [vmem:[%s1090_s0 + $0x18] sm:$0x3] }
  0x22   :  { %v66_v6 = vrot.slane %v46_v2, %v52_v3  ;;  %v94_v8 = vstv %s658_s4  ;;  %v70_v9 = vrot.slane %v46_v2, %v56_v4  ;;  %v110_v11 = vstv %s760_s27  ;;  %s678_s4 = sld [smem:[#allocation2 + $0x19]]  ;;  %s661_s0 = sld [smem:[#allocation2 + $0x2]] }
  0x23   :  { %v95_v10 = vmul.f32 %v94_v8, %v770_v5  ;;  %v96_v12 = vmul.f32 %v94_v8, %v779_v7  ;;  %v259_v15 = vstv %s667_s30  ;;  %v111_v18 = vmul.f32 %v110_v11, %v770_v5  ;;  %s888_s6 = sld [smem:[#allocation2 + $0xb]]  ;;  %s670_s7 = sld [smem:[#allocation2 + $0x5]] }
  0x24   :  { %71 = vrot.lane.b32.xlu0 %v66_v6, %s719_s2  ;;  %v125_v19 = vstv %s772_s8  ;;  %v260_v20 = vmul.f32 %v259_v15, %v790_v13  ;;  %v262_v21 = vmul.f32 %v259_v15, %v795_v14  ;;  %v284_v22 = vstv %s668_s9  ;;  %s890_s8 = sld [smem:[#allocation2 + $0x14]]  ;;  %s671_s9 = sld [smem:[#allocation2 + $0xe]] }
  0x25   :  { %99 = vrot.lane.b32.xlu1 %v95_v10, %s720_s13  ;;  %v112_v23 = vmul.f32 %v110_v11, %v779_v7  ;;  %v261_v24 = vmul.f32 %v259_v15, %v800_v16  ;;  %v263_v25 = vmul.f32 %v259_v15, %v805_v17  ;;  %v126_v26 = vmul.f32 %v125_v19, %v770_v5  ;;  %s721_s10 = smov 126   ;;  %s672_s11 = sld [smem:[#allocation2 + $0x17]] }
  0x26   :  { %v285_v27 = vmul.f32 %v284_v22, %v790_v13  ;;  %v287_v28 = vmul.f32 %v284_v22, %v795_v14  ;;  %v268_v29 = vrot.slane %v260_v20, 1  ;;  %v269_v30 = vrot.slane %v262_v21, 1  ;;  %s81_s16 = sld [smem:[#allocation2]]  ;;  %s656_s17 = sld [smem:[#allocation2 + $0x9]] }
  0x27   :  { %v309_v31 = vstv %s669_s12  ;;  %v127_v32 = vmul.f32 %v125_v19, %v779_v7  ;;  %v271_v33 = vrot.slane %v261_v24, 1  ;;  %v272_v34 = vrot.slane %v263_v25, 1  ;;  %s680_s12 = sld [smem:[#allocation2 + $0x11]]  ;;  %s657_s18 = sld [smem:[#allocation2 + $0x12]] }
  0x28   :  { %73 = vrot.lane.b32.xlu0 %v70_v9, %s719_s2  ;;  %v286_v35 = vmul.f32 %v284_v22, %v800_v16  ;;  %v288_v36 = vmul.f32 %v284_v22, %v805_v17  ;;  %v293_v37 = vrot.slane %v285_v27, 1  ;;  %v294_v38 = vrot.slane %v287_v28, 1  ;;  %s679_s2 = sld [smem:[#allocation2 + $0x8]]  ;;  %s664_s19 = sld [smem:[#allocation2 + $0x3]] }
  0x29   :  { %101 = vrot.lane.b32.xlu1 %v96_v12, %s720_s13  ;;  %v310_v39 = vmul.f32 %v309_v31, %v790_v13  ;;  %v270_v40 = vsel %vm207_vm0, %v268_v29, %v269_v30  ;;  %v312_v41 = vmul.f32 %v309_v31, %v795_v14  ;;  %v273_v42 = vsel %vm207_vm0, %v271_v33, %v272_v34  ;;  %s665_s20 = sld [smem:[#allocation2 + $0xc]]  ;;  %s981_s21 = sld [smem:[#allocation2 + $0x6]] }
  0x2a   :  { %v482_v45 = vstv %s676_s22  ;;  %v296_v46 = vrot.slane %v286_v35, 1  ;;  %v297_v47 = vrot.slane %v288_v36, 1  ;;  %v311_v48 = vmul.f32 %v309_v31, %v800_v16  ;;  %s984_s22 = sld [smem:[#allocation2 + $0xf]]  ;;  %s1031_s24 = sld [smem:[#allocation4]] }
  0x2b   :  { %v313_v49 = vmul.f32 %v309_v31, %v805_v17  ;;  %v295_v52 = vsel %vm207_vm0, %v293_v37, %v294_v38  ;;  %v318_v53 = vrot.slane %v310_v39, 1  ;;  %v319_v54 = vrot.slane %v312_v41, 1  ;;  %s1043_s25 = sld [smem:[#allocation4 + $0x1]]  ;;  %s1053_s26 = sld [smem:[#allocation4 + $0x2]] }
  0x2c   :  { %115 = vrot.lane.b32.xlu0 %v111_v18, %s720_s13  ;;  %v483_v55 = vmul.f32 %v482_v45, %v834_v43  ;;  %v485_v56 = vmul.f32 %v482_v45, %v839_v44  ;;  %v507_v57 = vstv %s819_s23  ;;  %v484_v58 = vmul.f32 %v482_v45, %v846_v50  ;;  %s999_s23 = sld [smem:[#allocation2 + $0x18]] }
  0x2d   :  { %117 = vrot.lane.b32.xlu1 %v112_v23, %s720_s13  ;;  %v486_v59 = vmul.f32 %v482_v45, %v851_v51  ;;  %v298_v60 = vsel %vm207_vm0, %v296_v46, %v297_v47  ;;  %v321_v61 = vrot.slane %v311_v48, 1  ;;  %v322_v62 = vrot.slane %v313_v49, 1 }
  0x2e   :  { %v508_v63 = vmul.f32 %v507_v57, %v834_v43  ;;  %v320_v0 = vsel %vm207_vm0, %v318_v53, %v319_v54  ;;  %v491_v2 = vrot.slane %v483_v55, 2  ;;  %v492_v6 = vrot.slane %v485_v56, 2 }
  0x2f   :  { %v510_v8 = vmul.f32 %v507_v57, %v839_v44  ;;  %v494_v9 = vrot.slane %v484_v58, 2  ;;  %v495_v10 = vrot.slane %v486_v59, 2  ;;  %v532_v11 = vstv %s678_s4 }
  0x30   :  { %130 = vrot.lane.b32.xlu0 %v126_v26, %s720_s13  ;;  %v323_v12 = vsel %vm207_vm0, %v321_v61, %v322_v62  ;;  %v509_v15 = vmul.f32 %v507_v57, %v846_v50  ;;  %v511_v18 = vmul.f32 %v507_v57, %v851_v51  ;;  %v516_v19 = vrot.slane %v508_v63, 2 }
  0x31   :  { %132 = vrot.lane.b32.xlu1 %v127_v32, %s720_s13  ;;  %v493_v20 = vsel %vm430_vm1, %v491_v2, %v492_v6  ;;  %v517_v21 = vrot.slane %v510_v8, 2  ;;  %v533_v22 = vmul.f32 %v532_v11, %v834_v43  ;;  %v535_v23 = vmul.f32 %v532_v11, %v839_v44 }
  0x32   :  { %v496_v24 = vsel %vm430_vm1, %v494_v9, %v495_v10  ;;  %v519_v25 = vrot.slane %v509_v15, 2  ;;  %v520_v26 = vrot.slane %v511_v18, 2  ;;  %v534_v27 = vmul.f32 %v532_v11, %v846_v50 }
  0x33   :  { %v536_v28 = vmul.f32 %v532_v11, %v851_v51  ;;  %v518_v29 = vsel %vm430_vm1, %v516_v19, %v517_v21  ;;  %v541_v30 = vrot.slane %v533_v22, 2  ;;  %v542_v31 = vrot.slane %v535_v23, 2 }
  0x34   :  { %274 = vrot.lane.b32.xlu0 %v270_v40, %s720_s13  ;;  %v521_v32 = vsel %vm430_vm1, %v519_v25, %v520_v26  ;;  %v544_v33 = vrot.slane %v534_v27, 2  ;;  %v140_v38 = vstv %s661_s0  ;;  %v334_v48 = vstv %s670_s7 }
  0x35   :  { %276 = vrot.lane.b32.xlu1 %v273_v42, %s720_s13  ;;  %v545_v34 = vrot.slane %v536_v28, 2  ;;  %v543_v35 = vsel %vm430_vm1, %v541_v30, %v542_v31  ;;  %v156_v42 = vstv %s888_s6  ;;  %v171_v53 = vstv %s890_s8 }
  0x36   :  { %v359_v57 = vstv %s671_s9  ;;  %v384_v9 = vstv %s672_s11  ;;  %v557_v10 = vstv %s679_s2  ;;  %v582_v27 = vstv %s680_s12 }
  0x37   :  { %v546_v36 = vsel %vm430_vm1, %v544_v33, %v545_v34  ;;  %vm103_vm3 = vcmask 1039360   ;;  %v90_v1 = vstv %s657_s18  ;;  %vm149_vm4 = vcmask 1031168  }
  0x38   :  { %299 = vrot.lane.b32.xlu0 %v295_v52, %s720_s13  ;;  %vm644_vm5 = vcmask 523264  }
  0x39   :  { %301 = vrot.lane.b32.xlu1 %v298_v60, %s720_s13 }
  0x3c   :  { %324 = vrot.lane.b32.xlu0 %v320_v0, %s720_s13 }
  0x3d   :  { %326 = vrot.lane.b32.xlu1 %v323_v12, %s720_s13 }
  0x40   :  { %497 = vrot.lane.b32.xlu0 %v493_v20, %s720_s13 }
  0x41   :  { %499 = vrot.lane.b32.xlu1 %v496_v24, %s720_s13 }
  0x44   :  { %522 = vrot.lane.b32.xlu0 %v518_v29, %s720_s13 }
  0x45   :  { %524 = vrot.lane.b32.xlu1 %v521_v32, %s720_s13 }
  0x48   :  { %547 = vrot.lane.b32.xlu0 %v543_v35, %s720_s13 }
  0x49   :  { %549 = vrot.lane.b32.xlu1 %v546_v36, %s720_s13  ;;  %s681_s13 = sld [smem:[#allocation2 + $0x1a]] }
  0x96   :  { %v72_v37 = vpop.permute.xlu0 %71 }
  0x97   :  { %v79_v39 = vmul.f32 %v72_v37, %v770_v5  ;;  %v193_v45 = vmul.f32 %v790_v13, %v72_v37  ;;  %v195_v46 = vmul.f32 %v795_v14, %v72_v37  ;;  %v416_v15 = vmul.f32 %v834_v43, %v72_v37 }
  0x98   :  { %v418_v18 = vmul.f32 %v839_v44, %v72_v37 }
  0x99   :  { %v141_v40 = vmul.f32 %v140_v38, %v79_v39  ;;  %v157_v52 = vmul.f32 %v156_v42, %v79_v39  ;;  %v335_v55 = vmul.f32 %v334_v48, %v193_v45  ;;  %v337_v56 = vmul.f32 %v334_v48, %v195_v46 }
  0x9a   :  { %v74_v41 = vpop.permute.xlu0 %73  ;;  %v172_v60 = vmul.f32 %v171_v53, %v79_v39  ;;  %v360_v61 = vmul.f32 %v359_v57, %v193_v45  ;;  %v362_v62 = vmul.f32 %v359_v57, %v195_v46  ;;  %v385_v21 = vmul.f32 %v384_v9, %v193_v45 }
  0x9b   :  { %v76_v47 = vsel %vm75_vm2, %v72_v37, %v74_v41  ;;  %145 = vrot.lane.b32.xlu0 %v141_v40, %s721_s10  ;;  %v343_v0 = vrot.slane %v335_v55, 1  ;;  %v344_v2 = vrot.slane %v337_v56, 1  ;;  %v387_v22 = vmul.f32 %v384_v9, %v195_v46 }
  0x9c   :  { %v80_v49 = vmul.f32 %v76_v47, %v779_v7  ;;  %v194_v58 = vmul.f32 %v800_v16, %v76_v47  ;;  %v196_v59 = vmul.f32 %v805_v17, %v76_v47  ;;  %v368_v11 = vrot.slane %v360_v61, 1 }
  0x9d   :  { %v369_v12 = vrot.slane %v362_v62, 1  ;;  %v345_v19 = vsel %vm207_vm0, %v343_v0, %v344_v2  ;;  %v417_v28 = vmul.f32 %v846_v50, %v76_v47  ;;  %v558_v30 = vmul.f32 %v557_v10, %v416_v15 }
  0x9e   :  { %v142_v54 = vmul.f32 %v140_v38, %v80_v49  ;;  %v158_v63 = vmul.f32 %v156_v42, %v80_v49  ;;  %v336_v6 = vmul.f32 %v334_v48, %v194_v58  ;;  %v338_v8 = vmul.f32 %v334_v48, %v196_v59 }
  0x9f   :  { %161 = vrot.lane.b32.xlu0 %v157_v52, %s721_s10  ;;  %v173_v20 = vmul.f32 %v171_v53, %v80_v49  ;;  %v361_v25 = vmul.f32 %v359_v57, %v194_v58  ;;  %v363_v26 = vmul.f32 %v359_v57, %v196_v59  ;;  %v370_v29 = vsel %vm207_vm0, %v368_v11, %v369_v12 }
  0xa0   :  { %147 = vrot.lane.b32.xlu1 %v142_v54, %s721_s10  ;;  %v346_v23 = vrot.slane %v336_v6, 1  ;;  %v347_v24 = vrot.slane %v338_v8, 1  ;;  %v560_v31 = vmul.f32 %v557_v10, %v418_v18  ;;  %v393_v32 = vrot.slane %v385_v21, 1 }
  0xa1   :  { %v394_v33 = vrot.slane %v387_v22, 1  ;;  %v386_v34 = vmul.f32 %v384_v9, %v194_v58  ;;  %v388_v35 = vmul.f32 %v384_v9, %v196_v59  ;;  %v419_v36 = vmul.f32 %v851_v51, %v76_v47 }
  0xa2   :  { %v348_v37 = vsel %vm207_vm0, %v346_v23, %v347_v24  ;;  %v371_v38 = vrot.slane %v361_v25, 1  ;;  %v372_v39 = vrot.slane %v363_v26, 1  ;;  %v566_v40 = vrot.slane %v558_v30, 2  ;;  %v100_v23 = vpop.permute.xlu1 %99  ;;  %v116_v24 = vpop.permute.xlu0 %115 }
  0xa3   :  { %176 = vrot.lane.b32.xlu0 %v172_v60, %s721_s10  ;;  %v567_v41 = vrot.slane %v560_v31, 2  ;;  %v583_v42 = vmul.f32 %v582_v27, %v416_v15  ;;  %v395_v45 = vsel %vm207_vm0, %v393_v32, %v394_v33  ;;  %v396_v46 = vrot.slane %v386_v34, 1 }
  0xa4   :  { %163 = vrot.lane.b32.xlu1 %v158_v63, %s721_s10  ;;  %v397_v48 = vrot.slane %v388_v35, 1  ;;  %v585_v49 = vmul.f32 %v582_v27, %v418_v18  ;;  %v373_v47 = vsel %vm207_vm0, %v371_v38, %v372_v39  ;;  %v559_v52 = vmul.f32 %v557_v10, %v417_v28 }
  0xa5   :  { %v561_v53 = vmul.f32 %v557_v10, %v419_v36  ;;  %v607_v54 = vstv %s681_s13  ;;  %v568_v55 = vsel %vm430_vm1, %v566_v40, %v567_v41  ;;  %v591_v56 = vrot.slane %v583_v42, 2 }
  0xa6   :  { %v398_v57 = vsel %vm207_vm0, %v396_v46, %v397_v48  ;;  %v592_v58 = vrot.slane %v585_v49, 2  ;;  %v608_v59 = vmul.f32 %v607_v54, %v416_v15  ;;  %v610_v60 = vmul.f32 %v607_v54, %v418_v18  ;;  %v102_v25 = vpop.permute.xlu1 %101 }
  0xa7   :  { %349 = vrot.lane.b32.xlu0 %v345_v19, %s721_s10  ;;  %v569_v61 = vrot.slane %v559_v52, 2  ;;  %v570_v62 = vrot.slane %v561_v53, 2  ;;  %v584_v63 = vmul.f32 %v582_v27, %v417_v28  ;;  %v586_v0 = vmul.f32 %v582_v27, %v419_v36  ;;  %v131_v27 = vpop.permute.xlu0 %130 }
  0xa8   :  { %178 = vrot.lane.b32.xlu1 %v173_v20, %s721_s10  ;;  %v593_v2 = vsel %vm430_vm1, %v591_v56, %v592_v58  ;;  %v616_v6 = vrot.slane %v608_v59, 2  ;;  %v617_v8 = vrot.slane %v610_v60, 2  ;;  %v609_v9 = vmul.f32 %v607_v54, %v417_v28 }
  0xa9   :  { %v571_v10 = vsel %vm430_vm1, %v569_v61, %v570_v62  ;;  %v594_v11 = vrot.slane %v584_v63, 2  ;;  %v595_v12 = vrot.slane %v586_v0, 2  ;;  %v611_v15 = vmul.f32 %v607_v54, %v419_v36  ;;  %v45_v36 = vld [vmem:[%s1091_s1] sm:$0x3]  ;;  %s967_s1 = sld [smem:[#allocation2 + $0x15]] }
  0xaa   :  { %v618_v18 = vsel %vm430_vm1, %v616_v6, %v617_v8  ;;  %v619_v20 = vrot.slane %v609_v9, 2  ;;  %v118_v26 = vpop.permute.xlu1 %117  ;;  %v951_v38 = vrot.slane %v45_v36, %v52_v3  ;;  %v957_v40 = vrot.slane %v45_v36, %v56_v4 }
  0xab   :  { %374 = vrot.lane.b32.xlu0 %v370_v29, %s721_s10  ;;  %v596_v19 = vsel %vm430_vm1, %v594_v11, %v595_v12  ;;  %v620_v21 = vrot.slane %v611_v15, 2  ;;  %v275_v29 = vpop.permute.xlu0 %274  ;;  %v82_v42 = vstv %s81_s16  ;;  %v86_v48 = vstv %s656_s17 }
  0xac   :  { %351 = vrot.lane.b32.xlu1 %v348_v37, %s721_s10  ;;  %v60_v41 = vmul.f32 %v951_v38, %v770_v5  ;;  %v61_v3 = vmul.f32 %v957_v40, %v779_v7  ;;  %v189_v4 = vmul.f32 %v790_v13, %v951_v38  ;;  %v190_v5 = vmul.f32 %v800_v16, %v957_v40 }
  0xad   :  { %v621_v22 = vsel %vm430_vm1, %v619_v20, %v620_v21  ;;  %v198_v52 = vstv %s664_s19  ;;  %v191_v53 = vmul.f32 %v795_v14, %v951_v38  ;;  %v192_v7 = vmul.f32 %v805_v17, %v957_v40 }
  0xae   :  { %v133_v28 = vpop.permute.xlu1 %132  ;;  %v83_v49 = vmul.f32 %v82_v42, %v60_v41  ;;  %v84_v54 = vmul.f32 %v82_v42, %v61_v3  ;;  %v87_v56 = vmul.f32 %v86_v48, %v60_v41  ;;  %v92_v58 = vmul.f32 %v90_v1, %v61_v3 }
  0xaf   :  { %399 = vrot.lane.b32.xlu0 %v395_v45, %s721_s10  ;;  %v300_v31 = vpop.permute.xlu0 %299  ;;  %v219_v13 = vstv %s665_s20  ;;  %v119_v16 = vsel %vm103_vm3, %v116_v24, %v118_v26  ;;  %v199_v62 = vmul.f32 %v198_v52, %v189_v4  ;;  %v134_v14 = vsel %vm103_vm3, %v131_v27, %v133_v28 }
  0xb0   :  { %376 = vrot.lane.b32.xlu1 %v373_v47, %s721_s10  ;;  %v104_v47 = vsel %vm103_vm3, %v100_v23, %v102_v25  ;;  %v200_v17 = vmul.f32 %v198_v52, %v190_v5  ;;  %v201_v63 = vmul.f32 %v198_v52, %v191_v53  ;;  %v202_v0 = vmul.f32 %v198_v52, %v192_v7 }
  0xb1   :  { %v107_v60 = vadd.f32 %v104_v47, %v83_v49  ;;  %v220_v8 = vmul.f32 %v219_v13, %v189_v4  ;;  %v222_v9 = vmul.f32 %v219_v13, %v191_v53  ;;  %v986_v11 = vadd.f32 %v133_v28, %v92_v58 }
  0xb2   :  { %v934_v30 = vpop.permute.xlu1 %276  ;;  %v221_v12 = vmul.f32 %v219_v13, %v190_v5  ;;  %v239_v15 = vstv %s967_s1  ;;  %v209_v24 = vrot.slane %v201_v63, 1  ;;  %v223_v27 = vmul.f32 %v219_v13, %v192_v7 }
  0xb3   :  { %572 = vrot.lane.b32.xlu0 %v568_v55, %s721_s10  ;;  %v938_v33 = vpop.permute.xlu0 %324  ;;  %v88_v55 = vmul.f32 %v86_v48, %v61_v3  ;;  %v228_v28 = vrot.slane %v220_v8, 1  ;;  %v229_v36 = vrot.slane %v222_v9, 1  ;;  %v242_v42 = vmul.f32 %v239_v15, %v191_v53 }
  0xb4   :  { %401 = vrot.lane.b32.xlu1 %v398_v57, %s721_s10  ;;  %v91_v57 = vmul.f32 %v90_v1, %v60_v41  ;;  %v240_v41 = vmul.f32 %v239_v15, %v189_v4  ;;  %v241_v3 = vmul.f32 %v239_v15, %v190_v5  ;;  %v243_v48 = vmul.f32 %v239_v15, %v192_v7 }
  0xb5   :  { %v123_v6 = vadd.f32 %v118_v26, %v88_v55  ;;  %v212_v26 = vrot.slane %v202_v0, 1  ;;  %v421_v47 = vstv %s981_s21  ;;  %v413_v52 = vmul.f32 %v846_v50, %v957_v40 }
  0xb6   :  { %v936_v32 = vpop.permute.xlu1 %301  ;;  %v1009_v4 = vmul.f32 %v839_v44, %v951_v38  ;;  %v232_v7 = vrot.slane %v223_v27, 1  ;;  %v442_v58 = vstv %s984_s22  ;;  %v252_v50 = vrot.slane %v243_v48, 1 }
  0xb7   :  { %597 = vrot.lane.b32.xlu0 %v593_v2, %s721_s10  ;;  %v942_v35 = vpop.permute.xlu0 %497  ;;  %v108_v2 = vadd.f32 %v102_v25, %v84_v54  ;;  %v997_v20 = vsel %vm103_vm3, %v300_v31, %v936_v32  ;;  %v211_v25 = vrot.slane %v200_v17, 1  ;;  %v412_v31 = vmul.f32 %v834_v43, %v951_v38 }
  0xb8   :  { %574 = vrot.lane.b32.xlu1 %v571_v10, %s721_s10  ;;  %v122_v10 = vadd.f32 %v119_v16, %v87_v56  ;;  %v415_v43 = vmul.f32 %v851_v51, %v957_v40  ;;  %v248_v56 = vrot.slane %v240_v41, 1  ;;  %v251_v16 = vrot.slane %v241_v3, 1 }
  0xb9   :  { %v213_v5 = vsel %vm207_vm0, %v211_v25, %v212_v26  ;;  %v230_v38 = vsel %vm207_vm0, %v228_v28, %v229_v36  ;;  %v424_v17 = vmul.f32 %v421_v47, %v1009_v4  ;;  %v443_v0 = vmul.f32 %v442_v58, %v412_v31 }
  0xba   :  { %v940_v34 = vpop.permute.xlu1 %326  ;;  %v425_v40 = vmul.f32 %v421_v47, %v415_v43  ;;  %v445_v28 = vmul.f32 %v442_v58, %v1009_v4 }
  0xbb   :  { %622 = vrot.lane.b32.xlu0 %v618_v18, %s721_s10  ;;  %v953_v39 = vpop.permute.xlu0 %522  ;;  %v989_v18 = vadd.f32 %v134_v14, %v91_v57  ;;  %v249_v57 = vrot.slane %v242_v42, 1  ;;  %v423_v14 = vmul.f32 %v421_v47, %v413_v52  ;;  %v432_v26 = vrot.slane %v424_v17, 2 }
  0xbc   :  { %599 = vrot.lane.b32.xlu1 %v596_v19, %s721_s10  ;;  %v993_v19 = vsel %vm103_vm3, %v275_v29, %v934_v30  ;;  %v231_v29 = vrot.slane %v221_v12, 1  ;;  %v462_v12 = vstv %s999_s23  ;;  %v435_v41 = vrot.slane %v425_v40, 2 }
  0xbd   :  { %v250_v9 = vsel %vm207_vm0, %v248_v56, %v249_v57  ;;  %v434_v27 = vrot.slane %v423_v14, 2  ;;  %v446_v42 = vmul.f32 %v442_v58, %v415_v43  ;;  %v452_v56 = vrot.slane %v445_v28, 2 }
  0xbe   :  { %v947_v37 = vpop.permute.xlu1 %499  ;;  %v233_v63 = vsel %vm207_vm0, %v231_v29, %v232_v7  ;;  %v451_v29 = vrot.slane %v443_v0, 2  ;;  %v464_v57 = vmul.f32 %v462_v12, %v413_v52 }
  0xbf   :  { %v965_v46 = vpop.permute.xlu0 %547 }
  0xc0   :  { %624 = vrot.lane.b32.xlu1 %v621_v22, %s721_s10  ;;  %v208_v22 = vrot.slane %v199_v62, 1  ;;  %v453_v14 = vsel %vm430_vm1, %v451_v29, %v452_v56  ;;  %v474_v17 = vrot.slane %v464_v57, 2 }
  0xc2   :  { %v961_v45 = vpop.permute.xlu1 %524  ;;  %v210_v53 = vsel %vm207_vm0, %v208_v22, %v209_v24 }
  0xc6   :  { %v978_v59 = vpop.permute.xlu1 %549 }
 0x10d   :  { %v146_v61 = vpop.permute.xlu0 %145 }
 0x111   :  { %v162_v21 = vpop.permute.xlu0 %161 }
 0x112   :  { %v148_v23 = vpop.permute.xlu1 %147 }
 0x113   :  { %v150_v49 = vsel %vm149_vm4, %v146_v61, %v148_v23  ;;  %v154_v55 = vadd.f32 %v148_v23, %v108_v2  ;;  %v422_v61 = vmul.f32 %v421_v47, %v412_v31  ;;  %v444_v2 = vmul.f32 %v442_v58, %v413_v52 }
 0x114   :  { %v153_v13 = vadd.f32 %v150_v49, %v107_v60 }
 0x115   :  { %v177_v1 = vpop.permute.xlu0 %176  ;;  %v217_v8 = vadd.f32 %v213_v5, %v154_v55  ;;  %v431_v23 = vrot.slane %v422_v61, 2  ;;  %v463_v5 = vmul.f32 %v462_v12, %v412_v31  ;;  %v465_v31 = vmul.f32 %v462_v12, %v1009_v4 }
 0x116   :  { %v164_v54 = vpop.permute.xlu1 %163  ;;  %v216_v15 = vadd.f32 %v210_v53, %v153_v13  ;;  %v455_v13 = vrot.slane %v446_v42, 2  ;;  %v328_v61 = vsel %vm103_vm3, %v938_v33, %v940_v34 }
 0x117   :  { %v165_v44 = vsel %vm149_vm4, %v162_v21, %v164_v54  ;;  %v169_v60 = vadd.f32 %v164_v54, %v123_v6  ;;  %v253_v21 = vsel %vm207_vm0, %v251_v16, %v252_v50  ;;  %v454_v6 = vrot.slane %v444_v2, 2 }
 0x118   :  { %v168_v22 = vadd.f32 %v165_v44, %v122_v10  ;;  %v282_v10 = vadd.f32 %v934_v30, %v217_v8  ;;  %v281_v53 = vadd.f32 %v993_v19, %v216_v15  ;;  %v433_v7 = vsel %vm430_vm1, %v431_v23, %v432_v26 }
 0x119   :  { %v350_v62 = vpop.permute.xlu0 %349  ;;  %v237_v3 = vadd.f32 %v233_v63, %v169_v60  ;;  %v466_v16 = vmul.f32 %v462_v12, %v415_v43  ;;  %v472_v2 = vrot.slane %v465_v31, 2  ;;  %v501_v8 = vsel %vm103_vm3, %v942_v35, %v947_v37 }
 0x11a   :  { %v179_v51 = vpop.permute.xlu1 %178  ;;  %v236_v47 = vadd.f32 %v230_v38, %v168_v22  ;;  %v632_v15 = vstv %s1031_s24 }
 0x11b   :  { %v180_v24 = vsel %vm149_vm4, %v177_v1, %v179_v51  ;;  %v184_v48 = vadd.f32 %v179_v51, %v986_v11  ;;  %v436_v11 = vsel %vm430_vm1, %v434_v27, %v435_v41  ;;  %v475_v4 = vrot.slane %v466_v16, 2 }
 0x11c   :  { %v183_v1 = vadd.f32 %v180_v24, %v989_v18  ;;  %v307_v18 = vadd.f32 %v936_v32, %v237_v3  ;;  %v306_v44 = vadd.f32 %v997_v20, %v236_v47  ;;  %v456_v32 = vsel %vm430_vm1, %v454_v6, %v455_v13 }
 0x11d   :  { %v375_v25 = vpop.permute.xlu0 %374  ;;  %v257_v50 = vadd.f32 %v253_v21, %v184_v48  ;;  %v471_v20 = vrot.slane %v463_v5, 2  ;;  %v476_v24 = vsel %vm430_vm1, %v474_v17, %v475_v4  ;;  %v636_v48 = vstv %s1043_s25 }
 0x11e   :  { %v352_v36 = vpop.permute.xlu1 %351  ;;  %v256_v52 = vadd.f32 %v250_v9, %v183_v1 }
 0x11f   :  { %v353_v49 = vsel %vm149_vm4, %v350_v62, %v352_v36  ;;  %v357_v54 = vadd.f32 %v352_v36, %v282_v10  ;;  %v332_v33 = vadd.f32 %v940_v34, %v257_v50  ;;  %v473_v26 = vsel %vm430_vm1, %v471_v20, %v472_v2 }
 0x120   :  { %v356_v58 = vadd.f32 %v353_v49, %v281_v53  ;;  %v331_v60 = vadd.f32 %v328_v61, %v256_v52 }
 0x121   :  { %v400_v55 = vpop.permute.xlu0 %399  ;;  %v440_v38 = vadd.f32 %v436_v11, %v357_v54 }
 0x122   :  { %v377_v30 = vpop.permute.xlu1 %376  ;;  %v439_v43 = vadd.f32 %v433_v7, %v356_v58 }
 0x123   :  { %v378_v19 = vsel %vm149_vm4, %v375_v25, %v377_v30  ;;  %v382_v62 = vadd.f32 %v377_v30, %v307_v18  ;;  %v505_v22 = vadd.f32 %v947_v37, %v440_v38  ;;  %v526_v37 = vsel %vm103_vm3, %v953_v39, %v961_v45 }
 0x124   :  { %v381_v63 = vadd.f32 %v378_v19, %v306_v44  ;;  %v504_v25 = vadd.f32 %v501_v8, %v439_v43 }
 0x125   :  { %v573_v51 = vpop.permute.xlu0 %572  ;;  %v460_v9 = vadd.f32 %v456_v32, %v382_v62 }
 0x126   :  { %v402_v40 = vpop.permute.xlu1 %401  ;;  %v459_v21 = vadd.f32 %v453_v14, %v381_v63 }
 0x127   :  { %v403_v0 = vsel %vm149_vm4, %v400_v55, %v402_v40  ;;  %v407_v12 = vadd.f32 %v402_v40, %v332_v33  ;;  %v530_v29 = vadd.f32 %v961_v45, %v460_v9  ;;  %v551_v45 = vsel %vm103_vm3, %v965_v46, %v978_v59 }
 0x128   :  { %v406_v23 = vadd.f32 %v403_v0, %v331_v60  ;;  %v529_v49 = vadd.f32 %v526_v37, %v459_v21  ;;  %v640_v55 = vstv %s1053_s26 }
 0x129   :  { %v598_v28 = vpop.permute.xlu0 %597  ;;  %v480_v41 = vadd.f32 %v476_v24, %v407_v12 }
 0x12a   :  { %v575_v34 = vpop.permute.xlu1 %574  ;;  %v479_v6 = vadd.f32 %v473_v26, %v406_v23 }
 0x12b   :  { %v576_v27 = vsel %vm149_vm4, %v573_v51, %v575_v34  ;;  %v580_v35 = vadd.f32 %v575_v34, %v505_v22  ;;  %v555_v5 = vadd.f32 %v978_v59, %v480_v41 }
 0x12c   :  { %v579_v36 = vadd.f32 %v576_v27, %v504_v25  ;;  %v554_v57 = vadd.f32 %v551_v45, %v479_v6 }
 0x12d   :  { %v634_v42 = vadd.f32 %v632_v15, %v580_v35  ;;  %v623_v54 = vpop.permute.xlu0 %622 }
 0x12e   :  { %v633_v3 = vadd.f32 %v632_v15, %v579_v36  ;;  %v600_v10 = vpop.permute.xlu1 %599 }
 0x12f   :  { %645 = vst.msk [vmem:[%s1095_s5 + $0x8] sm:$0xff] %vm644_vm5, %v634_v42  ;;  %v601_v47 = vsel %vm149_vm4, %v598_v28, %v600_v10  ;;  %v605_v1 = vadd.f32 %v600_v10, %v530_v29 }
 0x130   :  { %643 = vst [vmem:[%s1095_s5] sm:$0xff] %v633_v3  ;;  %v604_v39 = vadd.f32 %v601_v47, %v529_v49 }
 0x131   :  { %v638_v53 = vadd.f32 %v636_v48, %v605_v1 }
 0x132   :  { %v637_v7 = vadd.f32 %v636_v48, %v604_v39  ;;  %v625_v56 = vpop.permute.xlu1 %624 }
 0x133   :  { %647 = vst.msk [vmem:[%s1095_s5 + $0x18] sm:$0xff] %vm644_vm5, %v638_v53  ;;  %v626_v58 = vsel %vm149_vm4, %v623_v54, %v625_v56  ;;  %v630_v11 = vadd.f32 %v625_v56, %v555_v5 }
 0x134   :  { %646 = vst [vmem:[%s1095_s5 + $0x10] sm:$0xff] %v637_v7  ;;  %v629_v46 = vadd.f32 %v626_v58, %v554_v57 }
 0x135   :  { %v642_v30 = vadd.f32 %v640_v55, %v630_v11 }
 0x136   :  { %v641_v59 = vadd.f32 %v640_v55, %v629_v46 }
 0x137   :  { %649 = vst.msk [vmem:[%s1095_s5 + $0x28] sm:$0xff] %vm644_vm5, %v642_v30 }
 0x138   :  { %648 = vst [vmem:[%s1095_s5 + $0x20] sm:$0xff] %v641_v59 }
 0x139   :  { %654 = vsyncpa [#allocation3], 1 }
 0x13a   :  { %655 = vsyncpa [#allocation5], 1 }

// kernel: parallel_model_forward.9
= control target key start
LH: loop header
LB: loop body
LE: loop exit
PB: predicated region body
PF: predicated region fallthrough
CT: control target
= control target key end

     0   :  { %10 = vsyncpa [#allocation3], 0  ;;  %s2002_s0 = inlined_call_operand.vmem [shape: f32[10,386], index: 0, kind: input, shape index: {}]   ;;  %s2003_s1 = inlined_call_operand.vmem [shape: f32[1,384], index: 1, kind: input, shape index: {}]   ;;  %s2004_s2 = inlined_call_operand.vmem [shape: f32[1,384], index: 2, kind: input, shape index: {}]   ;;  %s2005_s3 = inlined_call_operand.vmem [shape: f32[27], index: 3, kind: input, shape index: {}]   ;;  %s2006_s4 = inlined_call_operand.vmem [shape: f32[3], index: 4, kind: input, shape index: {}]   ;;  %s2007_s5 = inlined_call_operand.vmem [shape: f32[3,8,384], index: 5, kind: output, shape index: {}]  }
   0x1   :  { %s24_s20 = sshll.u32 %s2005_s3, 4  ;;  %s25_s20 = int_to_ptr.vmem [resolvable:$true] %s24_s20 }
   0x2   :  { %11 = vsyncpa [#allocation5], 0  ;;  %s34_s23 = sshll.u32 %s2006_s4, 4  ;;  %s1130_s24 = scalar_lea.vmem %s25_s20, 16  ;;  %s35_s23 = int_to_ptr.vmem [resolvable:$true] %s34_s23 }
   0x3   :  { %p1131_p0 = scmp.ne.s32.totalorder %s25_s20, %s1130_s24  ;;  %p1135_p1 = scmp.lt.s32.totalorder %s25_s20, %s25_s20 }
   0x4   :  { %p1136_p2 = scmp.lt.s32.totalorder %s1130_s24, %s1130_s24 }
   0x6   :  { %p1137_p3 = por %p1136_p2, %p1135_p1 }
   0x8   :  { %p1138_p4 = pnand %p1137_p3, %p1131_p0 }
   0xa   :  { %1141 = shalt.err (!%p1138_p4)
}
   0xb   :  { %s1158_s25 = smov [#allocation2]   ;;  %s1142_s26 = scalar_lea.vmem %s35_s23, 16 }
   0xc   :  { %27 = dma.vmem_to_smem %s25_s20, 16, %s1158_s25, [#allocation3]  }
   0xd   :  { %p1143_p5 = scmp.ne.s32.totalorder %s35_s23, %s1142_s26  ;;  %p1147_p6 = scmp.lt.s32.totalorder %s35_s23, %s35_s23 }
   0xe   :  { %p1148_p7 = scmp.lt.s32.totalorder %s1142_s26, %s1142_s26 }
  0x10   :  { %p1149_p8 = por %p1148_p7, %p1147_p6 }
  0x12   :  { %p1150_p9 = pnand %p1149_p8, %p1143_p5 }
  0x14   :  { %1153 = shalt.err (!%p1150_p9)
}
  0x15   :  { %s1159_s3 = smov [#allocation4]  }
  0x16   :  { %37 = dma.vmem_to_smem %s35_s23, 16, %s1159_s3, [#allocation5]  }
  0x17   :  { %1154 = dma.done.wait [#allocation3], 16  }
  0x18   :  { %1155 = vsyncadd [#allocation3], 4294967280 }
  0x19   :  { %1156 = dma.done.wait [#allocation5], 16  }
  0x1a   :  { %1157 = vsyncadd [#allocation5], 4294967280 }
  0x1b   :  { %44 = sfence }
  0x1c   :  { %v51_v0 = vlaneseq  ;;  %s1095_s4 = sld [smem:[#allocation2 + $0x1]]  ;;  %v46_v2 = vld [vmem:[%s2004_s2] sm:$0x7]  ;;  %s1096_s6 = sld [smem:[#allocation2 + $0xa]]  ;;  %v1222_v12 = vld [vmem:[%s2002_s0 + $0x10] sm:$0xff]  ;;  %v1227_v13 = vld [vmem:[%s2002_s0 + $0x8] sm:$0xff] }
  0x1d   :  { %v1210_v6 = vld [vmem:[%s2002_s0] sm:$0xff]  ;;  %s1160_s2 = smov 2   ;;  %s1161_s11 = smov 127   ;;  %v1235_v17 = vld [vmem:[%s2002_s0 + $0x18] sm:$0xff]  ;;  %v1262_v28 = vld [vmem:[%s2002_s0 + $0x10] sm:$0xfe] }
  0x1e   :  { %v1199_v1 = vshrl.u32 %v51_v0, 7  ;;  %s1097_s14 = sld [smem:[#allocation2 + $0x13]]  ;;  %s1104_s15 = sld [smem:[#allocation2 + $0x4]]  ;;  %v1248_v23 = vld [vmem:[%s2002_s0] sm:$0xfe]  ;;  %vm315_vm0 = vcmask 1046528  }
  0x1f   :  { %s1105_s16 = sld [smem:[#allocation2 + $0xd]]  ;;  %v1253_v24 = vld [vmem:[%s2002_s0 + $0x20] sm:$0x1]  ;;  %v1267_v29 = vld [vmem:[%s2002_s0 + $0x30] sm:$0x1]  ;;  %s1106_s27 = sld [smem:[#allocation2 + $0x16]] }
  0x20   :  { %v61_v3 = vsub.s32 2, %v1199_v1  ;;  %v53_v4 = vsub.s32 0, %v1199_v1  ;;  %v57_v5 = vsub.s32 1, %v1199_v1  ;;  %v1274_v32 = vld [vmem:[%s2002_s0 + $0x8] sm:$0xfe]  ;;  %s1341_s12 = sld [smem:[#allocation2 + $0x10]] }
  0x21   :  { %2010 = vst [vmem:[#allocation8_spill] sm:$0xff] %v1274_v32  ;;  %v1279_v33 = vld [vmem:[%s2002_s0 + $0x28] sm:$0x1]  ;;  %v1292_v43 = vld [vmem:[%s2002_s0 + $0x18] sm:$0xfe]  ;;  %vm707_vm1 = vcmask 1045504  }
  0x22   :  { %v82_v7 = vrot.slane %v46_v2, %v61_v3  ;;  %v74_v8 = vrot.slane %v46_v2, %v53_v4  ;;  %v116_v9 = vstv %s1095_s4  ;;  %v78_v10 = vrot.slane %v46_v2, %v57_v5  ;;  %2011 = vst [vmem:[#allocation9_spill] sm:$0xff] %v1279_v33  ;;  %v1297_v44 = vld [vmem:[%s2002_s0 + $0x38] sm:$0x1]  ;;  %s1115_s23 = sld [smem:[#allocation2 + $0x19]]  ;;  %s1098_s26 = sld [smem:[#allocation2 + $0x2]] }
  0x23   :  { %v117_v11 = vmul.f32 %v116_v9, %v1210_v6  ;;  %v119_v14 = vmul.f32 %v116_v9, %v1222_v12  ;;  %v118_v15 = vmul.f32 %v116_v9, %v1227_v13  ;;  %v144_v16 = vstv %s1096_s6  ;;  %s1099_s3 = sld [smem:[#allocation2 + $0xb]]  ;;  %s1100_s4 = sld [smem:[#allocation2 + $0x14]] }
  0x24   :  { %87 = vrot.lane.b32.xlu1 %v82_v7, %s1160_s2  ;;  %83 = vrot.lane.b32.xlu0 %v74_v8, %s1160_s2  ;;  %v145_v18 = vmul.f32 %v144_v16, %v1210_v6  ;;  %v120_v19 = vmul.f32 %v116_v9, %v1235_v17  ;;  %v147_v20 = vmul.f32 %v144_v16, %v1222_v12  ;;  %v171_v22 = vstv %s1097_s14  ;;  %s1453_s29 = sld [smem:[#allocation2 + $0x5]]  ;;  %s100_s30 = sld [smem:[#allocation2]] }
  0x25   :  { %v146_v21 = vmul.f32 %v144_v16, %v1227_v13  ;;  %v390_v25 = vstv %s1104_s15  ;;  %v172_v26 = vmul.f32 %v171_v22, %v1210_v6  ;;  %v148_v27 = vmul.f32 %v144_v16, %v1235_v17  ;;  %s1455_s6 = sld [smem:[#allocation2 + $0xe]]  ;;  %s1485_s7 = sld [smem:[#allocation2 + $0x8]] }
  0x26   :  { %v391_v30 = vmul.f32 %v390_v25, %v1248_v23  ;;  %v395_v31 = vmul.f32 %v390_v25, %v1253_v24  ;;  %v174_v34 = vmul.f32 %v171_v22, %v1222_v12  ;;  %v393_v35 = vmul.f32 %v390_v25, %v1262_v28  ;;  %s1538_s8 = sld [smem:[#allocation2 + $0x12]]  ;;  %s1682_s9 = sld [smem:[#allocation2 + $0x11]] }
  0x27   :  { %v397_v36 = vmul.f32 %v390_v25, %v1267_v29  ;;  %v173_v37 = vmul.f32 %v171_v22, %v1227_v13  ;;  %v392_v38 = vmul.f32 %v390_v25, %v1274_v32  ;;  %v396_v39 = vmul.f32 %v390_v25, %v1279_v33  ;;  %s1731_s10 = sld [smem:[#allocation2 + $0x1a]]  ;;  %s1102_s13 = sld [smem:[#allocation2 + $0xc]] }
  0x28   :  { %85 = vrot.lane.b32.xlu0 %v78_v10, %s1160_s2  ;;  %125 = vrot.lane.b32.xlu1 %v117_v11, %s1161_s11  ;;  %v437_v40 = vstv %s1105_s16  ;;  %v407_v41 = vrot.slane %v391_v30, 1  ;;  %v408_v42 = vrot.slane %v395_v31, 1  ;;  %v413_v45 = vrot.slane %v393_v35, 1  ;;  %s1113_s2 = sld [smem:[#allocation2 + $0x7]]  ;;  %s1103_s14 = sld [smem:[#allocation2 + $0x15]] }
  0x29   :  { %v414_v46 = vrot.slane %v397_v36, 1  ;;  %v438_v47 = vmul.f32 %v437_v40, %v1248_v23  ;;  %v442_v48 = vmul.f32 %v437_v40, %v1253_v24  ;;  %v175_v49 = vmul.f32 %v171_v22, %v1235_v17  ;;  %v1334_v36 = vld [vmem:[%s2002_s0] sm:$0xfc]  ;;  %s1847_s15 = sld [smem:[#allocation2 + $0x6]]  ;;  %s1866_s16 = sld [smem:[#allocation2 + $0xf]] }
  0x2a   :  { %v410_v50 = vrot.slane %v392_v38, 1  ;;  %v411_v51 = vrot.slane %v396_v39, 1  ;;  %v409_v52 = vsel %vm315_vm0, %v407_v41, %v408_v42  ;;  %v394_v53 = vmul.f32 %v390_v25, %v1292_v43  ;;  %s1112_s19 = sld [smem:[#allocation2 + $0x18]] }
  0x2b   :  { %v398_v54 = vmul.f32 %v390_v25, %v1297_v44  ;;  %v415_v55 = vsel %vm315_vm0, %v413_v45, %v414_v46  ;;  %v454_v56 = vrot.slane %v438_v47, 1  ;;  %v455_v57 = vrot.slane %v442_v48, 1  ;;  %v1352_v47 = vld [vmem:[%s2002_s0 + $0x10] sm:$0xfc]  ;;  %v1357_v48 = vld [vmem:[%s2002_s0 + $0x30] sm:$0x3] }
  0x2c   :  { %129 = vrot.lane.b32.xlu1 %v119_v14, %s1161_s11  ;;  %127 = vrot.lane.b32.xlu0 %v118_v15, %s1161_s11  ;;  %v412_v58 = vsel %vm315_vm0, %v410_v50, %v411_v51  ;;  %v440_v59 = vmul.f32 %v437_v40, %v1262_v28  ;;  %v444_v60 = vmul.f32 %v437_v40, %v1267_v29  ;;  %v484_v61 = vstv %s1106_s27  ;;  %s1120_s27 = sld [smem:[#allocation4 + $0x2]] }
  0x2d   :  { %v416_v62 = vrot.slane %v394_v53, 1  ;;  %v417_v63 = vrot.slane %v398_v54, 1  ;;  %v439_v0 = vmul.f32 %v437_v40, %v1274_v32  ;;  %v443_v2 = vmul.f32 %v437_v40, %v1279_v33  ;;  %v1364_v53 = vld [vmem:[%s2002_s0 + $0x8] sm:$0xfc]  ;;  %v1369_v54 = vld [vmem:[%s2002_s0 + $0x28] sm:$0x3] }
  0x2e   :  { %v485_v7 = vmul.f32 %v484_v61, %v1248_v23  ;;  %v489_v8 = vmul.f32 %v484_v61, %v1253_v24  ;;  %v460_v9 = vrot.slane %v440_v59, 1  ;;  %v461_v10 = vrot.slane %v444_v60, 1 }
  0x2f   :  { %v441_v11 = vmul.f32 %v437_v40, %v1292_v43  ;;  %v445_v14 = vmul.f32 %v437_v40, %v1297_v44  ;;  %v456_v15 = vsel %vm315_vm0, %v454_v56, %v455_v57  ;;  %v418_v16 = vsel %vm315_vm0, %v416_v62, %v417_v63 }
  0x30   :  { %153 = vrot.lane.b32.xlu1 %v145_v18, %s1161_s11  ;;  %131 = vrot.lane.b32.xlu0 %v120_v19, %s1161_s11  ;;  %v457_v18 = vrot.slane %v439_v0, 1  ;;  %v458_v19 = vrot.slane %v443_v2, 1  ;;  %v487_v22 = vmul.f32 %v484_v61, %v1262_v28  ;;  %v462_v25 = vsel %vm315_vm0, %v460_v9, %v461_v10  ;;  %v1382_v2 = vld [vmem:[%s2002_s0 + $0x18] sm:$0xfc] }
  0x31   :  { %v491_v30 = vmul.f32 %v484_v61, %v1267_v29  ;;  %v490_v35 = vmul.f32 %v484_v61, %v1279_v33  ;;  %v782_v38 = vstv %s1113_s2  ;;  %v488_v51 = vmul.f32 %v484_v61, %v1292_v43  ;;  %s1457_s2 = sld [smem:[#allocation2 + $0x9]] }
  0x32   :  { %v459_v31 = vsel %vm315_vm0, %v457_v18, %v458_v19  ;;  %v507_v40 = vrot.slane %v487_v22, 1  ;;  %v783_v45 = vmul.f32 %v782_v38, %v1334_v36  ;;  %v789_v56 = vmul.f32 %v782_v38, %v1357_v48 }
  0x33   :  { %v508_v42 = vrot.slane %v491_v30, 1  ;;  %v505_v50 = vrot.slane %v490_v35, 1  ;;  %v784_v59 = vmul.f32 %v782_v38, %v1364_v53  ;;  %v788_v60 = vmul.f32 %v782_v38, %v1369_v54 }
  0x34   :  { %157 = vrot.lane.b32.xlu1 %v147_v20, %s1161_s11  ;;  %155 = vrot.lane.b32.xlu0 %v146_v21, %s1161_s11  ;;  %v501_v20 = vrot.slane %v485_v7, 1  ;;  %v502_v21 = vrot.slane %v489_v8, 1  ;;  %v799_v57 = vrot.slane %v783_v45, 2  ;;  %v510_v63 = vrot.slane %v488_v51, 1  ;;  %v1388_v8 = vld [vmem:[%s2002_s0 + $0x38] sm:$0x3] }
  0x35   :  { %v829_v7 = vstv %s1341_s12  ;;  %v806_v10 = vrot.slane %v789_v56, 2  ;;  %vm89_vm2 = vcmask 15360   ;;  %vm133_vm3 = vcmask 1039360   ;;  %s1101_s12 = sld [smem:[#allocation2 + $0x3]] }
  0x36   :  { %v503_v39 = vsel %vm315_vm0, %v501_v20, %v502_v21  ;;  %v830_v19 = vmul.f32 %v829_v7, %v1334_v36  ;;  %v790_v21 = vmul.f32 %v782_v38, %v1388_v8  ;;  %v833_v45 = vmul.f32 %v829_v7, %v1382_v2 }
  0x37   :  { %v837_v56 = vmul.f32 %v829_v7, %v1388_v8  ;;  %vm215_vm4 = vcmask 1031168  }
  0x38   :  { %180 = vrot.lane.b32.xlu1 %v172_v26, %s1161_s11  ;;  %159 = vrot.lane.b32.xlu0 %v148_v27, %s1161_s11  ;;  %v463_v26 = vrot.slane %v441_v11, 1  ;;  %v464_v27 = vrot.slane %v445_v14, 1  ;;  %v802_v14 = vrot.slane %v784_v59, 2  ;;  %v846_v35 = vrot.slane %v830_v19, 2 }
  0x3a   :  { %v465_v41 = vsel %vm315_vm0, %v463_v26, %v464_v27  ;;  %v836_v26 = vmul.f32 %v829_v7, %v1357_v48 }
  0x3c   :  { %184 = vrot.lane.b32.xlu1 %v174_v34, %s1161_s11  ;;  %182 = vrot.lane.b32.xlu0 %v173_v37, %s1161_s11  ;;  %v486_v34 = vmul.f32 %v484_v61, %v1274_v32  ;;  %v1339_v37 = vld [vmem:[%s2002_s0 + $0x20] sm:$0x3] }
  0x3d   :  { %v787_v46 = vmul.f32 %v782_v38, %v1339_v37  ;;  %v834_v20 = vmul.f32 %v829_v7, %v1339_v37 }
  0x40   :  { %419 = vrot.lane.b32.xlu1 %v409_v52, %s1161_s11  ;;  %186 = vrot.lane.b32.xlu0 %v175_v49, %s1161_s11  ;;  %v504_v49 = vrot.slane %v486_v34, 1  ;;  %v492_v52 = vmul.f32 %v484_v61, %v1297_v44  ;;  %v509_v61 = vsel %vm315_vm0, %v507_v40, %v508_v42  ;;  %v835_v34 = vmul.f32 %v829_v7, %v1369_v54 }
  0x41   :  { %v876_v40 = vstv %s1115_s23  ;;  %v853_v42 = vrot.slane %v836_v26, 2 }
  0x42   :  { %v506_v62 = vsel %vm315_vm0, %v504_v49, %v505_v50  ;;  %v511_v0 = vrot.slane %v492_v52, 1  ;;  %v850_v49 = vrot.slane %v835_v34, 2  ;;  %v877_v50 = vmul.f32 %v876_v40, %v1334_v36 }
  0x43   :  { %v198_v34 = vstv %s1098_s26  ;;  %s1119_s26 = sld [smem:[#allocation4 + $0x1]] }
  0x44   :  { %423 = vrot.lane.b32.xlu1 %v415_v55, %s1161_s11  ;;  %421 = vrot.lane.b32.xlu0 %v412_v58, %s1161_s11  ;;  %v785_v55 = vmul.f32 %v782_v38, %v1352_v47  ;;  %v800_v58 = vrot.slane %v787_v46, 2  ;;  %v512_v18 = vsel %vm315_vm0, %v510_v63, %v511_v0  ;;  %v856_v0 = vrot.slane %v837_v56, 2 }
  0x45   :  { %v1475_v56 = vstv %s1100_s4 }
  0x46   :  { %v805_v9 = vrot.slane %v785_v55, 2  ;;  %v801_v11 = vsel %vm707_vm1, %v799_v57, %v800_v58  ;;  %v881_v55 = vmul.f32 %v876_v40, %v1339_v37  ;;  %v855_v58 = vrot.slane %v833_v45, 2 }
  0x47   :  { %v1447_v45 = vstv %s1099_s3 }
  0x48   :  { %466 = vrot.lane.b32.xlu1 %v456_v15, %s1161_s11  ;;  %425 = vrot.lane.b32.xlu0 %v418_v16, %s1161_s11  ;;  %v803_v15 = vrot.slane %v788_v60, 2  ;;  %v786_v16 = vmul.f32 %v782_v38, %v1382_v2  ;;  %v807_v22 = vsel %vm707_vm1, %v805_v9, %v806_v10  ;;  %v809_v38 = vrot.slane %v790_v21, 2 }
  0x49   :  { %v893_v60 = vrot.slane %v877_v50, 2  ;;  %v894_v63 = vrot.slane %v881_v55, 2  ;;  %v878_v9 = vmul.f32 %v876_v40, %v1364_v53 }
  0x4a   :  { %v804_v27 = vsel %vm707_vm1, %v802_v14, %v803_v15  ;;  %v808_v30 = vrot.slane %v786_v16, 2  ;;  %v880_v14 = vmul.f32 %v876_v40, %v1382_v2  ;;  %v884_v15 = vmul.f32 %v876_v40, %v1388_v8 }
  0x4b   :  { %v895_v16 = vsel %vm707_vm1, %v893_v60, %v894_v63  ;;  %v896_v19 = vrot.slane %v878_v9, 2  ;;  %v101_v9 = vstv %s100_s30 }
  0x4c   :  { %470 = vrot.lane.b32.xlu1 %v462_v25, %s1161_s11  ;;  %468 = vrot.lane.b32.xlu0 %v459_v31, %s1161_s11  ;;  %v832_v25 = vmul.f32 %v829_v7, %v1352_v47  ;;  %v831_v31 = vmul.f32 %v829_v7, %v1364_v53  ;;  %v810_v52 = vsel %vm707_vm1, %v808_v30, %v809_v38  ;;  %v903_v26 = vrot.slane %v884_v15, 2 }
  0x4d   :  { %v882_v7 = vmul.f32 %v876_v40, %v1369_v54 }
  0x4e   :  { %v849_v46 = vrot.slane %v831_v31, 2 }
  0x50   :  { %513 = vrot.lane.b32.xlu1 %v503_v39, %s1161_s11  ;;  %472 = vrot.lane.b32.xlu0 %v465_v41, %s1161_s11  ;;  %v847_v39 = vrot.slane %v834_v20, 2  ;;  %v852_v41 = vrot.slane %v832_v25, 2  ;;  %v851_v59 = vsel %vm707_vm1, %v849_v46, %v850_v49  ;;  %v897_v20 = vrot.slane %v882_v7, 2 }
  0x51   :  { %v902_v25 = vrot.slane %v880_v14, 2 }
  0x52   :  { %v848_v51 = vsel %vm707_vm1, %v846_v35, %v847_v39  ;;  %v854_v57 = vsel %vm707_vm1, %v852_v41, %v853_v42  ;;  %v45_v41 = vld [vmem:[%s2003_s1] sm:$0x7]  ;;  %s1109_s1 = sld [smem:[#allocation2 + $0x17]] }
  0x54   :  { %517 = vrot.lane.b32.xlu1 %v509_v61, %s1161_s11  ;;  %515 = vrot.lane.b32.xlu0 %v506_v62, %s1161_s11  ;;  %v879_v61 = vmul.f32 %v876_v40, %v1352_v47  ;;  %v883_v62 = vmul.f32 %v876_v40, %v1357_v48 }
  0x56   :  { %v899_v10 = vrot.slane %v879_v61, 2 }
  0x58   :  { %811 = vrot.lane.b32.xlu1 %v801_v11, %s1161_s11  ;;  %519 = vrot.lane.b32.xlu0 %v512_v18, %s1161_s11  ;;  %v900_v11 = vrot.slane %v883_v62, 2  ;;  %v857_v18 = vsel %vm707_vm1, %v855_v58, %v856_v0  ;;  %v1481_v58 = vrot.slane %v45_v41, %v61_v3 }
  0x5a   :  { %v901_v21 = vsel %vm707_vm1, %v899_v10, %v900_v11  ;;  %v1509_v7 = vmul.f32 %v1481_v58, %v1222_v12  ;;  %v1517_v10 = vstv %s1455_s6  ;;  %v106_v11 = vstv %s1457_s2 }
  0x5c   :  { %815 = vrot.lane.b32.xlu1 %v807_v22, %s1161_s11  ;;  %813 = vrot.lane.b32.xlu0 %v804_v27, %s1161_s11  ;;  %v898_v22 = vsel %vm707_vm1, %v896_v19, %v897_v20  ;;  %v904_v27 = vsel %vm707_vm1, %v902_v25, %v903_v26  ;;  %v104_v26 = vmul.f32 %v101_v9, %v1509_v7 }
  0x60   :  { %858 = vrot.lane.b32.xlu1 %v848_v51, %s1161_s11  ;;  %817 = vrot.lane.b32.xlu0 %v810_v52, %s1161_s11  ;;  %v1467_v51 = vrot.slane %v45_v41, %v57_v5 }
  0x62   :  { %v1499_v61 = vmul.f32 %v1467_v51, %v1227_v13 }
  0x64   :  { %862 = vrot.lane.b32.xlu1 %v854_v57, %s1161_s11  ;;  %860 = vrot.lane.b32.xlu0 %v851_v59, %s1161_s11  ;;  %v103_v20 = vmul.f32 %v101_v9, %v1499_v61 }
  0x68   :  { %905 = vrot.lane.b32.xlu1 %v895_v16, %s1161_s11  ;;  %864 = vrot.lane.b32.xlu0 %v857_v18, %s1161_s11 }
  0x6c   :  { %909 = vrot.lane.b32.xlu1 %v901_v21, %s1161_s11  ;;  %907 = vrot.lane.b32.xlu0 %v898_v22, %s1161_s11 }
  0x70   :  { %911 = vrot.lane.b32.xlu0 %v904_v27, %s1161_s11  ;;  %s1162_s11 = smov 126  }
  0x96   :  { %v1436_v30 = vpop.permute.xlu1 %87  ;;  %v1438_v31 = vpop.permute.xlu0 %83 }
  0x97   :  { %v99_v35 = vmul.f32 %v1436_v30, %v1235_v17  ;;  %v96_v39 = vmul.f32 %v1438_v31, %v1210_v6  ;;  %v1461_v17 = vrot.slane %v45_v41, %v53_v4  ;;  %v293_v0 = vmul.f32 %v1248_v23, %v1438_v31 }
  0x98   :  { %v296_v16 = vmul.f32 %v1292_v43, %v1436_v30  ;;  %v300_v18 = vmul.f32 %v1297_v44, %v1436_v30  ;;  %v1534_v43 = vstv %s1485_s7 }
  0x99   :  { %v202_v38 = vmul.f32 %v198_v34, %v99_v35  ;;  %v199_v40 = vmul.f32 %v198_v34, %v96_v39  ;;  %v230_v49 = vmul.f32 %v1447_v45, %v99_v35  ;;  %v227_v50 = vmul.f32 %v1447_v45, %v96_v39 }
  0x9a   :  { %v86_v42 = vpop.permute.xlu0 %85  ;;  %v1449_v46 = vpop.permute.xlu1 %125  ;;  %v257_v60 = vmul.f32 %v1475_v56, %v99_v35  ;;  %v254_v1 = vmul.f32 %v1475_v56, %v96_v39  ;;  %v1495_v3 = vmul.f32 %v1461_v17, %v1210_v6  ;;  %v297_v6 = vmul.f32 %v1253_v24, %v1438_v31 }
  0x9b   :  { %213 = vrot.lane.b32.xlu0 %v202_v38, %s1162_s11  ;;  %207 = vrot.lane.b32.xlu1 %v199_v40, %s1162_s11  ;;  %v1470_v52 = vsel %vm89_vm2, %v1438_v31, %v86_v42  ;;  %v1473_v55 = vsel %vm89_vm2, %v86_v42, %v1436_v30  ;;  %v108_v35 = vmul.f32 %v106_v11, %v1499_v61 }
  0x9c   :  { %v97_v5 = vmul.f32 %v1470_v52, %v1227_v13  ;;  %v98_v59 = vmul.f32 %v1473_v55, %v1222_v12  ;;  %v1514_v13 = vstv %s1453_s29  ;;  %v1524_v12 = vstv %s1109_s1 }
  0x9d   :  { %v102_v19 = vmul.f32 %v101_v9, %v1495_v3  ;;  %v532_v25 = vmul.f32 %v1514_v13, %v293_v0  ;;  %v107_v44 = vmul.f32 %v106_v11, %v1495_v3  ;;  %v536_v27 = vmul.f32 %v1514_v13, %v297_v6 }
  0x9e   :  { %v1477_v57 = vpop.permute.xlu1 %129  ;;  %v128_v4 = vpop.permute.xlu0 %127  ;;  %v201_v14 = vmul.f32 %v198_v34, %v98_v59  ;;  %v200_v15 = vmul.f32 %v198_v34, %v97_v5  ;;  %v1543_v34 = vmul.f32 %v1334_v36, %v1438_v31  ;;  %v1547_v39 = vmul.f32 %v106_v11, %v1509_v7 }
  0x9f   :  { %241 = vrot.lane.b32.xlu0 %v230_v49, %s1162_s11  ;;  %235 = vrot.lane.b32.xlu1 %v227_v50, %s1162_s11  ;;  %v229_v38 = vmul.f32 %v1447_v45, %v98_v59  ;;  %v228_v40 = vmul.f32 %v1447_v45, %v97_v5  ;;  %v535_v41 = vmul.f32 %v1514_v13, %v296_v16 }
  0xa0   :  { %v1554_v42 = vmul.f32 %v1339_v37, %v1438_v31  ;;  %v1558_v49 = vmul.f32 %v1274_v32, %v1470_v52  ;;  %v1562_v36 = vmul.f32 %v1262_v28, %v1473_v55  ;;  %v539_v50 = vmul.f32 %v1514_v13, %v300_v18 }
  0xa1   :  { %v1571_v37 = vmul.f32 %v1279_v33, %v1470_v52  ;;  %v548_v31 = vrot.slane %v532_v25, 1  ;;  %v135_v9 = vsel %vm133_vm3, %v128_v4, %v1477_v57  ;;  %v256_v33 = vmul.f32 %v1475_v56, %v98_v59 }
  0xa2   :  { %v1501_v62 = vpop.permute.xlu1 %153  ;;  %v132_v63 = vpop.permute.xlu0 %131  ;;  %v1581_v32 = vadd.f32 %v135_v9, %v103_v20  ;;  %v1595_v9 = vmul.f32 %v1267_v29, %v1473_v55 }
  0xa3   :  { %268 = vrot.lane.b32.xlu0 %v257_v60, %s1162_s11  ;;  %262 = vrot.lane.b32.xlu1 %v254_v1, %s1162_s11  ;;  %v134_v60 = vsel %vm133_vm3, %v1449_v46, %v128_v4  ;;  %v579_v46 = vmul.f32 %v1517_v10, %v293_v0  ;;  %v136_v25 = vsel %vm133_vm3, %v1477_v57, %v132_v63  ;;  %v557_v4 = vrot.slane %v535_v41, 1 }
  0xa4   :  { %v1577_v11 = vadd.f32 %v134_v60, %v102_v19  ;;  %2013 = vst [vmem:[#allocation11_spill] sm:$0xff] %v1581_v32  ;;  %v558_v19 = vrot.slane %v539_v50, 1  ;;  %v1589_v60 = vadd.f32 %v136_v25, %v104_v26  ;;  %v630_v57 = vmul.f32 %v1524_v12, %v297_v6 }
  0xa5   :  { %v595_v63 = vrot.slane %v579_v46, 1  ;;  %v629_v25 = vmul.f32 %v1524_v12, %v296_v16  ;;  %v633_v32 = vmul.f32 %v1524_v12, %v300_v18 }
  0xa6   :  { %v1528_v21 = vpop.permute.xlu1 %157  ;;  %v156_v22 = vpop.permute.xlu0 %155  ;;  %2012 = vst [vmem:[#allocation10_spill] sm:$0xff] %v1577_v11  ;;  %2014 = vst [vmem:[#allocation12_spill] sm:$0xff] %v1589_v60 }
  0xa7   :  { %211 = vrot.lane.b32.xlu1 %v201_v14, %s1162_s11  ;;  %209 = vrot.lane.b32.xlu0 %v200_v15, %s1162_s11  ;;  %v549_v14 = vrot.slane %v536_v27, 1  ;;  %v583_v15 = vmul.f32 %v1517_v10, %v297_v6  ;;  %v586_v27 = vmul.f32 %v1517_v10, %v300_v18  ;;  %v161_v41 = vsel %vm133_vm3, %v1501_v62, %v156_v22 }
  0xa8   :  { %v1610_v6 = vadd.f32 %v161_v41, %v107_v44  ;;  %v924_v44 = vmul.f32 %v1534_v43, %v1543_v34 }
  0xa9   :  { %v550_v59 = vsel %vm315_vm0, %v548_v31, %v549_v14  ;;  %v596_v26 = vrot.slane %v583_v15, 1 }
  0xaa   :  { %v1567_v45 = vpop.permute.xlu1 %180  ;;  %v160_v1 = vpop.permute.xlu0 %159 }
  0xab   :  { %239 = vrot.lane.b32.xlu1 %v229_v38, %s1162_s11  ;;  %237 = vrot.lane.b32.xlu0 %v228_v40, %s1162_s11  ;;  %v255_v38 = vmul.f32 %v1475_v56, %v97_v5  ;;  %v582_v40 = vmul.f32 %v1517_v10, %v296_v16  ;;  %v626_v56 = vmul.f32 %v1524_v12, %v293_v0  ;;  %v111_v5 = vstv %s1538_s8 }
  0xac   :  { %v559_v0 = vsel %vm315_vm0, %v557_v4, %v558_v19  ;;  %v643_v16 = vrot.slane %v630_v57, 1  ;;  %v112_v18 = vmul.f32 %v111_v5, %v1495_v3  ;;  %v597_v46 = vsel %vm315_vm0, %v595_v63, %v596_v26 }
  0xad   :  { %v604_v50 = vrot.slane %v582_v40, 1  ;;  %v642_v62 = vrot.slane %v626_v56, 1  ;;  %v163_v15 = vsel %vm133_vm3, %v1528_v21, %v160_v1  ;;  %v651_v40 = vrot.slane %v629_v25, 1 }
  0xae   :  { %v1591_v11 = vpop.permute.xlu1 %184  ;;  %v183_v20 = vpop.permute.xlu0 %182  ;;  %v652_v4 = vrot.slane %v633_v32, 1  ;;  %v533_v19 = vmul.f32 %v1514_v13, %v1558_v49  ;;  %v1630_v3 = vadd.f32 %v163_v15, %v1547_v39  ;;  %v534_v56 = vmul.f32 %v1514_v13, %v1562_v36 }
  0xaf   :  { %266 = vrot.lane.b32.xlu1 %v256_v33, %s1162_s11  ;;  %264 = vrot.lane.b32.xlu0 %v255_v38, %s1162_s11  ;;  %v162_v33 = vsel %vm133_vm3, %v156_v22, %v1528_v21  ;;  %v605_v38 = vrot.slane %v586_v27, 1  ;;  %v113_v22 = vmul.f32 %v111_v5, %v1499_v61  ;;  %v537_v27 = vmul.f32 %v1514_v13, %v1571_v37 }
  0xb0   :  { %v1612_v60 = vadd.f32 %v162_v33, %v108_v35  ;;  %v928_v35 = vmul.f32 %v1534_v43, %v1554_v42  ;;  %v538_v57 = vmul.f32 %v1514_v13, %v1595_v9  ;;  %v580_v32 = vmul.f32 %v1517_v10, %v1558_v49 }
  0xb1   :  { %v606_v61 = vsel %vm315_vm0, %v604_v50, %v605_v38  ;;  %v584_v39 = vmul.f32 %v1517_v10, %v1571_v37  ;;  %v644_v63 = vsel %vm315_vm0, %v642_v62, %v643_v16  ;;  %v940_v26 = vrot.slane %v924_v44, 2 }
  0xb2   :  { %2015 = vst [vmem:[#allocation13_spill] sm:$0xff] %v1612_v60  ;;  %v1614_v31 = vpop.permute.xlu1 %419  ;;  %v187_v14 = vpop.permute.xlu0 %186  ;;  %v941_v41 = vrot.slane %v928_v35, 2  ;;  %v114_v13 = vmul.f32 %v111_v5, %v1509_v7  ;;  %v653_v50 = vsel %vm315_vm0, %v651_v40, %v652_v4  ;;  %v551_v25 = vrot.slane %v533_v19, 1 }
  0xb3   :  { %560 = vrot.lane.b32.xlu1 %v550_v59, %s1162_s11  ;;  %566 = vrot.lane.b32.xlu0 %v559_v0, %s1162_s11  ;;  %v188_v59 = vsel %vm133_vm3, %v1567_v45, %v183_v20  ;;  %v189_v33 = vsel %vm133_vm3, %v183_v20, %v1591_v11  ;;  %v552_v38 = vrot.slane %v537_v27, 1  ;;  %v555_v15 = vrot.slane %v538_v57, 1 }
  0xb4   :  { %v1652_v0 = vadd.f32 %v188_v59, %v112_v18  ;;  %v598_v7 = vrot.slane %v580_v32, 1  ;;  %v599_v5 = vrot.slane %v584_v39, 1  ;;  %v581_v62 = vmul.f32 %v1517_v10, %v1562_v36 }
  0xb5   :  { %v1662_v20 = vmul.f32 %v1364_v53, %v1470_v52  ;;  %v1666_v16 = vmul.f32 %v1352_v47, %v1473_v55  ;;  %v1670_v18 = vmul.f32 %v1369_v54, %v1470_v52  ;;  %v1676_v44 = vmul.f32 %v1357_v48, %v1473_v55 }
  0xb6   :  { %v424_v21 = vpop.permute.xlu1 %423  ;;  %v422_v1 = vpop.permute.xlu0 %421  ;;  %v585_v35 = vmul.f32 %v1517_v10, %v1595_v9  ;;  %v627_v40 = vmul.f32 %v1524_v12, %v1558_v49  ;;  %v942_v52 = vsel %vm707_vm1, %v940_v26, %v941_v41  ;;  %v553_v4 = vsel %vm315_vm0, %v551_v25, %v552_v38 }
  0xb7   :  { %607 = vrot.lane.b32.xlu1 %v597_v46, %s1162_s11  ;;  %613 = vrot.lane.b32.xlu0 %v606_v61, %s1162_s11  ;;  %v554_v46 = vrot.slane %v534_v56, 1  ;;  %v1654_v61 = vadd.f32 %v189_v33, %v113_v22  ;;  %v190_v22 = vsel %vm133_vm3, %v1591_v11, %v187_v14  ;;  %v631_v48 = vmul.f32 %v1524_v12, %v1571_v37 }
  0xb8   :  { %v1684_v47 = vadd.f32 %v190_v22, %v114_v13  ;;  %v600_v10 = vsel %vm315_vm0, %v598_v7, %v599_v5  ;;  %v601_v49 = vrot.slane %v581_v62, 1  ;;  %v1696_v19 = vsel %vm133_vm3, %v1614_v31, %v422_v1 }
  0xb9   :  { %v556_v11 = vsel %vm315_vm0, %v554_v46, %v555_v15  ;;  %v1699_v27 = vsel %vm133_vm3, %v422_v1, %v424_v21  ;;  %v628_v56 = vmul.f32 %v1524_v12, %v1562_v36  ;;  %v632_v37 = vmul.f32 %v1524_v12, %v1595_v9 }
  0xba   :  { %v467_v45 = vpop.permute.xlu1 %466  ;;  %v426_v60 = vpop.permute.xlu0 %425  ;;  %v925_v57 = vmul.f32 %v1534_v43, %v1662_v20  ;;  %v929_v32 = vmul.f32 %v1534_v43, %v1670_v18  ;;  %v602_v39 = vrot.slane %v585_v35, 1  ;;  %v645_v59 = vrot.slane %v627_v40, 1 }
  0xbb   :  { %654 = vrot.lane.b32.xlu1 %v644_v63, %s1162_s11  ;;  %660 = vrot.lane.b32.xlu0 %v653_v50, %s1162_s11  ;;  %v1710_v31 = vsel %vm133_vm3, %v424_v21, %v426_v60  ;;  %v646_v63 = vrot.slane %v631_v48, 1  ;;  %v1717_v36 = vmul.f32 %v1382_v2, %v1436_v30  ;;  %v1721_v12 = vmul.f32 %v1388_v8, %v1436_v30 }
  0xbc   :  { %v648_v21 = vrot.slane %v628_v56, 1  ;;  %v649_v13 = vrot.slane %v632_v37, 1  ;;  %v943_v2 = vrot.slane %v925_v57, 2  ;;  %v944_v50 = vrot.slane %v929_v32, 2 }
  0xbd   :  { %v926_v8 = vmul.f32 %v1534_v43, %v1666_v16  ;;  %v930_v30 = vmul.f32 %v1534_v43, %v1676_v44  ;;  %v970_v25 = vstv %s1682_s9  ;;  %v603_v33 = vsel %vm315_vm0, %v601_v49, %v602_v39 }
  0xbe   :  { %v471_v55 = vpop.permute.xlu1 %470  ;;  %v469_v14 = vpop.permute.xlu0 %468  ;;  %v647_v38 = vsel %vm315_vm0, %v645_v59, %v646_v63  ;;  %v927_v46 = vmul.f32 %v1534_v43, %v1717_v36  ;;  %v931_v15 = vmul.f32 %v1534_v43, %v1721_v12  ;;  %v650_v22 = vsel %vm315_vm0, %v648_v21, %v649_v13 }
  0xbf   :  { %952 = vrot.lane.b32.xlu1 %v942_v52, %s1162_s11  ;;  %562 = vrot.lane.b32.xlu0 %v553_v4, %s1162_s11  ;;  %v1713_v1 = vsel %vm133_vm3, %v467_v45, %v469_v14  ;;  %v1724_v9 = vsel %vm133_vm3, %v469_v14, %v471_v55  ;;  %v945_v35 = vsel %vm707_vm1, %v943_v2, %v944_v50  ;;  %v946_v40 = vrot.slane %v926_v8, 2 }
  0xc0   :  { %v947_v52 = vrot.slane %v930_v30, 2  ;;  %v971_v43 = vmul.f32 %v970_v25, %v1543_v34  ;;  %v975_v4 = vmul.f32 %v970_v25, %v1554_v42  ;;  %v950_v48 = vrot.slane %v931_v15, 2 }
  0xc1   :  { %v976_v14 = vmul.f32 %v970_v25, %v1670_v18  ;;  %v973_v37 = vmul.f32 %v970_v25, %v1666_v16  ;;  %v977_v57 = vmul.f32 %v970_v25, %v1676_v44  ;;  %v1017_v32 = vstv %s1731_s10 }
  0xc2   :  { %v514_v26 = vpop.permute.xlu1 %513  ;;  %v473_v41 = vpop.permute.xlu0 %472  ;;  %v948_v39 = vsel %vm707_vm1, %v946_v40, %v947_v52  ;;  %v987_v59 = vrot.slane %v971_v43, 2  ;;  %v974_v63 = vmul.f32 %v970_v25, %v1717_v36  ;;  %v988_v21 = vrot.slane %v975_v4, 2 }
  0xc3   :  { %564 = vrot.lane.b32.xlu1 %v556_v11, %s1162_s11  ;;  %609 = vrot.lane.b32.xlu0 %v600_v10, %s1162_s11  ;;  %v1729_v60 = vsel %vm133_vm3, %v471_v55, %v473_v41  ;;  %v949_v11 = vrot.slane %v927_v46, 2  ;;  %v972_v55 = vmul.f32 %v970_v25, %v1662_v20  ;;  %v991_v2 = vrot.slane %v976_v14, 2 }
  0xc4   :  { %v994_v46 = vrot.slane %v977_v57, 2  ;;  %v1022_v15 = vmul.f32 %v1017_v32, %v1554_v42  ;;  %v989_v40 = vsel %vm707_vm1, %v987_v59, %v988_v21  ;;  %v1020_v14 = vmul.f32 %v1017_v32, %v1666_v16 }
  0xc5   :  { %v951_v41 = vsel %vm707_vm1, %v949_v11, %v950_v48  ;;  %v990_v13 = vrot.slane %v972_v55, 2 }
  0xc6   :  { %v518_v45 = vpop.permute.xlu1 %517  ;;  %v516_v7 = vpop.permute.xlu0 %515  ;;  %v1035_v48 = vrot.slane %v1022_v15, 2 }
  0xc7   :  { %611 = vrot.lane.b32.xlu1 %v603_v33, %s1162_s11  ;;  %656 = vrot.lane.b32.xlu0 %v647_v38, %s1162_s11  ;;  %v1747_v5 = vsel %vm133_vm3, %v514_v26, %v516_v7  ;;  %v1750_v62 = vsel %vm133_vm3, %v516_v7, %v518_v45  ;;  %v978_v26 = vmul.f32 %v970_v25, %v1721_v12  ;;  %v993_v38 = vrot.slane %v973_v37, 2 }
  0xc8   :  { %v1018_v25 = vmul.f32 %v1017_v32, %v1543_v34  ;;  %v992_v52 = vsel %vm707_vm1, %v990_v13, %v991_v2  ;;  %v1025_v37 = vmul.f32 %v1017_v32, %v1721_v12 }
  0xc9   :  { %v997_v7 = vrot.slane %v978_v26, 2  ;;  %v995_v42 = vsel %vm707_vm1, %v993_v38, %v994_v46  ;;  %v1040_v26 = vrot.slane %v1020_v14, 2 }
  0xca   :  { %v812_v10 = vpop.permute.xlu1 %811  ;;  %v520_v49 = vpop.permute.xlu0 %519  ;;  %v1034_v11 = vrot.slane %v1018_v25, 2  ;;  %v1044_v12 = vrot.slane %v1025_v37, 2 }
  0xcb   :  { %658 = vrot.lane.b32.xlu1 %v650_v22, %s1162_s11  ;;  %954 = vrot.lane.b32.xlu0 %v945_v35, %s1162_s11  ;;  %v1761_v56 = vsel %vm133_vm3, %v518_v45, %v520_v49  ;;  %v996_v45 = vrot.slane %v974_v63, 2  ;;  %v1019_v22 = vmul.f32 %v1017_v32, %v1662_v20  ;;  %v1023_v35 = vmul.f32 %v1017_v32, %v1670_v18 }
  0xcc   :  { %v1021_v49 = vmul.f32 %v1017_v32, %v1717_v36  ;;  %v1036_v16 = vsel %vm707_vm1, %v1034_v11, %v1035_v48 }
  0xcd   :  { %v998_v20 = vsel %vm707_vm1, %v996_v45, %v997_v7  ;;  %v1037_v18 = vrot.slane %v1019_v22, 2  ;;  %v1038_v55 = vrot.slane %v1023_v35, 2  ;;  %v287_v7 = vmul.f32 %v1262_v28, %v1481_v58 }
  0xce   :  { %v816_v50 = vpop.permute.xlu1 %815  ;;  %v814_v8 = vpop.permute.xlu0 %813  ;;  %v290_v22 = vmul.f32 %v1267_v29, %v1481_v58  ;;  %v302_v35 = vstv %s1101_s12  ;;  %v332_v28 = vstv %s1102_s13 }
  0xcf   :  { %956 = vrot.lane.b32.xlu1 %v948_v39, %s1162_s11  ;;  %958 = vrot.lane.b32.xlu0 %v951_v41, %s1162_s11  ;;  %v1773_v30 = vsel %vm133_vm3, %v812_v10, %v814_v8  ;;  %v1776_v33 = vsel %vm133_vm3, %v814_v8, %v816_v50  ;;  %v1024_v10 = vmul.f32 %v1017_v32, %v1676_v44  ;;  %v1043_v41 = vrot.slane %v1021_v49, 2 }
  0xd0   :  { %v1039_v44 = vsel %vm707_vm1, %v1037_v18, %v1038_v55  ;;  %v305_v18 = vmul.f32 %v302_v35, %v287_v7  ;;  %v308_v55 = vmul.f32 %v302_v35, %v290_v22  ;;  %v335_v49 = vmul.f32 %v332_v28, %v287_v7 }
  0xd1   :  { %v1041_v36 = vrot.slane %v1024_v10, 2 }
  0xd2   :  { %v859_v43 = vpop.permute.xlu1 %858  ;;  %v818_v4 = vpop.permute.xlu0 %817 }
  0xd3   :  { %999 = vrot.lane.b32.xlu1 %v989_v40, %s1162_s11  ;;  %1001 = vrot.lane.b32.xlu0 %v992_v52, %s1162_s11  ;;  %v1787_v34 = vsel %vm133_vm3, %v816_v50, %v818_v4  ;;  %v1042_v2 = vsel %vm707_vm1, %v1040_v26, %v1041_v36  ;;  %v1045_v50 = vsel %vm707_vm1, %v1043_v41, %v1044_v12  ;;  %v323_v26 = vrot.slane %v308_v55, 1 }
  0xd4   :  { %v285_v40 = vmul.f32 %v1248_v23, %v1461_v17  ;;  %v288_v52 = vmul.f32 %v1253_v24, %v1461_v17  ;;  %v338_v24 = vmul.f32 %v332_v28, %v290_v22 }
  0xd6   :  { %v863_v57 = vpop.permute.xlu1 %862  ;;  %v861_v39 = vpop.permute.xlu0 %860  ;;  %v303_v29 = vmul.f32 %v302_v35, %v285_v40  ;;  %v306_v14 = vmul.f32 %v302_v35, %v288_v52 }
  0xd7   :  { %1003 = vrot.lane.b32.xlu1 %v995_v42, %s1162_s11  ;;  %1005 = vrot.lane.b32.xlu0 %v998_v20, %s1162_s11  ;;  %v1798_v59 = vsel %vm133_vm3, %v859_v43, %v861_v39  ;;  %v1801_v63 = vsel %vm133_vm3, %v861_v39, %v863_v57  ;;  %v2020_v43 = vld [vmem:[#allocation8_spill] sm:$0xff]  ;;  %v2021_v20 = vld [vmem:[#allocation9_spill] sm:$0xff]  ;;  %v333_v39 = vmul.f32 %v332_v28, %v285_v40 }
  0xd8   :  { %v286_v4 = vmul.f32 %v2020_v43, %v1467_v51  ;;  %v289_v48 = vmul.f32 %v2021_v20, %v1467_v51  ;;  %v316_v36 = vrot.slane %v303_v29, 1  ;;  %v317_v41 = vrot.slane %v306_v14, 1 }
  0xd9   :  { %v352_v43 = vrot.slane %v338_v24, 1  ;;  %v345_v20 = vrot.slane %v333_v39, 1 }
  0xda   :  { %v906_v32 = vpop.permute.xlu1 %905  ;;  %v865_v21 = vpop.permute.xlu0 %864  ;;  %v304_v10 = vmul.f32 %v302_v35, %v286_v4  ;;  %v334_v12 = vmul.f32 %v332_v28, %v286_v4 }
  0xdb   :  { %1046 = vrot.lane.b32.xlu1 %v1036_v16, %s1162_s11  ;;  %1048 = vrot.lane.b32.xlu0 %v1039_v44, %s1162_s11  ;;  %v1808_v13 = vsel %vm133_vm3, %v863_v57, %v865_v21  ;;  %v307_v57 = vmul.f32 %v302_v35, %v289_v48  ;;  %v336_v16 = vmul.f32 %v332_v28, %v288_v52  ;;  %v322_v44 = vrot.slane %v305_v18, 1 }
  0xdc   :  { %2016 = vst [vmem:[#allocation14_spill] sm:$0xff] %v1808_v13  ;;  %v319_v21 = vrot.slane %v304_v10, 1  ;;  %v348_v18 = vrot.slane %v334_v12, 1 }
  0xdd   :  { %v324_v35 = vsel %vm315_vm0, %v322_v44, %v323_v26 }
  0xde   :  { %v910_v8 = vpop.permute.xlu1 %909  ;;  %v908_v38 = vpop.permute.xlu0 %907 }
  0xdf   :  { %1050 = vrot.lane.b32.xlu1 %v1042_v2, %s1162_s11  ;;  %1052 = vrot.lane.b32.xlu0 %v1045_v50, %s1162_s11  ;;  %v1815_v46 = vsel %vm133_vm3, %v906_v32, %v908_v38  ;;  %v1818_v25 = vsel %vm133_vm3, %v908_v38, %v910_v8  ;;  %v337_v32 = vmul.f32 %v332_v28, %v289_v48  ;;  %v351_v2 = vrot.slane %v335_v49, 1 }
  0xe0   :  { %2017 = vst [vmem:[#allocation15_spill] sm:$0xff] %v1815_v46  ;;  %2018 = vst [vmem:[#allocation16_spill] sm:$0xff] %v1818_v25  ;;  %v361_v50 = vstv %s1103_s14  ;;  %v318_v25 = vsel %vm315_vm0, %v316_v36, %v317_v41  ;;  %v2024_v41 = vld [vmem:[#allocation11_spill] sm:$0xff] }
  0xe1   :  { %v349_v55 = vrot.slane %v337_v32, 1  ;;  %v364_v29 = vmul.f32 %v361_v50, %v287_v7  ;;  %v367_v14 = vmul.f32 %v361_v50, %v290_v22  ;;  %v362_v46 = vmul.f32 %v361_v50, %v285_v40  ;;  %v2022_v7 = vld [vmem:[#allocation12_spill] sm:$0xff]  ;;  %v2023_v40 = vld [vmem:[#allocation10_spill] sm:$0xff] }
  0xe2   :  { %v912_v15 = vpop.permute.xlu0 %911  ;;  %v365_v28 = vmul.f32 %v361_v50, %v288_v52  ;;  %v363_v39 = vmul.f32 %v361_v50, %v286_v4  ;;  %v366_v36 = vmul.f32 %v361_v50, %v289_v48 }
  0xe3   :  { %v1821_v45 = vsel %vm133_vm3, %v910_v8, %v912_v15  ;;  %v320_v15 = vrot.slane %v307_v57, 1  ;;  %v353_v57 = vsel %vm315_vm0, %v351_v2, %v352_v43  ;;  %v350_v32 = vsel %vm315_vm0, %v348_v18, %v349_v55  ;;  %v2025_v55 = vld [vmem:[#allocation13_spill] sm:$0xff] }
  0xe4   :  { %2019 = vst [vmem:[#allocation17_spill] sm:$0xff] %v1821_v45  ;;  %v346_v45 = vrot.slane %v336_v16, 1  ;;  %v381_v2 = vrot.slane %v367_v14, 1  ;;  %v377_v48 = vrot.slane %v363_v39, 1 }
  0xe5   :  { %v321_v13 = vsel %vm315_vm0, %v319_v21, %v320_v15  ;;  %v380_v21 = vrot.slane %v364_v29, 1  ;;  %v374_v15 = vrot.slane %v362_v46, 1 }
  0xe6   :  { %v347_v24 = vsel %vm315_vm0, %v345_v20, %v346_v45  ;;  %v375_v45 = vrot.slane %v365_v28, 1 }
 0x10d   :  { %v208_v42 = vpop.permute.xlu1 %207  ;;  %v214_v11 = vpop.permute.xlu0 %213 }
 0x111   :  { %v236_v23 = vpop.permute.xlu1 %235  ;;  %v242_v37 = vpop.permute.xlu0 %241 }
 0x115   :  { %v263_v8 = vpop.permute.xlu1 %262  ;;  %v269_v38 = vpop.permute.xlu0 %268 }
 0x119   :  { %v212_v10 = vpop.permute.xlu1 %211  ;;  %v210_v49 = vpop.permute.xlu0 %209 }
 0x11a   :  { %v218_v16 = vsel %vm215_vm4, %v212_v10, %v214_v11  ;;  %v216_v44 = vsel %vm215_vm4, %v208_v42, %v210_v49  ;;  %v217_v26 = vsel %vm215_vm4, %v210_v49, %v212_v10 }
 0x11b   :  { %v224_v22 = vadd.f32 %v218_v16, %v2022_v7  ;;  %v222_v52 = vadd.f32 %v216_v44, %v2023_v40  ;;  %v223_v12 = vadd.f32 %v217_v26, %v2024_v41  ;;  %v378_v16 = vrot.slane %v366_v36, 1 }
 0x11c   :  { %v694_v7 = vstv %s1847_s15 }
 0x11d   :  { %v330_v4 = vadd.f32 %v324_v35, %v224_v22  ;;  %v328_v11 = vadd.f32 %v318_v25, %v222_v52  ;;  %v329_v42 = vadd.f32 %v321_v13, %v223_v12  ;;  %v240_v43 = vpop.permute.xlu1 %239  ;;  %v238_v20 = vpop.permute.xlu0 %237  ;;  %v382_v13 = vsel %vm315_vm0, %v380_v21, %v381_v2  ;;  %v1129_v2 = vld [vmem:[%s2002_s0 + $0x30] sm:$0x3] }
 0x11e   :  { %v245_v50 = vsel %vm215_vm4, %v240_v43, %v242_v37  ;;  %v243_v10 = vsel %vm215_vm4, %v236_v23, %v238_v20  ;;  %v244_v49 = vsel %vm215_vm4, %v238_v20, %v240_v43  ;;  %v379_v26 = vsel %vm315_vm0, %v377_v48, %v378_v16 }
 0x11f   :  { %v251_v18 = vadd.f32 %v245_v50, %v1630_v3  ;;  %v249_v46 = vadd.f32 %v243_v10, %v1610_v6  ;;  %v250_v29 = vadd.f32 %v244_v49, %v2025_v55  ;;  %v1856_v35 = vadd.f32 %v1696_v19, %v328_v11 }
 0x120   :  { %v1860_v25 = vadd.f32 %v1699_v27, %v329_v42  ;;  %v1863_v37 = vadd.f32 %v1710_v31, %v330_v4  ;;  %v376_v6 = vsel %vm315_vm0, %v374_v15, %v375_v45  ;;  %v681_v21 = vmul.f32 %v1369_v54, %v1467_v51 }
 0x121   :  { %v359_v23 = vadd.f32 %v353_v57, %v251_v18  ;;  %v357_v14 = vadd.f32 %v347_v24, %v249_v46  ;;  %v358_v28 = vadd.f32 %v350_v32, %v250_v29  ;;  %v267_v3 = vpop.permute.xlu1 %266  ;;  %v265_v39 = vpop.permute.xlu0 %264  ;;  %v682_v15 = vmul.f32 %v1129_v2, %v1481_v58 }
 0x122   :  { %v272_v19 = vsel %vm215_vm4, %v267_v3, %v269_v38  ;;  %v270_v44 = vsel %vm215_vm4, %v263_v8, %v265_v39  ;;  %v271_v27 = vsel %vm215_vm4, %v265_v39, %v267_v3  ;;  %v724_v42 = vstv %s1866_s16 }
 0x123   :  { %v278_v31 = vadd.f32 %v272_v19, %v1684_v47  ;;  %v276_v57 = vadd.f32 %v270_v44, %v1652_v0  ;;  %v277_v24 = vadd.f32 %v271_v27, %v1654_v61  ;;  %v1876_v36 = vadd.f32 %v1713_v1, %v357_v14  ;;  %v1126_v0 = vld [vmem:[%s2002_s0] sm:$0xfc]  ;;  %v1127_v47 = vld [vmem:[%s2002_s0 + $0x20] sm:$0x3] }
 0x124   :  { %v1880_v22 = vadd.f32 %v1724_v9, %v358_v28  ;;  %v1883_v38 = vadd.f32 %v1729_v60, %v359_v23  ;;  %v677_v61 = vmul.f32 %v1126_v0, %v1461_v17  ;;  %v680_v1 = vmul.f32 %v1127_v47, %v1461_v17  ;;  %v1128_v60 = vld [vmem:[%s2002_s0 + $0x10] sm:$0xfc]  ;;  %s1928_s0 = sld [smem:[#allocation4]] }
 0x125   :  { %v388_v8 = vadd.f32 %v382_v13, %v278_v31  ;;  %v386_v40 = vadd.f32 %v376_v6, %v276_v57  ;;  %v387_v52 = vadd.f32 %v379_v26, %v277_v24  ;;  %v561_v41 = vpop.permute.xlu1 %560  ;;  %v1885_v12 = vpop.permute.xlu0 %566  ;;  %v678_v9 = vmul.f32 %v1364_v53, %v1467_v51 }
 0x126   :  { %v679_v32 = vmul.f32 %v1128_v60, %v1481_v58  ;;  %v695_v54 = vmul.f32 %v694_v7, %v677_v61  ;;  %v698_v51 = vmul.f32 %v694_v7, %v680_v1  ;;  %v699_v20 = vmul.f32 %v694_v7, %v681_v21 }
 0x127   :  { %v1908_v17 = vadd.f32 %v1747_v5, %v386_v40  ;;  %v1911_v53 = vadd.f32 %v1750_v62, %v387_v52  ;;  %v1914_v45 = vadd.f32 %v1761_v56, %v388_v8  ;;  %v696_v43 = vmul.f32 %v694_v7, %v678_v9 }
 0x128   :  { %v697_v48 = vmul.f32 %v694_v7, %v679_v32  ;;  %v700_v50 = vmul.f32 %v694_v7, %v682_v15  ;;  %v725_v58 = vmul.f32 %v724_v42, %v677_v61  ;;  %v728_v49 = vmul.f32 %v724_v42, %v680_v1 }
 0x129   :  { %v608_v4 = vpop.permute.xlu1 %607  ;;  %v1916_v11 = vpop.permute.xlu0 %613  ;;  %v726_v62 = vmul.f32 %v724_v42, %v678_v9  ;;  %v729_v16 = vmul.f32 %v724_v42, %v681_v21  ;;  %v753_v18 = vstv %s1112_s19  ;;  %v708_v56 = vrot.slane %v695_v54, 2 }
 0x12a   :  { %v709_v46 = vrot.slane %v698_v51, 2  ;;  %v711_v55 = vrot.slane %v696_v43, 2  ;;  %v712_v29 = vrot.slane %v699_v20, 2  ;;  %v714_v13 = vrot.slane %v697_v48, 2 }
 0x12b   :  { %v715_v23 = vrot.slane %v700_v50, 2  ;;  %v727_v14 = vmul.f32 %v724_v42, %v679_v32  ;;  %v730_v28 = vmul.f32 %v724_v42, %v682_v15  ;;  %v754_v3 = vmul.f32 %v753_v18, %v677_v61 }
 0x12c   :  { %v757_v39 = vmul.f32 %v753_v18, %v680_v1  ;;  %v737_v44 = vrot.slane %v725_v58, 2  ;;  %v738_v27 = vrot.slane %v728_v49, 2  ;;  %v740_v26 = vrot.slane %v726_v62, 2 }
 0x12d   :  { %v655_v10 = vpop.permute.xlu1 %654  ;;  %v1919_v5 = vpop.permute.xlu0 %660  ;;  %v741_v31 = vrot.slane %v729_v16, 2  ;;  %v710_v24 = vsel %vm707_vm1, %v708_v56, %v709_v46  ;;  %v713_v7 = vsel %vm707_vm1, %v711_v55, %v712_v29  ;;  %v716_v40 = vsel %vm707_vm1, %v714_v13, %v715_v23 }
 0x12e   :  { %v743_v52 = vrot.slane %v727_v14, 2  ;;  %v744_v0 = vrot.slane %v730_v28, 2  ;;  %v766_v61 = vrot.slane %v754_v3, 2  ;;  %v767_v47 = vrot.slane %v757_v39, 2 }
 0x12f   :  { %v755_v1 = vmul.f32 %v753_v18, %v678_v9  ;;  %v758_v60 = vmul.f32 %v753_v18, %v681_v21  ;;  %v742_v51 = vsel %vm707_vm1, %v740_v26, %v741_v31  ;;  %v756_v43 = vmul.f32 %v753_v18, %v679_v32 }
 0x130   :  { %v759_v50 = vmul.f32 %v753_v18, %v682_v15  ;;  %v745_v62 = vsel %vm707_vm1, %v743_v52, %v744_v0  ;;  %v768_v32 = vsel %vm707_vm1, %v766_v61, %v767_v47  ;;  %v1064_v28 = vstv %s1928_s0 }
 0x131   :  { %v1921_v6 = vpop.permute.xlu1 %952  ;;  %v563_v19 = vpop.permute.xlu0 %562  ;;  %v769_v16 = vrot.slane %v755_v1, 2  ;;  %v770_v56 = vrot.slane %v758_v60, 2  ;;  %v772_v18 = vrot.slane %v756_v43, 2 }
 0x132   :  { %v568_v57 = vsel %vm215_vm4, %v561_v41, %v563_v19  ;;  %v739_v41 = vsel %vm707_vm1, %v737_v44, %v738_v27 }
 0x133   :  { %v574_v8 = vadd.f32 %v568_v57, %v1856_v35 }
 0x135   :  { %v720_v2 = vadd.f32 %v710_v24, %v574_v8  ;;  %v565_v42 = vpop.permute.xlu1 %564  ;;  %v610_v54 = vpop.permute.xlu0 %609  ;;  %v2026_v24 = vld [vmem:[#allocation14_spill] sm:$0xff]  ;;  %v2027_v8 = vld [vmem:[#allocation15_spill] sm:$0xff] }
 0x136   :  { %v569_v35 = vsel %vm215_vm4, %v563_v19, %v565_v42  ;;  %v570_v20 = vsel %vm215_vm4, %v565_v42, %v1885_v12  ;;  %v615_v48 = vsel %vm215_vm4, %v608_v4, %v610_v54 }
 0x137   :  { %v575_v9 = vadd.f32 %v569_v35, %v1860_v25  ;;  %v576_v21 = vadd.f32 %v570_v20, %v1863_v37  ;;  %v621_v58 = vadd.f32 %v615_v48, %v1876_v36  ;;  %v825_v49 = vadd.f32 %v1773_v30, %v720_v2  ;;  %v2029_v2 = vld [vmem:[#allocation17_spill] sm:$0xff] }
 0x138   :  { %v773_v36 = vrot.slane %v759_v50, 2  ;;  %v1069_v35 = vstv %s1119_s26 }
 0x139   :  { %v721_v46 = vadd.f32 %v713_v7, %v575_v9  ;;  %v722_v12 = vadd.f32 %v716_v40, %v576_v21  ;;  %v749_v55 = vadd.f32 %v739_v41, %v621_v58  ;;  %v612_v4 = vpop.permute.xlu1 %611  ;;  %v657_v15 = vpop.permute.xlu0 %656 }
 0x13a   :  { %v616_v25 = vsel %vm215_vm4, %v610_v54, %v612_v4  ;;  %v617_v37 = vsel %vm215_vm4, %v612_v4, %v1916_v11  ;;  %v662_v30 = vsel %vm215_vm4, %v655_v10, %v657_v15  ;;  %v771_v10 = vsel %vm707_vm1, %v769_v16, %v770_v56 }
 0x13b   :  { %v622_v29 = vadd.f32 %v616_v25, %v1880_v22  ;;  %v623_v13 = vadd.f32 %v617_v37, %v1883_v38  ;;  %v668_v23 = vadd.f32 %v662_v30, %v1908_v17  ;;  %v826_v14 = vadd.f32 %v1776_v33, %v721_v46 }
 0x13c   :  { %v827_v3 = vadd.f32 %v1787_v34, %v722_v12  ;;  %v872_v39 = vadd.f32 %v1798_v59, %v749_v55  ;;  %v774_v17 = vsel %vm707_vm1, %v772_v18, %v773_v36  ;;  %v1074_v55 = vstv %s1120_s27 }
 0x13d   :  { %v750_v19 = vadd.f32 %v742_v51, %v622_v29  ;;  %v751_v44 = vadd.f32 %v745_v62, %v623_v13  ;;  %v778_v27 = vadd.f32 %v768_v32, %v668_v23  ;;  %v659_v11 = vpop.permute.xlu1 %658  ;;  %v955_v26 = vpop.permute.xlu0 %954 }
 0x13e   :  { %v663_v22 = vsel %vm215_vm4, %v657_v15, %v659_v11  ;;  %v664_v38 = vsel %vm215_vm4, %v659_v11, %v1919_v5  ;;  %v960_v33 = vsel %vm215_vm4, %v1921_v6, %v955_v26 }
 0x13f   :  { %v669_v34 = vadd.f32 %v663_v22, %v1911_v53  ;;  %v670_v59 = vadd.f32 %v664_v38, %v1914_v45  ;;  %v966_v31 = vadd.f32 %v960_v33, %v825_v49  ;;  %v873_v57 = vadd.f32 %v1801_v63, %v750_v19  ;;  %v2028_v63 = vld [vmem:[#allocation16_spill] sm:$0xff] }
 0x140   :  { %v874_v7 = vadd.f32 %v2026_v24, %v751_v44  ;;  %v919_v40 = vadd.f32 %v2027_v8, %v778_v27 }
 0x141   :  { %v779_v52 = vadd.f32 %v771_v10, %v669_v34  ;;  %v780_v0 = vadd.f32 %v774_v17, %v670_v59  ;;  %v1065_v5 = vadd.f32 %v1064_v28, %v966_v31  ;;  %v957_v61 = vpop.permute.xlu1 %956  ;;  %v959_v47 = vpop.permute.xlu0 %958 }
 0x142   :  { %v961_v1 = vsel %vm215_vm4, %v955_v26, %v957_v61  ;;  %v962_v6 = vsel %vm215_vm4, %v957_v61, %v959_v47 }
 0x143   :  { %1078 = vst [vmem:[%s2007_s5] sm:$0xff] %v1065_v5  ;;  %v967_v53 = vadd.f32 %v961_v1, %v826_v14  ;;  %v968_v45 = vadd.f32 %v962_v6, %v827_v3  ;;  %v920_v60 = vadd.f32 %v2028_v63, %v779_v52  ;;  %v921_v42 = vadd.f32 %v2029_v2, %v780_v0 }
 0x145   :  { %v1066_v54 = vadd.f32 %v1064_v28, %v967_v53  ;;  %v1067_v41 = vadd.f32 %v1064_v28, %v968_v45  ;;  %v1000_v51 = vpop.permute.xlu1 %999  ;;  %v1002_v43 = vpop.permute.xlu0 %1001 }
 0x146   :  { %v1007_v20 = vsel %vm215_vm4, %v1000_v51, %v1002_v43 }
 0x147   :  { %1079 = vst [vmem:[%s2007_s5 + $0x8] sm:$0xff] %v1066_v54  ;;  %1080 = vst [vmem:[%s2007_s5 + $0x10] sm:$0xff] %v1067_v41  ;;  %v1013_v48 = vadd.f32 %v1007_v20, %v872_v39 }
 0x149   :  { %v1070_v50 = vadd.f32 %v1069_v35, %v1013_v48  ;;  %v1004_v9 = vpop.permute.xlu1 %1003  ;;  %v1006_v21 = vpop.permute.xlu0 %1005 }
 0x14a   :  { %v1008_v58 = vsel %vm215_vm4, %v1002_v43, %v1004_v9  ;;  %v1009_v49 = vsel %vm215_vm4, %v1004_v9, %v1006_v21 }
 0x14b   :  { %1081 = vst [vmem:[%s2007_s5 + $0x18] sm:$0xff] %v1070_v50  ;;  %v1014_v62 = vadd.f32 %v1008_v58, %v873_v57  ;;  %v1015_v32 = vadd.f32 %v1009_v49, %v874_v7 }
 0x14d   :  { %v1071_v16 = vadd.f32 %v1069_v35, %v1014_v62  ;;  %v1072_v56 = vadd.f32 %v1069_v35, %v1015_v32  ;;  %v1047_v46 = vpop.permute.xlu1 %1046  ;;  %v1049_v12 = vpop.permute.xlu0 %1048 }
 0x14e   :  { %v1054_v4 = vsel %vm215_vm4, %v1047_v46, %v1049_v12 }
 0x14f   :  { %1082 = vst [vmem:[%s2007_s5 + $0x20] sm:$0xff] %v1071_v16  ;;  %1083 = vst [vmem:[%s2007_s5 + $0x28] sm:$0xff] %v1072_v56  ;;  %v1060_v15 = vadd.f32 %v1054_v4, %v919_v40 }
 0x151   :  { %v1075_v18 = vadd.f32 %v1074_v55, %v1060_v15  ;;  %v1051_v25 = vpop.permute.xlu1 %1050  ;;  %v1053_v37 = vpop.permute.xlu0 %1052 }
 0x152   :  { %v1055_v30 = vsel %vm215_vm4, %v1049_v12, %v1051_v25  ;;  %v1056_v36 = vsel %vm215_vm4, %v1051_v25, %v1053_v37 }
 0x153   :  { %1084 = vst [vmem:[%s2007_s5 + $0x30] sm:$0xff] %v1075_v18  ;;  %v1061_v29 = vadd.f32 %v1055_v30, %v920_v60  ;;  %v1062_v13 = vadd.f32 %v1056_v36, %v921_v42 }
 0x155   :  { %v1076_v23 = vadd.f32 %v1074_v55, %v1061_v29  ;;  %v1077_v14 = vadd.f32 %v1074_v55, %v1062_v13 }
 0x157   :  { %1085 = vst [vmem:[%s2007_s5 + $0x38] sm:$0xff] %v1076_v23  ;;  %1086 = vst [vmem:[%s2007_s5 + $0x40] sm:$0xff] %v1077_v14 }
 0x158   :  { %1091 = vsyncpa [#allocation3], 1 }
 0x159   :  { %1092 = vsyncpa [#allocation5], 1 }

</bundles_post_ra>
